<compile_context>
chip_gen: v5e
topology: v5e:2x2
jax: 0.10.0
libtpu: 0.0.40
codegen_flags: <defaults>
</compile_context>

<pallas_src>
import functools
import math

import jax
import jax.numpy as jnp
from jax.experimental import pallas as pl
from jax.experimental.pallas import tpu as pltpu

BN_EPS = 1e-5
LEAKY_SLOPE = 0.2
OUT_DTYPE = jnp.bfloat16


# ----------------------------- Pallas kernels -----------------------------

def _std_block_kernel(*refs, k, stride, n_ph, tr, slope):
    """Fused Conv2d(k, stride, pad=k//2) + folded-BN + LeakyReLU for TR rows.

    refs = (x_phase[0..n_ph*n_ph-1], w_ref, b_ref, o_ref)
      x_phase[(kh%s)*n_ph + (kw%s)] : (1, Hp_p, Wp_p, Cin) bf16 phase view
      w_ref : (k*k, Cin, Cout) bf16   BN-folded conv weights
      b_ref : (1, Cout)        f32    BN-folded bias
      o_ref : (1, TR, Wo, Cout)       one block of TR output rows
    """
    x_refs = refs[:n_ph * n_ph]
    w_ref, b_ref, o_ref = refs[n_ph * n_ph:]
    _, _, wo, cout = o_ref.shape
    cin = w_ref.shape[1]
    row0 = pl.program_id(1) * tr

    # Accumulator kept as a value: TR is chosen so it fits well under half the
    # vreg file (see _choose_row_block), so no spills.
    acc = jnp.zeros((tr * wo, cout), jnp.float32)
    for kh in range(k):
        ph, rh = kh % stride, kh // stride
        for kw in range(k):
            pw, rw = kw % stride, kw // stride
            xs = x_refs[ph * n_ph + pw][0, pl.ds(row0 + rh, tr),
                                        pl.ds(rw, wo), :]          # (TR,Wo,Cin) bf16
            acc = acc + jnp.dot(xs.reshape(tr * wo, cin),          # M = TR*Wo
                                w_ref[kh * k + kw],
                                preferred_element_type=jnp.float32)
    acc = acc + b_ref[...]                                         # f32 epilogue
    y = jnp.where(acc >= 0.0, acc, slope * acc)
    o_ref[...] = y.reshape(1, tr, wo, cout).astype(o_ref.dtype)


def _sep_block_kernel(*refs, k, stride, n_ph, tr, slope):
    """Fused depthwise Conv2d(k, stride, groups=C) + 1x1 Conv2d + folded-BN +
    LeakyReLU for TR output rows.

    refs = (x_phase[...], dw_w (k*k,1,C) f32, dw_b (1,C) f32,
            pw_w (C,Cout) bf16, pw_b (1,Cout) f32, o_ref (1,TR,Wo,Cout))
    """
    x_refs = refs[:n_ph * n_ph]
    dw_w_ref, dw_b_ref, pw_w_ref, pw_b_ref, o_ref = refs[n_ph * n_ph:]
    _, _, wo, cout = o_ref.shape
    c = pw_w_ref.shape[0]
    row0 = pl.program_id(1) * tr

    acc = jnp.zeros((tr * wo, c), jnp.float32)       # depthwise on the VPU, f32
    for kh in range(k):
        ph, rh = kh % stride, kh // stride
        for kw in range(k):
            pw, rw = kw % stride, kw // stride
            xs = x_refs[ph * n_ph + pw][0, pl.ds(row0 + rh, tr),
                                        pl.ds(rw, wo), :]
            # TODO(synk): reuse the f32 conversion across the k taps touching
            #             the same input rows (k-fold fewer convert passes).
            acc = acc + xs.reshape(tr * wo, c).astype(jnp.float32) \
                        * dw_w_ref[kh * k + kw]                    # (1, C) bcast
    dw = acc + dw_b_ref[...]
    y = jnp.dot(dw.astype(jnp.bfloat16), pw_w_ref[...],            # MXU in bf16
                preferred_element_type=jnp.float32)
    y = y + pw_b_ref[...]
    y = jnp.where(y >= 0.0, y, slope * y)
    o_ref[...] = y.reshape(1, tr, wo, cout).astype(o_ref.dtype)


# ----------------------------- wrappers -----------------------------

def _out_hw(size, k, stride):
    pad = k // 2
    return (size + 2 * pad - k) // stride + 1


def _choose_row_block(ho, wo, cout):
    """Largest TR dividing Ho with M = TR*Wo <= 512 and an f32 accumulator
    under ~32 vregs (avoids register spills while filling the MXU M dim)."""
    best = 1
    for tr in range(1, ho + 1):
        if ho % tr:
            continue
        m = tr * wo
        if m <= 512 and m * cout * 4 <= 128 * 1024:
            best = tr
    return best


def _pad_cast_phase_split(x_nhwc, k, stride):
    """Zero-pad + cast to bf16 (one fused pass); for stride > 1 also split into
    stride x stride (row, col) phase views so every in-kernel load is a
    contiguous (TR, Wo, Cin) slab."""
    pad = k // 2
    xp = jnp.pad(x_nhwc, ((0, 0), (pad, pad), (pad, pad), (0, 0)))
    xp = xp.astype(jnp.bfloat16)
    if stride == 1:
        return [xp], 1
    n_ph = min(stride, k)
    return [xp[:, ph::stride, pw::stride, :]
            for ph in range(n_ph) for pw in range(n_ph)], n_ph


def _phase_assert(phases, n_ph, k, stride, ho, wo):
    """Every tap's contiguous (ho, wo) window must fit inside its phase view."""
    for kh in range(k):
        for kw in range(k):
            p = phases[(kh % stride) * n_ph + (kw % stride)]
            assert p.shape[1] >= ho + kh // stride, (p.shape, kh, stride)
            assert p.shape[2] >= wo + kw // stride, (p.shape, kw, stride)


def _vmem_limit_bytes(phases, consts, out_block_shape, out_itemsize):
    """Size the scoped-VMEM limit from the actual resident blocks (+ margin)."""
    n_in = sum(math.prod(p.shape[1:]) * p.dtype.itemsize for p in phases)
    n_w = sum(math.prod(tuple(a.shape)) * a.dtype.itemsize for a in consts)
    n_out = math.prod(out_block_shape) * out_itemsize
    need = 2 * (n_in + n_w + n_out)            # worst case: everything 2x-buffered
    return int(min(max(2 * need + (4 << 20), 32 << 20), 100 << 20))


def conv_block_standard_nhwc(x, w_mat, b_vec, *, k, stride, slope=LEAKY_SLOPE,
                             out_dtype=OUT_DTYPE):
    n, h, wd, _ = x.shape
    cout = w_mat.shape[-1]
    ho, wo = _out_hw(h, k, stride), _out_hw(wd, k, stride)
    phases, n_ph = _pad_cast_phase_split(x, k, stride)
    _phase_assert(phases, n_ph, k, stride, ho, wo)
    tr = _choose_row_block(ho, wo, cout)

    in_specs = [pl.BlockSpec((1,) + p.shape[1:], lambda i, j: (i, 0, 0, 0))
                for p in phases]
    in_specs += [pl.BlockSpec(w_mat.shape, lambda i, j: (0, 0, 0)),
                 pl.BlockSpec(b_vec.shape, lambda i, j: (0, 0))]
    out_block = (1, tr, wo, cout)
    kernel = functools.partial(_std_block_kernel, k=k, stride=stride,
                               n_ph=n_ph, tr=tr, slope=slope)
    return pl.pallas_call(
        kernel,
        grid=(n, ho // tr),
        in_specs=in_specs,
        out_specs=pl.BlockSpec(out_block, lambda i, j: (i, j, 0, 0)),
        out_shape=jax.ShapeDtypeStruct((n, ho, wo, cout), out_dtype),
        compiler_params=pltpu.CompilerParams(
            dimension_semantics=("parallel", "parallel"),
            vmem_limit_bytes=_vmem_limit_bytes(
                phases, (w_mat, b_vec), out_block,
                jnp.dtype(out_dtype).itemsize)),
    )(*phases, w_mat, b_vec)


def conv_block_separable_nhwc(x, dw_mat, dw_b_vec, pw_mat, pw_b_vec, *,
                              k, stride, slope=LEAKY_SLOPE, out_dtype=OUT_DTYPE):
    n, h, wd, c = x.shape
    cout = pw_mat.shape[-1]
    ho, wo = _out_hw(h, k, stride), _out_hw(wd, k, stride)
    phases, n_ph = _pad_cast_phase_split(x, k, stride)
    _phase_assert(phases, n_ph, k, stride, ho, wo)
    tr = _choose_row_block(ho, wo, max(c, cout))

    in_specs = [pl.BlockSpec((1,) + p.shape[1:], lambda i, j: (i, 0, 0, 0))
                for p in phases]
    in_specs += [pl.BlockSpec(dw_mat.shape, lambda i, j: (0, 0, 0)),
                 pl.BlockSpec(dw_b_vec.shape, lambda i, j: (0, 0)),
                 pl.BlockSpec(pw_mat.shape, lambda i, j: (0, 0)),
                 pl.BlockSpec(pw_b_vec.shape, lambda i, j: (0, 0))]
    out_block = (1, tr, wo, cout)
    kernel = functools.partial(_sep_block_kernel, k=k, stride=stride,
                               n_ph=n_ph, tr=tr, slope=slope)
    return pl.pallas_call(
        kernel,
        grid=(n, ho // tr),
        in_specs=in_specs,
        out_specs=pl.BlockSpec(out_block, lambda i, j: (i, j, 0, 0)),
        out_shape=jax.ShapeDtypeStruct((n, ho, wo, cout), out_dtype),
        compiler_params=pltpu.CompilerParams(
            dimension_semantics=("parallel", "parallel"),
            vmem_limit_bytes=_vmem_limit_bytes(
                phases, (dw_mat, dw_b_vec, pw_mat, pw_b_vec), out_block,
                jnp.dtype(out_dtype).itemsize)),
    )(*phases, dw_mat, dw_b_vec, pw_mat, pw_b_vec)


def conv_block_forward(params, x_nchw, *, kernel_size, stride, separable,
                       slope=LEAKY_SLOPE, out_dtype=OUT_DTYPE):
    """Forward pass of ConvBlock in NCHW (PyTorch convention).  A full network
    should instead chain the *_nhwc functions directly (bf16, NHWC) and skip
    these boundary transposes."""
    x = jnp.transpose(x_nchw, (0, 2, 3, 1))                    # NCHW -> NHWC
    if separable:
        y = conv_block_separable_nhwc(x, params["dw_mat"], params["dw_b_vec"],
                                      params["pw_mat"], params["pw_b_vec"],
                                      k=kernel_size, stride=stride, slope=slope,
                                      out_dtype=out_dtype)
    else:
        y = conv_block_standard_nhwc(x, params["w_mat"], params["b_vec"],
                                     k=kernel_size, stride=stride, slope=slope,
                                     out_dtype=out_dtype)
    return jnp.transpose(y, (0, 3, 1, 2))                      # NHWC -> NCHW


# ----------------------------- parameters -----------------------------

def make_conv_block_params(key, in_features, out_features, kernel_size, stride,
                           separable):
    """PyTorch-default init; BN (inference mode) folded into the matmul weights."""
    del stride  # parameters do not depend on stride
    k = kernel_size
    keys = jax.random.split(key, 4)

    def u(kk, shape, fan_in):
        bound = 1.0 / (fan_in ** 0.5)
        return jax.random.uniform(kk, shape, jnp.float32, -bound, bound)

    gamma = jnp.ones((out_features,), jnp.float32)
    beta = jnp.zeros((out_features,), jnp.float32)
    mean = jnp.zeros((out_features,), jnp.float32)
    var = jnp.ones((out_features,), jnp.float32)
    scale = gamma / jnp.sqrt(var + BN_EPS)                     # BN fold factor

    p = {"gamma": gamma, "beta": beta, "mean": mean, "var": var}
    if not separable:
        fan_in = in_features * k * k
        w = u(keys[0], (out_features, in_features, k, k), fan_in)   # OIHW
        b = u(keys[1], (out_features,), fan_in)
        p["w_oihw"], p["b"] = w, b
        w_mat = jnp.transpose(w, (2, 3, 1, 0)).reshape(k * k, in_features,
                                                       out_features)
        p["w_mat"] = (w_mat * scale[None, None, :]).astype(jnp.bfloat16)
        p["b_vec"] = ((b - mean) * scale + beta).reshape(1, out_features)
    else:
        assert in_features == out_features, \
            "separable ConvBlock requires in_features == out_features"
        dw_fan = k * k                                         # groups=in_features
        dw = u(keys[0], (out_features, 1, k, k), dw_fan)       # OIHW depthwise
        dw_b = u(keys[1], (out_features,), dw_fan)
        pw_fan = in_features
        pw = u(keys[2], (out_features, in_features, 1, 1), pw_fan)
        pw_b = u(keys[3], (out_features,), pw_fan)
        p["dw_oihw"], p["dw_b"], p["pw_oihw"], p["pw_b"] = dw, dw_b, pw, pw_b
        p["dw_mat"] = jnp.transpose(dw, (2, 3, 1, 0)).reshape(k * k, 1,
                                                              out_features)
        p["dw_b_vec"] = dw_b.reshape(1, out_features)
        p["pw_mat"] = (pw[:, :, 0, 0].T * scale[None, :]).astype(jnp.bfloat16)
        p["pw_b_vec"] = ((pw_b - mean) * scale + beta).reshape(1, out_features)
    return p


# ----------------------------- pure-JAX reference -----------------------------

def reference_conv_block(params, x_nchw, *, kernel_size, stride, separable,
                         slope=LEAKY_SLOPE):
    """f32 lax.conv reference with the exact PyTorch ConvBlock semantics."""
    k, pad = kernel_size, kernel_size // 2
    dn = ("NCHW", "OIHW", "NCHW")
    x = x_nchw.astype(jnp.float32)
    if not separable:
        y = jax.lax.conv_general_dilated(x, params["w_oihw"], (stride, stride),
                                         [(pad, pad), (pad, pad)],
                                         dimension_numbers=dn)
        y = y + params["b"][None, :, None, None]
    else:
        y = jax.lax.conv_general_dilated(x, params["dw_oihw"], (stride, stride),
                                         [(pad, pad), (pad, pad)],
                                         dimension_numbers=dn,
                                         feature_group_count=x.shape[1])
        y = y + params["dw_b"][None, :, None, None]
        y = jax.lax.conv_general_dilated(y, params["pw_oihw"], (1, 1),
                                         [(0, 0), (0, 0)],
                                         dimension_numbers=dn)
        y = y + params["pw_b"][None, :, None, None]
    scale = params["gamma"] / jnp.sqrt(params["var"] + BN_EPS)
    y = (y - params["mean"][None, :, None, None]) * scale[None, :, None, None] \
        + params["beta"][None, :, None, None]
    return jnp.where(y >= 0, y, slope * y)


# ----------------------------- demo / test -----------------------------

if __name__ == "__main__":
    key = jax.random.PRNGKey(0)
    N, H, W = 2, 16, 16
    cases = [
        dict(cin=32, cout=64, k=3, s=1, separable=False),
        dict(cin=32, cout=64, k=3, s=2, separable=False),
        dict(cin=64, cout=128, k=1, s=1, separable=False),   # 1x1 "std" block
        dict(cin=64, cout=64, k=3, s=1, separable=True),
        dict(cin=64, cout=64, k=3, s=2, separable=True),
    ]
    for cfg in cases:
        key, pkey, xkey = jax.random.split(key, 3)
        params = make_conv_block_params(pkey, cfg["cin"], cfg["cout"],
                                        cfg["k"], cfg["s"], cfg["separable"])
        x = jax.random.normal(xkey, (N, cfg["cin"], H, W), jnp.float32)

        fwd = jax.jit(functools.partial(conv_block_forward,
                                        kernel_size=cfg["k"], stride=cfg["s"],
                                        separable=cfg["separable"]))
        out = jax.block_until_ready(fwd(params, x))

        ho, wo = _out_hw(H, cfg["k"], cfg["s"]), _out_hw(W, cfg["k"], cfg["s"])
        assert out.shape == (N, cfg["cout"], ho, wo), (out.shape, cfg)
        assert bool(jnp.all(jnp.isfinite(out))), cfg

        ref = reference_conv_block(params, x, kernel_size=cfg["k"],
                                   stride=cfg["s"],
                                   separable=cfg["separable"])
        err = float(jnp.max(jnp.abs(out.astype(jnp.float32) - ref)))
        tol = 3e-2 * float(jnp.max(jnp.abs(ref))) + 1e-3   # bf16-MXU/bf16-out tol
        assert err <= tol, (cfg, err, tol)

    print("KERNEL_OK")
</pallas_src>

<mosaic_0001>
module attributes {stable_mosaic.version = 11 : i64} {
  func.func @_std_block_kernel(%arg0: i32, %arg1: i32, %arg2: memref<1x18x18x32xbf16, #tpu.memory_space<vmem>>, %arg3: memref<9x32x64xbf16, #tpu.memory_space<vmem>>, %arg4: memref<1x64xf32, #tpu.memory_space<vmem>>, %arg5: memref<1x16x16x64xbf16, #tpu.memory_space<vmem>>) attributes {dimension_semantics = [#tpu.dimension_semantics<parallel>, #tpu.dimension_semantics<parallel>], iteration_bounds = array<i64: 2, 1>, scalar_prefetch = 0 : i64, scratch_operands = 0 : i64, tpu.core_type = #tpu.core_type<tc>, window_params = [{transform_indices = @transform_0, window_bounds = array<i64: 1, 18, 18, 32>}, {pipeline_mode = #tpu.pipeline_mode<synchronous>, transform_indices = @transform_1, window_bounds = array<i64: 9, 32, 64>}, {pipeline_mode = #tpu.pipeline_mode<synchronous>, transform_indices = @transform_2, window_bounds = array<i64: 1, 64>}, {transform_indices = @transform_3, window_bounds = array<i64: 1, 16, 16, 64>}]} {
    %c16_i32 = arith.constant 16 : i32
    %0 = arith.muli %arg1, %c16_i32 : i32
    %cst = arith.constant 0.000000e+00 : f32
    %1 = vector.broadcast %cst : f32 to vector<256x64xf32>
    %c0_i32 = arith.constant 0 : i32
    %2 = arith.addi %0, %c0_i32 : i32
    %c0 = arith.constant 0 : index
    %3 = arith.index_cast %2 : i32 to index
    %c0_0 = arith.constant 0 : index
    %c0_1 = arith.constant 0 : index
    %4 = vector.load %arg2[%c0, %3, %c0_0, %c0_1] : memref<1x18x18x32xbf16, #tpu.memory_space<vmem>>, vector<1x16x16x32xbf16>
    %5 = vector.shape_cast %4 : vector<1x16x16x32xbf16> to vector<16x16x32xbf16>
    %6 = vector.shape_cast %5 : vector<16x16x32xbf16> to vector<256x32xbf16>
    %c0_2 = arith.constant 0 : index
    %c0_3 = arith.constant 0 : index
    %c0_4 = arith.constant 0 : index
    %7 = vector.load %arg3[%c0_2, %c0_3, %c0_4] : memref<9x32x64xbf16, #tpu.memory_space<vmem>>, vector<1x32x64xbf16>
    %8 = vector.shape_cast %7 : vector<1x32x64xbf16> to vector<32x64xbf16>
    %cst_5 = arith.constant dense<0.000000e+00> : vector<256x64xf32>
    %9 = tpu.matmul %6, %8, %cst_5 {dimension_numbers = #tpu.dot_dimension_numbers<[1], [0], [0], [1], [0, 0, 1, 1], [], []>} : vector<256x32xbf16>, vector<32x64xbf16>, vector<256x64xf32> -> vector<256x64xf32>
    %10 = arith.addf %1, %9 : vector<256x64xf32>
    %c0_i32_6 = arith.constant 0 : i32
    %11 = arith.addi %0, %c0_i32_6 : i32
    %c0_7 = arith.constant 0 : index
    %12 = arith.index_cast %11 : i32 to index
    %c1 = arith.constant 1 : index
    %c0_8 = arith.constant 0 : index
    %13 = vector.load %arg2[%c0_7, %12, %c1, %c0_8] : memref<1x18x18x32xbf16, #tpu.memory_space<vmem>>, vector<1x16x16x32xbf16>
    %14 = vector.shape_cast %13 : vector<1x16x16x32xbf16> to vector<16x16x32xbf16>
    %15 = vector.shape_cast %14 : vector<16x16x32xbf16> to vector<256x32xbf16>
    %c1_9 = arith.constant 1 : index
    %c0_10 = arith.constant 0 : index
    %c0_11 = arith.constant 0 : index
    %16 = vector.load %arg3[%c1_9, %c0_10, %c0_11] : memref<9x32x64xbf16, #tpu.memory_space<vmem>>, vector<1x32x64xbf16>
    %17 = vector.shape_cast %16 : vector<1x32x64xbf16> to vector<32x64xbf16>
    %cst_12 = arith.constant dense<0.000000e+00> : vector<256x64xf32>
    %18 = tpu.matmul %15, %17, %cst_12 {dimension_numbers = #tpu.dot_dimension_numbers<[1], [0], [0], [1], [0, 0, 1, 1], [], []>} : vector<256x32xbf16>, vector<32x64xbf16>, vector<256x64xf32> -> vector<256x64xf32>
    %19 = arith.addf %10, %18 : vector<256x64xf32>
    %c0_i32_13 = arith.constant 0 : i32
    %20 = arith.addi %0, %c0_i32_13 : i32
    %c0_14 = arith.constant 0 : index
    %21 = arith.index_cast %20 : i32 to index
    %c2 = arith.constant 2 : index
    %c0_15 = arith.constant 0 : index
    %22 = vector.load %arg2[%c0_14, %21, %c2, %c0_15] : memref<1x18x18x32xbf16, #tpu.memory_space<vmem>>, vector<1x16x16x32xbf16>
    %23 = vector.shape_cast %22 : vector<1x16x16x32xbf16> to vector<16x16x32xbf16>
    %24 = vector.shape_cast %23 : vector<16x16x32xbf16> to vector<256x32xbf16>
    %c2_16 = arith.constant 2 : index
    %c0_17 = arith.constant 0 : index
    %c0_18 = arith.constant 0 : index
    %25 = vector.load %arg3[%c2_16, %c0_17, %c0_18] : memref<9x32x64xbf16, #tpu.memory_space<vmem>>, vector<1x32x64xbf16>
    %26 = vector.shape_cast %25 : vector<1x32x64xbf16> to vector<32x64xbf16>
    %cst_19 = arith.constant dense<0.000000e+00> : vector<256x64xf32>
    %27 = tpu.matmul %24, %26, %cst_19 {dimension_numbers = #tpu.dot_dimension_numbers<[1], [0], [0], [1], [0, 0, 1, 1], [], []>} : vector<256x32xbf16>, vector<32x64xbf16>, vector<256x64xf32> -> vector<256x64xf32>
    %28 = arith.addf %19, %27 : vector<256x64xf32>
    %c1_i32 = arith.constant 1 : i32
    %29 = arith.addi %0, %c1_i32 : i32
    %c0_20 = arith.constant 0 : index
    %30 = arith.index_cast %29 : i32 to index
    %c0_21 = arith.constant 0 : index
    %c0_22 = arith.constant 0 : index
    %31 = vector.load %arg2[%c0_20, %30, %c0_21, %c0_22] : memref<1x18x18x32xbf16, #tpu.memory_space<vmem>>, vector<1x16x16x32xbf16>
    %32 = vector.shape_cast %31 : vector<1x16x16x32xbf16> to vector<16x16x32xbf16>
    %33 = vector.shape_cast %32 : vector<16x16x32xbf16> to vector<256x32xbf16>
    %c3 = arith.constant 3 : index
    %c0_23 = arith.constant 0 : index
    %c0_24 = arith.constant 0 : index
    %34 = vector.load %arg3[%c3, %c0_23, %c0_24] : memref<9x32x64xbf16, #tpu.memory_space<vmem>>, vector<1x32x64xbf16>
    %35 = vector.shape_cast %34 : vector<1x32x64xbf16> to vector<32x64xbf16>
    %cst_25 = arith.constant dense<0.000000e+00> : vector<256x64xf32>
    %36 = tpu.matmul %33, %35, %cst_25 {dimension_numbers = #tpu.dot_dimension_numbers<[1], [0], [0], [1], [0, 0, 1, 1], [], []>} : vector<256x32xbf16>, vector<32x64xbf16>, vector<256x64xf32> -> vector<256x64xf32>
    %37 = arith.addf %28, %36 : vector<256x64xf32>
    %c1_i32_26 = arith.constant 1 : i32
    %38 = arith.addi %0, %c1_i32_26 : i32
    %c0_27 = arith.constant 0 : index
    %39 = arith.index_cast %38 : i32 to index
    %c1_28 = arith.constant 1 : index
    %c0_29 = arith.constant 0 : index
    %40 = vector.load %arg2[%c0_27, %39, %c1_28, %c0_29] : memref<1x18x18x32xbf16, #tpu.memory_space<vmem>>, vector<1x16x16x32xbf16>
    %41 = vector.shape_cast %40 : vector<1x16x16x32xbf16> to vector<16x16x32xbf16>
    %42 = vector.shape_cast %41 : vector<16x16x32xbf16> to vector<256x32xbf16>
    %c4 = arith.constant 4 : index
    %c0_30 = arith.constant 0 : index
    %c0_31 = arith.constant 0 : index
    %43 = vector.load %arg3[%c4, %c0_30, %c0_31] : memref<9x32x64xbf16, #tpu.memory_space<vmem>>, vector<1x32x64xbf16>
    %44 = vector.shape_cast %43 : vector<1x32x64xbf16> to vector<32x64xbf16>
    %cst_32 = arith.constant dense<0.000000e+00> : vector<256x64xf32>
    %45 = tpu.matmul %42, %44, %cst_32 {dimension_numbers = #tpu.dot_dimension_numbers<[1], [0], [0], [1], [0, 0, 1, 1], [], []>} : vector<256x32xbf16>, vector<32x64xbf16>, vector<256x64xf32> -> vector<256x64xf32>
    %46 = arith.addf %37, %45 : vector<256x64xf32>
    %c1_i32_33 = arith.constant 1 : i32
    %47 = arith.addi %0, %c1_i32_33 : i32
    %c0_34 = arith.constant 0 : index
    %48 = arith.index_cast %47 : i32 to index
    %c2_35 = arith.constant 2 : index
    %c0_36 = arith.constant 0 : index
    %49 = vector.load %arg2[%c0_34, %48, %c2_35, %c0_36] : memref<1x18x18x32xbf16, #tpu.memory_space<vmem>>, vector<1x16x16x32xbf16>
    %50 = vector.shape_cast %49 : vector<1x16x16x32xbf16> to vector<16x16x32xbf16>
    %51 = vector.shape_cast %50 : vector<16x16x32xbf16> to vector<256x32xbf16>
    %c5 = arith.constant 5 : index
    %c0_37 = arith.constant 0 : index
    %c0_38 = arith.constant 0 : index
    %52 = vector.load %arg3[%c5, %c0_37, %c0_38] : memref<9x32x64xbf16, #tpu.memory_space<vmem>>, vector<1x32x64xbf16>
    %53 = vector.shape_cast %52 : vector<1x32x64xbf16> to vector<32x64xbf16>
    %cst_39 = arith.constant dense<0.000000e+00> : vector<256x64xf32>
    %54 = tpu.matmul %51, %53, %cst_39 {dimension_numbers = #tpu.dot_dimension_numbers<[1], [0], [0], [1], [0, 0, 1, 1], [], []>} : vector<256x32xbf16>, vector<32x64xbf16>, vector<256x64xf32> -> vector<256x64xf32>
    %55 = arith.addf %46, %54 : vector<256x64xf32>
    %c2_i32 = arith.constant 2 : i32
    %56 = arith.addi %0, %c2_i32 : i32
    %c0_40 = arith.constant 0 : index
    %57 = arith.index_cast %56 : i32 to index
    %c0_41 = arith.constant 0 : index
    %c0_42 = arith.constant 0 : index
    %58 = vector.load %arg2[%c0_40, %57, %c0_41, %c0_42] : memref<1x18x18x32xbf16, #tpu.memory_space<vmem>>, vector<1x16x16x32xbf16>
    %59 = vector.shape_cast %58 : vector<1x16x16x32xbf16> to vector<16x16x32xbf16>
    %60 = vector.shape_cast %59 : vector<16x16x32xbf16> to vector<256x32xbf16>
    %c6 = arith.constant 6 : index
    %c0_43 = arith.constant 0 : index
    %c0_44 = arith.constant 0 : index
    %61 = vector.load %arg3[%c6, %c0_43, %c0_44] : memref<9x32x64xbf16, #tpu.memory_space<vmem>>, vector<1x32x64xbf16>
    %62 = vector.shape_cast %61 : vector<1x32x64xbf16> to vector<32x64xbf16>
    %cst_45 = arith.constant dense<0.000000e+00> : vector<256x64xf32>
    %63 = tpu.matmul %60, %62, %cst_45 {dimension_numbers = #tpu.dot_dimension_numbers<[1], [0], [0], [1], [0, 0, 1, 1], [], []>} : vector<256x32xbf16>, vector<32x64xbf16>, vector<256x64xf32> -> vector<256x64xf32>
    %64 = arith.addf %55, %63 : vector<256x64xf32>
    %c2_i32_46 = arith.constant 2 : i32
    %65 = arith.addi %0, %c2_i32_46 : i32
    %c0_47 = arith.constant 0 : index
    %66 = arith.index_cast %65 : i32 to index
    %c1_48 = arith.constant 1 : index
    %c0_49 = arith.constant 0 : index
    %67 = vector.load %arg2[%c0_47, %66, %c1_48, %c0_49] : memref<1x18x18x32xbf16, #tpu.memory_space<vmem>>, vector<1x16x16x32xbf16>
    %68 = vector.shape_cast %67 : vector<1x16x16x32xbf16> to vector<16x16x32xbf16>
    %69 = vector.shape_cast %68 : vector<16x16x32xbf16> to vector<256x32xbf16>
    %c7 = arith.constant 7 : index
    %c0_50 = arith.constant 0 : index
    %c0_51 = arith.constant 0 : index
    %70 = vector.load %arg3[%c7, %c0_50, %c0_51] : memref<9x32x64xbf16, #tpu.memory_space<vmem>>, vector<1x32x64xbf16>
    %71 = vector.shape_cast %70 : vector<1x32x64xbf16> to vector<32x64xbf16>
    %cst_52 = arith.constant dense<0.000000e+00> : vector<256x64xf32>
    %72 = tpu.matmul %69, %71, %cst_52 {dimension_numbers = #tpu.dot_dimension_numbers<[1], [0], [0], [1], [0, 0, 1, 1], [], []>} : vector<256x32xbf16>, vector<32x64xbf16>, vector<256x64xf32> -> vector<256x64xf32>
    %73 = arith.addf %64, %72 : vector<256x64xf32>
    %c2_i32_53 = arith.constant 2 : i32
    %74 = arith.addi %0, %c2_i32_53 : i32
    %c0_54 = arith.constant 0 : index
    %75 = arith.index_cast %74 : i32 to index
    %c2_55 = arith.constant 2 : index
    %c0_56 = arith.constant 0 : index
    %76 = vector.load %arg2[%c0_54, %75, %c2_55, %c0_56] : memref<1x18x18x32xbf16, #tpu.memory_space<vmem>>, vector<1x16x16x32xbf16>
    %77 = vector.shape_cast %76 : vector<1x16x16x32xbf16> to vector<16x16x32xbf16>
    %78 = vector.shape_cast %77 : vector<16x16x32xbf16> to vector<256x32xbf16>
    %c8 = arith.constant 8 : index
    %c0_57 = arith.constant 0 : index
    %c0_58 = arith.constant 0 : index
    %79 = vector.load %arg3[%c8, %c0_57, %c0_58] : memref<9x32x64xbf16, #tpu.memory_space<vmem>>, vector<1x32x64xbf16>
    %80 = vector.shape_cast %79 : vector<1x32x64xbf16> to vector<32x64xbf16>
    %cst_59 = arith.constant dense<0.000000e+00> : vector<256x64xf32>
    %81 = tpu.matmul %78, %80, %cst_59 {dimension_numbers = #tpu.dot_dimension_numbers<[1], [0], [0], [1], [0, 0, 1, 1], [], []>} : vector<256x32xbf16>, vector<32x64xbf16>, vector<256x64xf32> -> vector<256x64xf32>
    %82 = arith.addf %73, %81 : vector<256x64xf32>
    %c0_60 = arith.constant 0 : index
    %c0_61 = arith.constant 0 : index
    %83 = vector.load %arg4[%c0_60, %c0_61] : memref<1x64xf32, #tpu.memory_space<vmem>>, vector<1x64xf32>
    %84 = vector.broadcast %83 : vector<1x64xf32> to vector<256x64xf32>
    %85 = arith.addf %82, %84 : vector<256x64xf32>
    %cst_62 = arith.constant 0.000000e+00 : f32
    %86 = vector.broadcast %cst_62 : f32 to vector<256x64xf32>
    %87 = arith.cmpf oge, %85, %86 : vector<256x64xf32>
    %cst_63 = arith.constant 2.000000e-01 : f32
    %88 = vector.broadcast %cst_63 : f32 to vector<256x64xf32>
    %89 = arith.mulf %88, %85 : vector<256x64xf32>
    %90 = arith.select %87, %85, %89 : vector<256x64xi1>, vector<256x64xf32>
    %91 = vector.shape_cast %90 : vector<256x64xf32> to vector<1x16x16x64xf32>
    %92 = arith.truncf %91 : vector<1x16x16x64xf32> to vector<1x16x16x64xbf16>
    %c0_64 = arith.constant 0 : index
    %c0_65 = arith.constant 0 : index
    %c0_66 = arith.constant 0 : index
    %c0_67 = arith.constant 0 : index
    %93 = vector.load %arg5[%c0_64, %c0_65, %c0_66, %c0_67] : memref<1x16x16x64xbf16, #tpu.memory_space<vmem>>, vector<1x16x16x64xbf16>
    tpu.vector_store %arg5[%c0_64, %c0_65, %c0_66, %c0_67], %92 {strides = array<i32>} : memref<1x16x16x64xbf16, #tpu.memory_space<vmem>>, vector<1x16x16x64xbf16>,
    return
  }
  func.func @transform_0(%arg0: i32, %arg1: i32) -> (i32, i32, i32, i32) {
    %c0_i32 = arith.constant 0 : i32
    %c0_i32_0 = arith.constant 0 : i32
    %c0_i32_1 = arith.constant 0 : i32
    %c0_i32_2 = arith.constant 0 : i32
    return %arg0, %c0_i32, %c0_i32_0, %c0_i32_1 : i32, i32, i32, i32
  }
  func.func @transform_1(%arg0: i32, %arg1: i32) -> (i32, i32, i32) {
    %c0_i32 = arith.constant 0 : i32
    %c0_i32_0 = arith.constant 0 : i32
    %c0_i32_1 = arith.constant 0 : i32
    %c0_i32_2 = arith.constant 0 : i32
    return %c0_i32, %c0_i32_0, %c0_i32_1 : i32, i32, i32
  }
  func.func @transform_2(%arg0: i32, %arg1: i32) -> (i32, i32) {
    %c0_i32 = arith.constant 0 : i32
    %c0_i32_0 = arith.constant 0 : i32
    %c0_i32_1 = arith.constant 0 : i32
    return %c0_i32, %c0_i32_0 : i32, i32
  }
  func.func @transform_3(%arg0: i32, %arg1: i32) -> (i32, i32, i32, i32) {
    %c0_i32 = arith.constant 0 : i32
    %c0_i32_0 = arith.constant 0 : i32
    %c0_i32_1 = arith.constant 0 : i32
    return %arg0, %arg1, %c0_i32, %c0_i32_0 : i32, i32, i32, i32
  }
}

</mosaic_0001>

<bundles_post_ra>
// kernel: conv_block_forward.1
= control target key start
LH: loop header
LB: loop body
LE: loop exit
PB: predicated region body
PF: predicated region fallthrough
CT: control target
= control target key end

     0   :  { %8 = vsyncpa [#allocation3], 0  ;;  %s7031_s0 = inlined_call_operand.vmem [shape: bf16[2,18,18,32], index: 0, kind: input, shape index: {}]   ;;  %s7032_s1 = inlined_call_operand.vmem [shape: bf16[9,32,64], index: 1, kind: input, shape index: {}]   ;;  %s7033_s2 = inlined_call_operand.vmem [shape: f32[1,64], index: 2, kind: input, shape index: {}]   ;;  %s7034_s3 = inlined_call_operand.hbm [shape: bf16[2,16,16,64], index: 3, kind: output, shape index: {}]  }
   0x1   :  { %10 = vsyncpa [#allocation3 + $0x1], 0  ;;  %s5489_s12 = smov 0   ;;  %s5491_s13 = smov 0  }
   0x2   :  { %s5493_s14 = smov 0   ;;  %s5495_s15 = smov 0  }
   0x3   :  { %s5497_s16 = smov 0   ;;  %s5499_s17 = smov 0  }
   0x4 LB: > { %s4512_s18 = sadd.s32 4294967295, %s5465_s17   ;;  %s4513_s19 = sadd.s32 4294967294, %s5465_s17   ;;  %s5465_s17 = sphi %s5499_s17, %s16_s17   ;;  %s5461_s16 = sphi %s5497_s16, %s7051_s16   ;;  %s5457_s15 = sphi %s5495_s15, %s7050_s15   ;;  %s5453_s14 = sphi %s5493_s14, %s7049_s14   ;;  %s5449_s13 = sphi %s5491_s13, %s7048_s13   ;;  %s5445_s12 = sphi %s5489_s12, %s7047_s12  }
   0x5   : > { %s28_s20 = sadd.s32 1, %s5461_s16  ;;  %s105_s21 = sadd.s32 1, %s5453_s14 }
   0x6   : > { %p30_p0 = scmp.ge.s32.totalorder %s28_s20, 2  ;;  %p115_p1 = scmp.ne.s32.totalorder %s5453_s14, %s5449_s13 }
   0x7   : > { %p116_p2 = scmp.eq.s32.totalorder %s4512_s18, 1  ;;  %p121_p3 = scmp.ne.s32.totalorder %s5449_s13, %s5445_s12 }
   0x8   : > { %s7053_s20 = smov (%p30_p0, %s28_s20), 0  ;;  %p122_p5 = scmp.eq.s32.totalorder %s4513_s19, 1 }
   0x9   : > { %p5529_p4 = por %p116_p2, %p115_p1  ;;  %s100_s23 = ssub.s32 %s5461_s16, %s7053_s20 }
   0xa   : > { %p4516_p6 = scmp.ge.s32.totalorder %s5465_s17, 1  ;;  %p103_p7 = scmp.eq.s32.totalorder %s100_s23, 0 }
   0xb   : > { %p5536_p8 = por %p122_p5, %p121_p3  ;;  %p154_p9 = scmp.lt.s32.totalorder %s5465_s17, 3 }
   0xc   : > { %s5542_s25 = scalar_select %p103_p7, %s5453_s14, %s105_s21  }
   0xd   : > { %p155_p10 = pnand %p4516_p6, %p154_p9 }
   0xf   : > { %158 = sbr.rel (%p155_p10) target bundleno = 774 (0x306), region = 32 }
  0x14   : > { %v5223_v0 = vld [vmem:[%s7032_s1 + $0x18] sm:$0xff]  ;;  %p178_p11 = scmp.lt.s32.totalorder %s5457_s15, 1  ;;  %v5222_v1 = vld [vmem:[%s7032_s1 + $0x10] sm:$0xff]  ;;  %v5225_v2 = vld [vmem:[%s7032_s1 + $0x28] sm:$0xff]  ;;  %vm241_vm0 = vsmask.f32 3328 }
  0x15   : > { %5271 = vmatpush.bf16.msra.mxu1 %v5223_v0  ;;  %5272 = vmatpush.bf16.msra.mxu2 %v5223_v0  ;;  %v5243_v3 = vld [vmem:[%s7032_s1 + $0x38] sm:$0xff]  ;;  %v5221_v4 = vld [vmem:[%s7032_s1 + $0x8] sm:$0xff]  ;;  %vm242_vm1 = vsmask.f32 7440  ;;  %vm693_vm3 = vcmask 261120   ;;  %vm1108_vm4 = vcmask 1042432  }
  0x16   : > { %s179_s30 = scalar_select %p178_p11, %s5457_s15, 1  ;;  %5273 = vmatpush.bf16.msra.mxu3 %v5223_v0  ;;  %748 = vmatpush.bf16.msra.mxu0 %v5223_v0  ;;  %v5245_v5 = vld [vmem:[%s7032_s1 + $0x48] sm:$0xff]  ;;  %vm5579_vm2 = vmor %vm241_vm0, %vm242_vm1  ;;  %vm1109_vm5 = vcmask 1046532   ;;  %vm4377_vm8 = vcmask 519168  }
  0x17   : > { %vm5774_vm6 = vmor %vm1108_vm4, %vm1109_vm5  ;;  %s175_s9 = sand.u32 1, %s5449_s13   ;;  %s5270_s19 = sshll.u32 %s5457_s15, 7 }
  0x18   : > { %s5277_s4 = smul.u32 216, %s179_s30  ;;  %s4517_s10 = sshll.u32 %s175_s9, 7 }
  0x19   : > { %5274 = vmatpush.bf16.msra.mxu1 %v5222_v1  ;;  %5275 = vmatpush.bf16.msra.mxu2 %v5222_v1  ;;  %s6670_s11 = scalar_lea.vmem [#allocation2], %s4517_s10  ;;  %s4425_s27 = scalar_lea.hbm %s7034_s3, %s5270_s19 }
  0x1a   : > { %s5567_s23 = scalar_lea.vmem %s7031_s0, %s5277_s4  ;;  %5276 = vmatpush.bf16.msra.mxu3 %v5222_v1  ;;  %749 = vmatpush.bf16.msra.mxu0 %v5222_v1  ;;  %s4426_s28 = sshll.u32 %s6670_s11, 4  ;;  %s4427_s28 = int_to_ptr.vmem [resolvable:$true] %s4426_s28 }
  0x1b   : > { %v197_v6 = vld [vmem:[%s5567_s23 + $0x30] sm:$0xf]  ;;  %v198_v7 = vld [vmem:[%s5567_s23 + $0x34] sm:$0xf]  ;;  %v229_v8 = vld [vmem:[%s5567_s23 + $0x38] sm:$0x1] }
  0x1c   : > { %v341_v9 = vshrl.u32 %v197_v6, 16  ;;  %v344_v10 = vshll.u32 %v197_v6, 16  ;;  %v350_v11 = vshll.u32 %v198_v7, 16  ;;  %v354_v12 = vshrl.u32 %v198_v7, 16  ;;  %v205_v13 = vld [vmem:[%s5567_s23 + $0x60] sm:$0xf] }
  0x1d   : > { %1342 = vmatpush.bf16.msrb.mxu2 %v5225_v2  ;;  %v360_v14 = vshll.u32 %v229_v8, 16  ;;  %v206_v15 = vld [vmem:[%s5567_s23 + $0x64] sm:$0xf]  ;;  %v233_v16 = vld [vmem:[%s5567_s23 + $0x68] sm:$0x1]  ;;  %v437_v17 = vshrl.u32 %v205_v13, 16  ;;  %977 = vmatpush.bf16.msrb.mxu1 %v5221_v4 }
  0x1e   : > { %1644 = vmatpush.bf16.msrb.mxu3 %v5243_v3  ;;  %2310 = vmatpush.bf16.msrb.mxu0 %v5245_v5  ;;  %v343_v18 = vrot.slane %v341_v9, 4  ;;  %v346_v19 = vrot.slane %v344_v10, 5  ;;  %v352_v20 = vrot.slane %v350_v11, 5  ;;  %v356_v21 = vrot.slane %v354_v12, 4  ;;  %v213_v22 = vld [vmem:[%s5567_s23 + $0x90] sm:$0xf] }
  0x1f   : > { %v362_v23 = vrot.slane %v360_v14, 5  ;;  %v439_v24 = vrot.slane %v437_v17, 4  ;;  %v440_v25 = vshll.u32 %v205_v13, 16  ;;  %v446_v26 = vshll.u32 %v206_v15, 16  ;;  %v214_v31 = vld [vmem:[%s5567_s23 + $0x94] sm:$0xf] }
  0x20   : > { %v347_v27 = vor.u32 %v346_v19, %v343_v18  ;;  %v357_v28 = vor.u32 %v356_v21, %v352_v20  ;;  %v450_v29 = vshrl.u32 %v206_v15, 16  ;;  %v456_v30 = vshll.u32 %v233_v16, 16  ;;  %v237_v41 = vld [vmem:[%s5567_s23 + $0x98] sm:$0x1]  ;;  %v189_v57 = vld [vmem:[%s5567_s23] sm:$0xf] }
  0x21   : > { %v442_v33 = vrot.slane %v440_v25, 5  ;;  %v448_v34 = vrot.slane %v446_v26, 5  ;;  %v533_v35 = vshrl.u32 %v213_v22, 16  ;;  %v536_v43 = vshll.u32 %v213_v22, 16  ;;  %v5592_v61 = vld [vmem:[%s5567_s23 + $0x4] sm:$0xf] }
  0x22   : > { %v348_v36 = vrot.slane %v347_v27, 4  ;;  %v358_v37 = vrot.slane %v357_v28, 4  ;;  %v452_v38 = vrot.slane %v450_v29, 4  ;;  %v458_v39 = vrot.slane %v456_v30, 5  ;;  %v5595_v62 = vld [vmem:[%s5567_s23 + $0x8] sm:$0x1] }
  0x23   : > { %v443_v40 = vor.u32 %v442_v33, %v439_v24  ;;  %v535_v42 = vrot.slane %v533_v35, 4  ;;  %v542_v44 = vshll.u32 %v214_v31, 16  ;;  %v546_v48 = vshrl.u32 %v214_v31, 16  ;;  %v199_v15 = vld [vmem:[%s5567_s23 + $0x3c] sm:$0xf]  ;;  %s4428_s29 = sshll.u32 %s4425_s27, 4  ;;  %s4429_s29 = int_to_ptr.hbm [resolvable:$true] %s4428_s29 }
  0x24   : > { %v353_v45 = vsel %vm5579_vm2, %v348_v36, %v352_v20  ;;  %v363_v46 = vsel %vm5579_vm2, %v358_v37, %v362_v23  ;;  %v453_v47 = vor.u32 %v452_v38, %v448_v34  ;;  %v538_v52 = vrot.slane %v536_v43, 5  ;;  %v5607_v16 = vld [vmem:[%s5567_s23 + $0x40] sm:$0xf]  ;;  %v5612_v21 = vld [vmem:[%s5567_s23 + $0x44] sm:$0x1]  ;;  %s4411_s15 = scalar_lea.sflag [#allocation3], %s175_s9 }
  0x25   : > { %v641_v49 = vunpack.c.l.b16 %v353_v45  ;;  %v642_v50 = vunpack.c.l.b16 %v363_v46  ;;  %v444_v51 = vrot.slane %v443_v40, 4  ;;  %v544_v54 = vrot.slane %v542_v44, 5  ;;  %v207_v29 = vld [vmem:[%s5567_s23 + $0x6c] sm:$0xf]  ;;  %v234_v43 = vld [vmem:[%s5567_s23 + $0x74] sm:$0x1] }
  0x26   : > { %v454_v53 = vrot.slane %v453_v47, 4  ;;  %v548_v55 = vrot.slane %v546_v48, 4  ;;  %v552_v56 = vshll.u32 %v237_v41, 16  ;;  %v539_v60 = vor.u32 %v538_v52, %v535_v42  ;;  %s5401_s30 = sshra.s32 %s4429_s29, 4  ;;  %s5407_s7 = scalar_lea.hbm %s7034_s3, 256  ;;  %s5402_s30 = int_to_ptr.hbm [resolvable:$true] %s5401_s30 }
  0x27   : > { %v669_v58 = vpack.c.b16 %v642_v50, %v641_v49  ;;  %v449_v59 = vsel %vm5579_vm2, %v444_v51, %v448_v34  ;;  %v245_v5 = vshrl.u32 %v189_v57, 16  ;;  %v248_v6 = vshll.u32 %v189_v57, 16  ;;  %v215_v57 = vld [vmem:[%s5567_s23 + $0x9c] sm:$0xf]  ;;  %s5403_s4 = scalar_lea.hbm %s5402_s30, 128  ;;  %p5408_p1 = scmp.lt.s32.totalorder %s5402_s30, %s7034_s3 }
  0x28   : > { %v459_v63 = vsel %vm5579_vm2, %v454_v53, %v458_v39  ;;  %v649_v0 = vunpack.c.l.b16 %v449_v59  ;;  %v549_v1 = vor.u32 %v548_v55, %v544_v54  ;;  %v554_v2 = vrot.slane %v552_v56, 5  ;;  %v208_v39 = vld [vmem:[%s5567_s23 + $0x70] sm:$0xf]  ;;  %p5404_p12 = scmp.ne.s32.totalorder %s5402_s30, %s5403_s4  ;;  %p5409_p2 = scmp.lt.s32.totalorder %s5407_s7, %s5403_s4 }
  0x29   : > { %4535 = vmatmul.msk.bf16.vlgmr.msra.gmra.mxu1 %vm693_vm3, %v669_v58  ;;  %v650_v3 = vunpack.c.l.b16 %v459_v63  ;;  %v540_v4 = vrot.slane %v539_v60, 4  ;;  %v254_v8 = vshll.u32 %v5592_v61, 16  ;;  %v258_v9 = vshrl.u32 %v5592_v61, 16  ;;  %v216_v63 = vld [vmem:[%s5567_s23 + $0xa0] sm:$0xf] }
  0x2a   : > { %v550_v7 = vrot.slane %v549_v1, 4  ;;  %v264_v10 = vshll.u32 %v5595_v62, 16  ;;  %v247_v13 = vrot.slane %v245_v5, 4  ;;  %v250_v14 = vrot.slane %v248_v6, 5  ;;  %p5405_p13 = pnand %p5404_p12, %p5529_p4  ;;  %p5410_p3 = por %p5409_p2, %p5408_p1 }
  0x2b   : > { %v673_v11 = vpack.c.b16 %v650_v3, %v649_v0  ;;  %v545_v12 = vsel %vm5579_vm2, %v540_v4, %v544_v54  ;;  %v256_v19 = vrot.slane %v254_v8, 5  ;;  %v260_v20 = vrot.slane %v258_v9, 4  ;;  %v238_v4 = vld [vmem:[%s5567_s23 + $0xa4] sm:$0x1] }
  0x2c   : > { %v555_v17 = vsel %vm5579_vm2, %v550_v7, %v554_v2  ;;  %v657_v18 = vunpack.c.l.b16 %v545_v12  ;;  %v251_v23 = vor.u32 %v250_v14, %v247_v13  ;;  %v266_v24 = vrot.slane %v264_v10, 5  ;;  %v191_v13 = vld [vmem:[%s5567_s23 + $0xc] sm:$0xf]  ;;  %p5406_p0 = pneg %p5405_p13 }
  0x2d   : > { %4539 = vmatmul.msk.bf16.vlgmr.msra.gmra.mxu2 %vm693_vm3, %v673_v11  ;;  %v658_v22 = vunpack.c.l.b16 %v555_v17  ;;  %v261_v25 = vor.u32 %v260_v20, %v256_v19  ;;  %v365_v26 = vshrl.u32 %v199_v15, 16  ;;  %v368_v27 = vshll.u32 %v199_v15, 16 }
  0x2e   : > { %v374_v28 = vshll.u32 %v5607_v16, 16  ;;  %v252_v31 = vrot.slane %v251_v23, 4  ;;  %v378_v33 = vshrl.u32 %v5607_v16, 16  ;;  %v384_v34 = vshll.u32 %v5612_v21, 16  ;;  %p5411_p5 = pnand %p5410_p3, %p5406_p0 }
  0x2f   : > { %v677_v30 = vpack.c.b16 %v658_v22, %v657_v18  ;;  %v262_v35 = vrot.slane %v261_v25, 4  ;;  %v367_v36 = vrot.slane %v365_v26, 4  ;;  %v370_v37 = vrot.slane %v368_v27, 5  ;;  %v5641_v25 = vld [vmem:[%s5567_s23 + $0x10] sm:$0xf] }
  0x30   : > { %v376_v38 = vrot.slane %v374_v28, 5  ;;  %v257_v40 = vsel %vm5579_vm2, %v252_v31, %v256_v19  ;;  %v380_v41 = vrot.slane %v378_v33, 4  ;;  %v386_v42 = vrot.slane %v384_v34, 5  ;;  %v5224_v19 = vld [vmem:[%s7032_s1 + $0x20] sm:$0xff] }
  0x31   : > { %4543 = vmatmul.msk.bf16.vlgmr.msra.gmra.mxu3 %vm693_vm3, %v677_v30  ;;  %v461_v44 = vshrl.u32 %v207_v29, 16  ;;  %v267_v45 = vsel %vm5579_vm2, %v262_v35, %v266_v24  ;;  %v633_v46 = vunpack.c.l.b16 %v257_v40  ;;  %v371_v47 = vor.u32 %v370_v37, %v367_v36  ;;  %1343 = vmatpush.bf16.msrb.mxu2 %v5224_v19  ;;  %v5652_v40 = vld [vmem:[%s5567_s23 + $0x4c] sm:$0xf] }
  0x32   : > { %v464_v48 = vshll.u32 %v207_v29, 16  ;;  %v634_v49 = vunpack.c.l.b16 %v267_v45  ;;  %v381_v50 = vor.u32 %v380_v41, %v376_v38  ;;  %v470_v52 = vshll.u32 %v208_v39, 16  ;;  %v5644_v29 = vld [vmem:[%s5567_s23 + $0x14] sm:$0x1] }
  0x33   : > { %v463_v51 = vrot.slane %v461_v44, 4  ;;  %v372_v53 = vrot.slane %v371_v47, 4  ;;  %v474_v55 = vshrl.u32 %v208_v39, 16  ;;  %v480_v56 = vshll.u32 %v234_v43, 16  ;;  %v201_v39 = vld [vmem:[%s5567_s23 + $0x48] sm:$0xf] }
  0x34   : > { %v466_v54 = vrot.slane %v464_v48, 5  ;;  %v665_v58 = vpack.c.b16 %v634_v49, %v633_v46  ;;  %v382_v59 = vrot.slane %v381_v50, 4  ;;  %v472_v60 = vrot.slane %v470_v52, 5  ;;  %v5242_v45 = vld [vmem:[%s7032_s1 + $0x30] sm:$0xff]  ;;  %v5220_v46 = vld [vmem:[%s7032_s1] sm:$0xff] }
  0x35   : > { %v377_v0 = vsel %vm5579_vm2, %v372_v53, %v376_v38  ;;  %v476_v2 = vrot.slane %v474_v55, 4  ;;  %v482_v3 = vrot.slane %v480_v56, 5  ;;  %v557_v7 = vshrl.u32 %v215_v57, 16  ;;  %v5668_v56 = vld [vmem:[%s5567_s23 + $0x50] sm:$0x1]  ;;  %1645 = vmatpush.bf16.msrb.mxu3 %v5242_v45  ;;  %978 = vmatpush.bf16.msrb.mxu1 %v5220_v46 }
  0x36   : > { %v467_v1 = vor.u32 %v466_v54, %v463_v51  ;;  %4531 = vmatmul.msk.bf16.vlgmr.msra.gmra.mxu0 %vm693_vm3, %v665_v58  ;;  %v387_v5 = vsel %vm5579_vm2, %v382_v59, %v386_v42  ;;  %v643_v6 = vunpack.c.l.b16 %v377_v0  ;;  %v560_v8 = vshll.u32 %v215_v57, 16  ;;  %v5244_v51 = vld [vmem:[%s7032_s1 + $0x40] sm:$0xff] }
  0x37   : > { %v644_v9 = vunpack.c.l.b16 %v387_v5  ;;  %v477_v11 = vor.u32 %v476_v2, %v472_v60  ;;  %v566_v12 = vshll.u32 %v216_v63, 16  ;;  %v559_v14 = vrot.slane %v557_v7, 4  ;;  %2311 = vmatpush.bf16.msrb.mxu0 %v5244_v51 }
  0x38   : > { %v468_v10 = vrot.slane %v467_v1, 4  ;;  %v562_v15 = vrot.slane %v560_v8, 5  ;;  %v570_v17 = vshrl.u32 %v216_v63, 16  ;;  %v576_v18 = vshll.u32 %v238_v4, 16  ;;  %v210_v8 = vld [vmem:[%s5567_s23 + $0x7c] sm:$0xf] }
  0x39   : > { %v670_v20 = vpack.c.b16 %v644_v9, %v643_v6  ;;  %v478_v23 = vrot.slane %v477_v11, 4  ;;  %v568_v24 = vrot.slane %v566_v12, 5  ;;  %v269_v33 = vshrl.u32 %v191_v13, 16 }
  0x3a   : > { %v473_v22 = vsel %vm5579_vm2, %v468_v10, %v472_v60  ;;  %v563_v27 = vor.u32 %v562_v15, %v559_v14  ;;  %v572_v28 = vrot.slane %v570_v17, 4  ;;  %v578_v31 = vrot.slane %v576_v18, 5  ;;  %v235_v17 = vld [vmem:[%s5567_s23 + $0x80] sm:$0x1] }
  0x3b   : > { %v651_v26 = vunpack.c.l.b16 %v473_v22  ;;  %4536 = vmatmul.msk.bf16.gmra.mxu1 %vm693_vm3, %v670_v20  ;;  %v483_v30 = vsel %vm5579_vm2, %v478_v23, %v482_v3  ;;  %v272_v34 = vshll.u32 %v191_v13, 16  ;;  %v278_v38 = vshll.u32 %v5641_v25, 16  ;;  %v209_v3 = vld [vmem:[%s5567_s23 + $0x78] sm:$0xf] }
  0x3c   : > { %v652_v35 = vunpack.c.l.b16 %v483_v30  ;;  %v564_v36 = vrot.slane %v563_v27, 4  ;;  %v573_v37 = vor.u32 %v572_v28, %v568_v24  ;;  %v271_v41 = vrot.slane %v269_v33, 4 }
  0x3d   : > { %v274_v42 = vrot.slane %v272_v34, 5  ;;  %v282_v43 = vshrl.u32 %v5641_v25, 16  ;;  %v288_v44 = vshll.u32 %v5644_v29, 16  ;;  %v280_v50 = vrot.slane %v278_v38, 5 }
  0x3e   : > { %v674_v47 = vpack.c.b16 %v652_v35, %v651_v26  ;;  %v569_v48 = vsel %vm5579_vm2, %v564_v36, %v568_v24  ;;  %v574_v49 = vrot.slane %v573_v37, 4  ;;  %v389_v58 = vshrl.u32 %v201_v39, 16  ;;  %v217_v35 = vld [vmem:[%s5567_s23 + $0xa8] sm:$0xf] }
  0x3f   : > { %v659_v52 = vunpack.c.l.b16 %v569_v48  ;;  %v275_v53 = vor.u32 %v274_v42, %v271_v41  ;;  %v284_v54 = vrot.slane %v282_v43, 4  ;;  %v290_v55 = vrot.slane %v288_v44, 5  ;;  %v239_v41 = vld [vmem:[%s5567_s23 + $0xb0] sm:$0x1] }
  0x40   : > { %4540 = vmatmul.msk.bf16.gmra.mxu2 %vm693_vm3, %v674_v47  ;;  %v579_v57 = vsel %vm5579_vm2, %v574_v49, %v578_v31  ;;  %v392_v59 = vshll.u32 %v201_v39, 16  ;;  %v398_v60 = vshll.u32 %v5652_v40, 16  ;;  %v402_v2 = vshrl.u32 %v5652_v40, 16  ;;  %v218_v39 = vld [vmem:[%s5567_s23 + $0xac] sm:$0xf] }
  0x41   : > { %v660_v63 = vunpack.c.l.b16 %v579_v57  ;;  %v276_v0 = vrot.slane %v275_v53, 4  ;;  %v285_v1 = vor.u32 %v284_v54, %v280_v50  ;;  %v391_v4 = vrot.slane %v389_v58, 4 }
  0x42   : > { %v394_v5 = vrot.slane %v392_v59, 5  ;;  %v400_v6 = vrot.slane %v398_v60, 5  ;;  %v408_v7 = vshll.u32 %v5668_v56, 16  ;;  %v404_v12 = vrot.slane %v402_v2, 4  ;;  %v193_v59 = vld [vmem:[%s5567_s23 + $0x18] sm:$0xf] }
  0x43   : > { %v678_v9 = vpack.c.b16 %v660_v63, %v659_v52  ;;  %v281_v10 = vsel %vm5579_vm2, %v276_v0, %v280_v50  ;;  %v286_v11 = vrot.slane %v285_v1, 4  ;;  %v485_v18 = vshrl.u32 %v209_v3, 16  ;;  %v5696_v1 = vld [vmem:[%s5567_s23 + $0x1c] sm:$0xf]  ;;  %v5699_v2 = vld [vmem:[%s5567_s23 + $0x20] sm:$0x1] }
  0x44   : > { %v635_v13 = vunpack.c.l.b16 %v281_v10  ;;  %v395_v14 = vor.u32 %v394_v5, %v391_v4  ;;  %v410_v15 = vrot.slane %v408_v7, 5  ;;  %v405_v20 = vor.u32 %v404_v12, %v400_v6 }
  0x45   : > { %4544 = vmatmul.msk.bf16.gmra.mxu3 %vm693_vm3, %v678_v9  ;;  %v291_v19 = vsel %vm5579_vm2, %v286_v11, %v290_v55  ;;  %v488_v22 = vshll.u32 %v209_v3, 16  ;;  %v494_v23 = vshll.u32 %v210_v8, 16  ;;  %v487_v27 = vrot.slane %v485_v18, 4 }
  0x46   : > { %v636_v24 = vunpack.c.l.b16 %v291_v19  ;;  %v396_v26 = vrot.slane %v395_v14, 4  ;;  %v498_v28 = vshrl.u32 %v210_v8, 16  ;;  %v406_v30 = vrot.slane %v405_v20, 4 }
  0x47   : > { %v490_v31 = vrot.slane %v488_v22, 5  ;;  %v496_v33 = vrot.slane %v494_v23, 5  ;;  %v504_v34 = vshll.u32 %v235_v17, 16  ;;  %v581_v48 = vshrl.u32 %v217_v35, 16  ;;  %v5709_v22 = vld [vmem:[%s5567_s23 + $0x58] sm:$0xf] }
  0x48   : > { %v666_v36 = vpack.c.b16 %v636_v24, %v635_v13  ;;  %v401_v37 = vsel %vm5579_vm2, %v396_v26, %v400_v6  ;;  %v500_v38 = vrot.slane %v498_v28, 4  ;;  %v411_v42 = vsel %vm5579_vm2, %v406_v30, %v410_v15  ;;  %v203_v15 = vld [vmem:[%s5567_s23 + $0x54] sm:$0xf]  ;;  %v5714_v28 = vld [vmem:[%s5567_s23 + $0x5c] sm:$0x1] }
  0x49   : > { %v645_v43 = vunpack.c.l.b16 %v401_v37  ;;  %v491_v44 = vor.u32 %v490_v31, %v487_v27  ;;  %v506_v45 = vrot.slane %v504_v34, 5  ;;  %v646_v46 = vunpack.c.l.b16 %v411_v42 }
  0x4a   : > { %4532 = vmatmul.msk.bf16.gmra.mxu0 %vm693_vm3, %v666_v36  ;;  %v501_v47 = vor.u32 %v500_v38, %v496_v33  ;;  %v584_v49 = vshll.u32 %v217_v35, 16  ;;  %v590_v51 = vshll.u32 %v218_v39, 16  ;;  %v594_v52 = vshrl.u32 %v218_v39, 16  ;;  %v211_v39 = vld [vmem:[%s5567_s23 + $0x84] sm:$0xf] }
  0x4b   : > { %v492_v50 = vrot.slane %v491_v44, 4  ;;  %v600_v53 = vshll.u32 %v239_v41, 16  ;;  %v671_v54 = vpack.c.b16 %v646_v46, %v645_v43  ;;  %v583_v57 = vrot.slane %v581_v48, 4 }
  0x4c   : > { %v502_v55 = vrot.slane %v501_v47, 4  ;;  %v586_v58 = vrot.slane %v584_v49, 5  ;;  %v592_v63 = vrot.slane %v590_v51, 5  ;;  %v596_v0 = vrot.slane %v594_v52, 4  ;;  %v212_v49 = vld [vmem:[%s5567_s23 + $0x88] sm:$0xf] }
  0x4d   : > { %v497_v60 = vsel %vm5579_vm2, %v492_v50, %v496_v33  ;;  %4537 = vmatmul.msk.bf16.gmra.mxu1 %vm693_vm3, %v671_v54  ;;  %v602_v6 = vrot.slane %v600_v53, 5  ;;  %v293_v9 = vshrl.u32 %v193_v59, 16  ;;  %v296_v10 = vshll.u32 %v193_v59, 16  ;;  %v236_v53 = vld [vmem:[%s5567_s23 + $0x8c] sm:$0x1] }
  0x4e   : > { %v507_v3 = vsel %vm5579_vm2, %v502_v55, %v506_v45  ;;  %v653_v4 = vunpack.c.l.b16 %v497_v60  ;;  %v587_v5 = vor.u32 %v586_v58, %v583_v57  ;;  %v597_v8 = vor.u32 %v596_v0, %v592_v63 }
  0x4f   : > { %v654_v7 = vunpack.c.l.b16 %v507_v3  ;;  %v302_v12 = vshll.u32 %v5696_v1, 16  ;;  %v306_v13 = vshrl.u32 %v5696_v1, 16  ;;  %v312_v14 = vshll.u32 %v5699_v2, 16 }
  0x50   : > { %v588_v11 = vrot.slane %v587_v5, 4  ;;  %v598_v18 = vrot.slane %v597_v8, 4  ;;  %v295_v19 = vrot.slane %v293_v9, 4  ;;  %v298_v20 = vrot.slane %v296_v10, 5  ;;  %v219_v8 = vld [vmem:[%s5567_s23 + $0xb4] sm:$0xf] }
  0x51   : > { %v675_v17 = vpack.c.b16 %v654_v7, %v653_v4  ;;  %v304_v24 = vrot.slane %v302_v12, 5  ;;  %v308_v26 = vrot.slane %v306_v13, 4  ;;  %v314_v27 = vrot.slane %v312_v14, 5  ;;  %v220_v12 = vld [vmem:[%s5567_s23 + $0xb8] sm:$0xf] }
  0x52   : > { %v593_v23 = vsel %vm5579_vm2, %v588_v11, %v592_v63  ;;  %v603_v30 = vsel %vm5579_vm2, %v598_v18, %v602_v6  ;;  %v299_v33 = vor.u32 %v298_v20, %v295_v19  ;;  %v413_v34 = vshrl.u32 %v203_v15, 16  ;;  %v240_v18 = vld [vmem:[%s5567_s23 + $0xbc] sm:$0x1]  ;;  %v5265_v19 = vld [vmem:[%s7032_s1 + $0x68] sm:$0xff] }
  0x53   : > { %4541 = vmatmul.msk.bf16.gmra.mxu2 %vm693_vm3, %v675_v17  ;;  %v661_v31 = vunpack.c.l.b16 %v593_v23  ;;  %v662_v35 = vunpack.c.l.b16 %v603_v30  ;;  %v309_v36 = vor.u32 %v308_v26, %v304_v24  ;;  %v416_v37 = vshll.u32 %v203_v15, 16 }
  0x54   : > { %v422_v38 = vshll.u32 %v5709_v22, 16  ;;  %v300_v41 = vrot.slane %v299_v33, 4  ;;  %v415_v42 = vrot.slane %v413_v34, 4  ;;  %v426_v43 = vshrl.u32 %v5709_v22, 16  ;;  %3022 = vmatpush.bf16.msra.mxu2 %v5265_v19 }
  0x55   : > { %v432_v44 = vshll.u32 %v5714_v28, 16  ;;  %v679_v45 = vpack.c.b16 %v662_v35, %v661_v31  ;;  %v310_v46 = vrot.slane %v309_v36, 4  ;;  %v418_v47 = vrot.slane %v416_v37, 5 }
  0x56   : > { %v424_v48 = vrot.slane %v422_v38, 5  ;;  %v305_v50 = vsel %vm5579_vm2, %v300_v41, %v304_v24  ;;  %v428_v51 = vrot.slane %v426_v43, 4  ;;  %v509_v54 = vshrl.u32 %v211_v39, 16  ;;  %v195_v38 = vld [vmem:[%s5567_s23 + $0x24] sm:$0xf] }
  0x57   : > { %v434_v52 = vrot.slane %v432_v44, 5  ;;  %4545 = vmatmul.msk.bf16.gmra.mxu3 %vm693_vm3, %v679_v45  ;;  %v315_v55 = vsel %vm5579_vm2, %v310_v46, %v314_v27  ;;  %v637_v57 = vunpack.c.l.b16 %v305_v50  ;;  %v419_v58 = vor.u32 %v418_v47, %v415_v42  ;;  %v5745_v44 = vld [vmem:[%s5567_s23 + $0x28] sm:$0xf]  ;;  %v5748_v45 = vld [vmem:[%s5567_s23 + $0x2c] sm:$0x1]  ;;  %v5267_v50 = vld [vmem:[%s7032_s1 + $0x78] sm:$0xff] }
  0x58   : > { %v512_v59 = vshll.u32 %v211_v39, 16  ;;  %v638_v60 = vunpack.c.l.b16 %v315_v55  ;;  %v429_v63 = vor.u32 %v428_v51, %v424_v48  ;;  %v511_v0 = vrot.slane %v509_v54, 4  ;;  %v5247_v51 = vld [vmem:[%s7032_s1 + $0x58] sm:$0xff]  ;;  %3688 = vmatpush.bf16.msra.mxu3 %v5267_v50 }
  0x59   : > { %v518_v3 = vshll.u32 %v212_v49, 16  ;;  %v420_v4 = vrot.slane %v419_v58, 4  ;;  %v522_v6 = vshrl.u32 %v212_v49, 16  ;;  %v528_v7 = vshll.u32 %v236_v53, 16  ;;  %2720 = vmatpush.bf16.msra.mxu1 %v5247_v51 }
  0x5a   : > { %v514_v5 = vrot.slane %v512_v59, 5  ;;  %v667_v9 = vpack.c.b16 %v638_v60, %v637_v57  ;;  %v430_v10 = vrot.slane %v429_v63, 4  ;;  %v605_v24 = vshrl.u32 %v219_v8, 16 }
  0x5b   : > { %v520_v11 = vrot.slane %v518_v3, 5  ;;  %v425_v13 = vsel %vm5579_vm2, %v420_v4, %v424_v48  ;;  %v524_v15 = vrot.slane %v522_v6, 4  ;;  %v530_v17 = vrot.slane %v528_v7, 5  ;;  %v1060_v6 = vld [vmem:[%s5567_s23] sm:$0xe] }
  0x5c   : > { %v515_v14 = vor.u32 %v514_v5, %v511_v0  ;;  %4533 = vmatmul.msk.bf16.gmra.mxu0 %vm693_vm3, %v667_v9  ;;  %v435_v20 = vsel %vm5579_vm2, %v430_v10, %v434_v52  ;;  %v647_v23 = vunpack.c.l.b16 %v425_v13  ;;  %v608_v26 = vshll.u32 %v219_v8, 16  ;;  %v5269_v52 = vld [vmem:[%s7032_s1 + $0x88] sm:$0xff] }
  0x5d   : > { %v648_v27 = vunpack.c.l.b16 %v435_v20  ;;  %v525_v31 = vor.u32 %v524_v15, %v520_v11  ;;  %v614_v33 = vshll.u32 %v220_v12, 16  ;;  %v607_v34 = vrot.slane %v605_v24, 4  ;;  %4098 = vmatpush.bf16.msra.mxu0 %v5269_v52  ;;  %v4803_v15 = vld [vmem:[%s5567_s23 + $0xc] sm:$0xf] }
  0x5e   : > { %v516_v30 = vrot.slane %v515_v14, 4  ;;  %v610_v35 = vrot.slane %v608_v26, 5  ;;  %v618_v36 = vshrl.u32 %v220_v12, 16  ;;  %v624_v37 = vshll.u32 %v240_v18, 16 }
  0x5f   : > { %v672_v39 = vpack.c.b16 %v648_v27, %v647_v23  ;;  %v526_v42 = vrot.slane %v525_v31, 4  ;;  %v616_v43 = vrot.slane %v614_v33, 5  ;;  %v1116_v46 = vrot.slane %v5595_v62, 5  ;;  %v4806_v62 = vld [vmem:[%s5567_s23 + $0x18] sm:$0xf] }
  0x60   : > { %v521_v41 = vsel %vm5579_vm2, %v516_v30, %v520_v11  ;;  %v611_v48 = vor.u32 %v610_v35, %v607_v34  ;;  %v620_v49 = vrot.slane %v618_v36, 4  ;;  %v626_v54 = vrot.slane %v624_v37, 5 }
  0x61   : > { %v655_v47 = vunpack.c.l.b16 %v521_v41  ;;  %4538 = vmatmul.msk.bf16.gmra.mxu1 %vm693_vm3, %v672_v39  ;;  %v531_v53 = vsel %vm5579_vm2, %v526_v42, %v530_v17  ;;  %v317_v55 = vshrl.u32 %v195_v38, 16  ;;  %v320_v57 = vshll.u32 %v195_v38, 16  ;;  %v4804_v17 = vld [vmem:[%s5567_s23 + $0x10] sm:$0xf] }
  0x62   : > { %v656_v58 = vunpack.c.l.b16 %v531_v53  ;;  %v612_v59 = vrot.slane %v611_v48, 4  ;;  %v621_v60 = vor.u32 %v620_v49, %v616_v43  ;;  %v326_v63 = vshll.u32 %v5745_v44, 16  ;;  %v5204_v53 = vld [vmem:[%s5567_s23] sm:$0xff] }
  0x63   : > { %v319_v0 = vrot.slane %v317_v55, 4  ;;  %v322_v3 = vrot.slane %v320_v57, 5  ;;  %v330_v4 = vshrl.u32 %v5745_v44, 16  ;;  %v336_v5 = vshll.u32 %v5748_v45, 16 }
  0x64   : > { %v676_v7 = vpack.c.b16 %v656_v58, %v655_v47  ;;  %v617_v8 = vsel %vm5579_vm2, %v612_v59, %v616_v43  ;;  %v622_v9 = vrot.slane %v621_v60, 4  ;;  %v328_v10 = vrot.slane %v326_v63, 5  ;;  %v4805_v43 = vld [vmem:[%s5567_s23 + $0x14] sm:$0x1] }
  0x65   : > { %v663_v11 = vunpack.c.l.b16 %v617_v8  ;;  %v323_v12 = vor.u32 %v322_v3, %v319_v0  ;;  %v332_v13 = vrot.slane %v330_v4, 4  ;;  %v338_v14 = vrot.slane %v336_v5, 5  ;;  %v4807_v4 = vld [vmem:[%s5567_s23 + $0x1c] sm:$0xf]  ;;  %v1061_v5 = vld [vmem:[%s5567_s23 + $0xc] sm:$0xe] }
  0x66   : > { %4542 = vmatmul.msk.bf16.gmra.mxu2 %vm693_vm3, %v676_v7  ;;  %v627_v18 = vsel %vm5579_vm2, %v622_v9, %v626_v54  ;;  %v4635_v19 = vrot.slane %v1060_v6, 9  ;;  %v1113_v27 = vrot.slane %v5592_v61, 5  ;;  %v1808_v30 = vshrl.u32 %v4803_v15, 16 }
  0x67   : > { %v664_v20 = vunpack.c.l.b16 %v627_v18  ;;  %v324_v23 = vrot.slane %v323_v12, 4  ;;  %v333_v24 = vor.u32 %v332_v13, %v328_v10  ;;  %v1811_v31 = vshll.u32 %v4803_v15, 16  ;;  %v5226_v12 = vld [vmem:[%s5567_s23 + $0xc] sm:$0xff] }
  0x68   : > { %v1817_v33 = vshll.u32 %v4804_v17, 16  ;;  %v1821_v34 = vshrl.u32 %v4804_v17, 16  ;;  %v1114_v38 = vsel %vm5774_vm6, %v4635_v19, %v1113_v27  ;;  %v1115_v41 = vrot.slane %v1113_v27, 4 }
  0x69   : > { %v680_v35 = vpack.c.b16 %v664_v20, %v663_v11  ;;  %v329_v36 = vsel %vm5579_vm2, %v324_v23, %v328_v10  ;;  %v334_v37 = vrot.slane %v333_v24, 4  ;;  %v1228_v42 = vunpack.c.l.b16 %v1114_v38  ;;  %v4808_v24 = vld [vmem:[%s5567_s23 + $0x20] sm:$0x1] }
  0x6a   : > { %v639_v39 = vunpack.c.l.b16 %v329_v36  ;;  %v1810_v47 = vrot.slane %v1808_v30, 4  ;;  %v1813_v48 = vrot.slane %v1811_v31, 5  ;;  %v1819_v49 = vrot.slane %v1817_v33, 5  ;;  %v5205_v33 = vld [vmem:[%s5567_s23 + $0xc] sm:$0xff] }
  0x6b   : > { %4546 = vmatmul.msk.bf16.gmra.mxu3 %vm693_vm3, %v680_v35  ;;  %v339_v61 = vsel %vm5579_vm2, %v334_v37, %v338_v14  ;;  %v1823_v50 = vrot.slane %v1821_v34, 4  ;;  %v1117_v52 = vsel %vm5774_vm6, %v1115_v41, %v1116_v46  ;;  %v1827_v58 = vshll.u32 %v4805_v43, 16  ;;  %v4810_v43 = vld [vmem:[%s5567_s23 + $0x28] sm:$0xf] }
  0x6c   : > { %v640_v51 = vunpack.c.l.b16 %v339_v61  ;;  %v1229_v54 = vunpack.c.l.b16 %v1117_v52  ;;  %v1814_v55 = vor.u32 %v1813_v48, %v1810_v47  ;;  %v1120_v46 = vrot.slane %v5641_v25, 5  ;;  %v1062_v61 = vld [vmem:[%s5567_s23 + $0x18] sm:$0xe] }
  0x6d   : > { %v1824_v57 = vor.u32 %v1823_v50, %v1819_v49  ;;  %v1829_v3 = vrot.slane %v1827_v58, 5  ;;  %v1832_v6 = vshrl.u32 %v4806_v62, 16  ;;  %v1835_v7 = vshll.u32 %v4806_v62, 16 }
  0x6e   : > { %v668_v59 = vpack.c.b16 %v640_v51, %v639_v39  ;;  %v1260_v60 = vpack.c.b16 %v1229_v54, %v1228_v42  ;;  %v1815_v63 = vrot.slane %v1814_v55, 4  ;;  %v1841_v10 = vshll.u32 %v4807_v4, 16  ;;  %v4809_v39 = vld [vmem:[%s5567_s23 + $0x24] sm:$0xf] }
  0x6f   : > { %v1825_v0 = vrot.slane %v1824_v57, 4  ;;  %v1845_v11 = vshrl.u32 %v4807_v4, 16  ;;  %v4636_v13 = vrot.slane %v1061_v5, 9  ;;  %v1122_v14 = vrot.slane %v1120_v46, 4  ;;  %v5227_v57 = vld [vmem:[%s5567_s23 + $0x18] sm:$0xff] }
  0x70   : > { %4534 = vmatmul.msk.bf16.gmra.mxu0 %vm693_vm3, %v668_v59  ;;  %v1820_v8 = vsel %vm5579_vm2, %v1815_v63, %v1819_v49  ;;  %v1123_v25 = vrot.slane %v5644_v29, 5  ;;  %v1834_v18 = vrot.slane %v1832_v6, 4  ;;  %v1837_v19 = vrot.slane %v1835_v7, 5  ;;  %v4811_v4 = vld [vmem:[%s5567_s23 + $0x2c] sm:$0x1] }
  0x71   : > { %4619 = vmatmul.msk.bf16.vlgmr.msrb.gmra.mxu1 %vm693_vm3, %v5204_v53  ;;  %v1830_v9 = vsel %vm5579_vm2, %v1825_v0, %v1829_v3  ;;  %v2196_v15 = vunpack.c.l.b16 %v1820_v8  ;;  %v1843_v20 = vrot.slane %v1841_v10, 5  ;;  %v1847_v23 = vrot.slane %v1845_v11, 4 }
  0x72   : > { %v2197_v17 = vunpack.c.l.b16 %v1830_v9  ;;  %v1121_v27 = vsel %vm5774_vm6, %v4636_v13, %v1120_v46  ;;  %v1124_v30 = vsel %vm5774_vm6, %v1122_v14, %v1123_v25  ;;  %v1838_v29 = vor.u32 %v1837_v19, %v1834_v18  ;;  %v5206_v9 = vld [vmem:[%s5567_s23 + $0x18] sm:$0xff] }
  0x73   : > { %v1848_v34 = vor.u32 %v1847_v23, %v1843_v20  ;;  %v1851_v35 = vshll.u32 %v4808_v24, 16  ;;  %v1230_v36 = vunpack.c.l.b16 %v1121_v27  ;;  %v1231_v37 = vunpack.c.l.b16 %v1124_v30  ;;  %v1063_v23 = vld [vmem:[%s5567_s23 + $0x24] sm:$0xe] }
  0x74   : > { %v2228_v31 = vpack.c.b16 %v2197_v17, %v2196_v15  ;;  %v1839_v38 = vrot.slane %v1838_v29, 4  ;;  %v1127_v48 = vrot.slane %v5696_v1, 5  ;;  %v1856_v49 = vshrl.u32 %v4809_v39, 16  ;;  %v4812_v15 = vld [vmem:[%s5567_s23 + $0x30] sm:$0xf]  ;;  %v5228_v29 = vld [vmem:[%s5567_s23 + $0x24] sm:$0xff] }
  0x75   : > { %v1849_v41 = vrot.slane %v1848_v34, 4  ;;  %v1853_v42 = vrot.slane %v1851_v35, 5  ;;  %v1261_v47 = vpack.c.b16 %v1231_v37, %v1230_v36  ;;  %v1859_v51 = vshll.u32 %v4809_v39, 16  ;;  %v4813_v17 = vld [vmem:[%s5567_s23 + $0x34] sm:$0xf] }
  0x76   : > { %4663 = vmatmul.msk.bf16.vlgmr.msrb.gmra.mxu2 %vm693_vm3, %v1260_v60  ;;  %v1844_v50 = vsel %vm5579_vm2, %v1839_v38, %v1843_v20  ;;  %v1865_v52 = vshll.u32 %v4810_v43, 16  ;;  %v1869_v53 = vshrl.u32 %v4810_v43, 16  ;;  %v4637_v55 = vrot.slane %v1062_v61, 9 }
  0x77   : > { %v1854_v54 = vsel %vm5579_vm2, %v1849_v41, %v1853_v42  ;;  %v2198_v58 = vunpack.c.l.b16 %v1844_v50  ;;  %v1129_v59 = vrot.slane %v1127_v48, 4  ;;  %v1130_v1 = vrot.slane %v5699_v2, 5  ;;  %v4814_v42 = vld [vmem:[%s5567_s23 + $0x38] sm:$0x1] }
  0x78   : > { %v1858_v60 = vrot.slane %v1856_v49, 4  ;;  %v2199_v63 = vunpack.c.l.b16 %v1854_v54  ;;  %v1861_v0 = vrot.slane %v1859_v51, 5  ;;  %v1867_v3 = vrot.slane %v1865_v52, 5  ;;  %v4816_v54 = vld [vmem:[%s5567_s23 + $0x40] sm:$0xf] }
  0x79   : > { %v1871_v62 = vrot.slane %v1869_v53, 4  ;;  %v1128_v46 = vsel %vm5774_vm6, %v4637_v55, %v1127_v48  ;;  %v1131_v5 = vsel %vm5774_vm6, %v1129_v59, %v1130_v1  ;;  %v1875_v2 = vshll.u32 %v4811_v4, 16  ;;  %v4815_v53 = vld [vmem:[%s5567_s23 + $0x3c] sm:$0xf]  ;;  %v5336_v1 = vld [vmem:[%s5567_s23 + $0x34] sm:$0xf] }
  0x7a   : > { %v2229_v6 = vpack.c.b16 %v2199_v63, %v2198_v58  ;;  %v1862_v7 = vor.u32 %v1861_v0, %v1858_v60  ;;  %v1232_v10 = vunpack.c.l.b16 %v1128_v46  ;;  %v1233_v11 = vunpack.c.l.b16 %v1131_v5  ;;  %v1064_v63 = vld [vmem:[%s5567_s23 + $0x30] sm:$0xe] }
  0x7b   : > { %4787 = vmatmul.msk.bf16.vlgmr.msrb.gmra.mxu3 %vm693_vm3, %v5226_v12  ;;  %v1872_v8 = vor.u32 %v1871_v62, %v1867_v3  ;;  %v1877_v14 = vrot.slane %v1875_v2, 5  ;;  %v1134_v18 = vrot.slane %v5745_v44, 5  ;;  %v1880_v24 = vshrl.u32 %v4812_v15, 16  ;;  %v5337_v2 = vld [vmem:[%s5567_s23 + $0x38] sm:$0x1] }
  0x7c   : > { %v1863_v12 = vrot.slane %v1862_v7, 4  ;;  %v1262_v25 = vpack.c.b16 %v1233_v11, %v1232_v10  ;;  %v1883_v27 = vshll.u32 %v4812_v15, 16  ;;  %v1889_v30 = vshll.u32 %v4813_v17, 16  ;;  %v5229_v10 = vld [vmem:[%s5567_s23 + $0x30] sm:$0xff] }
  0x7d   : > { %v1873_v13 = vrot.slane %v1872_v8, 4  ;;  %v1136_v34 = vrot.slane %v1134_v18, 4  ;;  %v1137_v44 = vrot.slane %v5748_v45, 5  ;;  %v1882_v37 = vrot.slane %v1880_v24, 4  ;;  %v5207_v45 = vld [vmem:[%s5567_s23 + $0x24] sm:$0xff] }
  0x7e   : > { %v1868_v19 = vsel %vm5579_vm2, %v1863_v12, %v1867_v3  ;;  %v1885_v38 = vrot.slane %v1883_v27, 5  ;;  %v1891_v39 = vrot.slane %v1889_v30, 5  ;;  %v1899_v50 = vshll.u32 %v4814_v42, 16  ;;  %v5208_v30 = vld [vmem:[%s5567_s23 + $0x30] sm:$0xff] }
  0x7f   : > { %v1878_v20 = vsel %vm5579_vm2, %v1873_v13, %v1877_v14  ;;  %v2200_v35 = vunpack.c.l.b16 %v1868_v19  ;;  %v1141_v60 = vrot.slane %v5336_v1, 5  ;;  %v1904_v0 = vshrl.u32 %v4815_v53, 16 }
  0x80   : > { %4863 = vmatmul.msk.bf16.vlgmr.msrb.gmra.mxu0 %vm693_vm3, %v2228_v31  ;;  %v1893_v31 = vshrl.u32 %v4813_v17, 16  ;;  %v2201_v36 = vunpack.c.l.b16 %v1878_v20  ;;  %v1886_v48 = vor.u32 %v1885_v38, %v1882_v37  ;;  %v1901_v58 = vrot.slane %v1899_v50, 5  ;;  %v4817_v17 = vld [vmem:[%s5567_s23 + $0x44] sm:$0x1]  ;;  %v4818_v37 = vld [vmem:[%s5567_s23 + $0x48] sm:$0xf] }
  0x81   : > { %4620 = vmatmul.msk.bf16.gmra.mxu1 %vm693_vm3, %v5205_v33  ;;  %v4638_v33 = vrot.slane %v1063_v23, 9  ;;  %v1907_v3 = vshll.u32 %v4815_v53, 16  ;;  %v1913_v62 = vshll.u32 %v4816_v54, 16  ;;  %v1917_v4 = vshrl.u32 %v4816_v54, 16  ;;  %v4819_v38 = vld [vmem:[%s5567_s23 + $0x4c] sm:$0xf] }
  0x82   : > { %v1895_v41 = vrot.slane %v1893_v31, 4  ;;  %v2230_v61 = vpack.c.b16 %v2201_v36, %v2200_v35  ;;  %v1887_v55 = vrot.slane %v1886_v48, 4  ;;  %v4639_v7 = vrot.slane %v1064_v63, 9  ;;  %v5230_v53 = vld [vmem:[%s5567_s23 + $0x3c] sm:$0xff] }
  0x83   : > { %v1135_v43 = vsel %vm5774_vm6, %v4638_v33, %v1134_v18  ;;  %v1143_v8 = vrot.slane %v1141_v60, 4  ;;  %v1906_v11 = vrot.slane %v1904_v0, 4  ;;  %v1909_v12 = vrot.slane %v1907_v3, 5  ;;  %v4820_v3 = vld [vmem:[%s5567_s23 + $0x50] sm:$0x1] }
  0x84   : > { %v1896_v49 = vor.u32 %v1895_v41, %v1891_v39  ;;  %v1234_v51 = vunpack.c.l.b16 %v1135_v43  ;;  %v1892_v5 = vsel %vm5579_vm2, %v1887_v55, %v1891_v39  ;;  %v1915_v13 = vrot.slane %v1913_v62, 5 }
  0x85   : > { %v1919_v14 = vrot.slane %v1917_v4, 4  ;;  %v1142_v18 = vsel %vm5774_vm6, %v4639_v7, %v1141_v60  ;;  %v1910_v20 = vor.u32 %v1909_v12, %v1906_v11  ;;  %v1923_v24 = vshll.u32 %v4817_v17, 16 }
  0x86   : > { %4664 = vmatmul.msk.bf16.gmra.mxu2 %vm693_vm3, %v1261_v47  ;;  %v1138_v47 = vsel %vm5774_vm6, %v1136_v34, %v1137_v44  ;;  %v1928_v48 = vshrl.u32 %v4818_v37, 16  ;;  %v1937_v50 = vshll.u32 %v4819_v38, 16 }
  0x87   : > { %v1235_v52 = vunpack.c.l.b16 %v1138_v47  ;;  %v1920_v23 = vor.u32 %v1919_v14, %v1915_v13  ;;  %v1911_v44 = vrot.slane %v1910_v20, 4  ;;  %v1925_v36 = vrot.slane %v1923_v24, 5 }
  0x88   : > { %v1939_v63 = vrot.slane %v1937_v50, 5  ;;  %v1155_v20 = vrot.slane %v5652_v40, 5 }
  0x89   : > { %v1263_v59 = vpack.c.b16 %v1235_v52, %v1234_v51  ;;  %v1921_v35 = vrot.slane %v1920_v23, 4  ;;  %v1916_v42 = vsel %vm5579_vm2, %v1911_v44, %v1915_v13  ;;  %v1941_v51 = vshrl.u32 %v4819_v38, 16 }
  0x8a   : > { %v2204_v52 = vunpack.c.l.b16 %v1916_v42  ;;  %v1157_v38 = vrot.slane %v1155_v20, 4 }
  0x8b   : > { %4788 = vmatmul.msk.bf16.gmra.mxu3 %vm693_vm3, %v5227_v57  ;;  %v1897_v57 = vrot.slane %v1896_v49, 4  ;;  %v1926_v43 = vsel %vm5579_vm2, %v1921_v35, %v1925_v36  ;;  %v1931_v49 = vshll.u32 %v4818_v37, 16  ;;  %v1943_v0 = vrot.slane %v1941_v51, 4  ;;  %v5231_v36 = vld [vmem:[%s5567_s23 + $0x48] sm:$0xff]  ;;  %v4823_v51 = vld [vmem:[%s5567_s23 + $0x5c] sm:$0x1] }
  0x8c   : > { %v2205_v54 = vunpack.c.l.b16 %v1926_v43 }
  0x8d   : > { %v1933_v60 = vrot.slane %v1931_v49, 5  ;;  %v1944_v7 = vor.u32 %v1943_v0, %v1939_v63 }
  0x8f   : > { %v1945_v13 = vrot.slane %v1944_v7, 4 }
  0x90   : > { %4864 = vmatmul.msk.bf16.gmra.mxu0 %vm693_vm3, %v2229_v6  ;;  %v1902_v6 = vsel %vm5579_vm2, %v1897_v57, %v1901_v58 }
  0x91   : > { %4621 = vmatmul.msk.bf16.gmra.mxu1 %vm693_vm3, %v5206_v9  ;;  %v1144_v9 = vrot.slane %v5337_v2, 5  ;;  %v2203_v15 = vunpack.c.l.b16 %v1902_v6 }
  0x93   : > { %v1145_v19 = vsel %vm5774_vm6, %v1143_v8, %v1144_v9  ;;  %v1947_v8 = vshll.u32 %v4820_v3, 16  ;;  %v5209_v9 = vld [vmem:[%s5567_s23 + $0x3c] sm:$0xff] }
  0x94   : > { %v1237_v33 = vunpack.c.l.b16 %v1145_v19  ;;  %v4822_v19 = vld [vmem:[%s5567_s23 + $0x58] sm:$0xf]  ;;  %v4824_v3 = vld [vmem:[%s5567_s23 + $0x60] sm:$0xf] }
  0x95   : > { %v1949_v14 = vrot.slane %v1947_v8, 5  ;;  %v1965_v44 = vshrl.u32 %v4822_v19, 16 }
  0x96   : > { %4665 = vmatmul.msk.bf16.gmra.mxu2 %vm693_vm3, %v1262_v25  ;;  %v2202_v25 = vunpack.c.l.b16 %v1892_v5  ;;  %v2232_v5 = vpack.c.b16 %v2205_v54, %v2204_v52 }
  0x97   : > { %v1950_v24 = vsel %vm5579_vm2, %v1945_v13, %v1949_v14  ;;  %v1967_v49 = vrot.slane %v1965_v44, 4 }
  0x98   : > { %v2231_v27 = vpack.c.b16 %v2203_v15, %v2202_v25  ;;  %v2207_v43 = vunpack.c.l.b16 %v1950_v24 }
  0x9b   : > { %4789 = vmatmul.msk.bf16.gmra.mxu3 %vm693_vm3, %v5228_v29  ;;  %v1236_v29 = vunpack.c.l.b16 %v1142_v18  ;;  %v4821_v18 = vld [vmem:[%s5567_s23 + $0x54] sm:$0xf] }
  0x9d   : > { %v1264_v41 = vpack.c.b16 %v1237_v33, %v1236_v29  ;;  %v1955_v29 = vshll.u32 %v4821_v18, 16  ;;  %v1961_v33 = vshll.u32 %v4822_v19, 16 }
  0xa0   : > { %4865 = vmatmul.msk.bf16.gmra.mxu0 %vm693_vm3, %v2230_v61  ;;  %v1148_v61 = vrot.slane %v5607_v16, 5  ;;  %v1930_v16 = vrot.slane %v1928_v48, 4  ;;  %v1963_v48 = vrot.slane %v1961_v33, 5  ;;  %v1165_v33 = vrot.slane %v5714_v28, 5 }
  0xa1   : > { %4622 = vmatmul.msk.bf16.gmra.mxu1 %vm693_vm3, %v5207_v45  ;;  %v1065_v45 = vld [vmem:[%s5567_s23 + $0x3c] sm:$0xe] }
  0xa2   : > { %v4640_v57 = vrot.slane %v1065_v45, 9  ;;  %v1150_v58 = vrot.slane %v1148_v61, 4  ;;  %v1957_v45 = vrot.slane %v1955_v29, 5 }
  0xa4   : > { %v1149_v62 = vsel %vm5774_vm6, %v4640_v57, %v1148_v61  ;;  %v5210_v57 = vld [vmem:[%s5567_s23 + $0x48] sm:$0xff] }
  0xa6   : > { %v5858_v46 = vpop.f32.mrf.mxu1  ;;  %4666 = vmatmul.msk.bf16.gmra.mxu2 %vm693_vm3, %v1263_v59  ;;  %v1151_v59 = vrot.slane %v5612_v21, 5  ;;  %v1934_v21 = vor.u32 %v1933_v60, %v1930_v16  ;;  %v1971_v16 = vshll.u32 %v4823_v51, 16  ;;  %v5211_v51 = vld [vmem:[%s5567_s23 + $0x54] sm:$0xff] }
  0xa8   : > { %v1152_v4 = vsel %vm5774_vm6, %v1150_v58, %v1151_v59  ;;  %v1935_v12 = vrot.slane %v1934_v21, 4  ;;  %v1968_v59 = vor.u32 %v1967_v49, %v1963_v48  ;;  %v1973_v7 = vrot.slane %v1971_v16, 5 }
  0xa9   : > { %v1239_v11 = vunpack.c.l.b16 %v1152_v4 }
  0xaa   : > { %v1940_v23 = vsel %vm5579_vm2, %v1935_v12, %v1939_v63  ;;  %v1969_v21 = vrot.slane %v1968_v59, 4  ;;  %v1162_v12 = vrot.slane %v5709_v22, 5 }
  0xab   : > { %4790 = vmatmul.msk.bf16.gmra.mxu3 %vm693_vm3, %v5229_v10  ;;  %v1238_v10 = vunpack.c.l.b16 %v1149_v62  ;;  %v2206_v42 = vunpack.c.l.b16 %v1940_v23  ;;  %v4825_v62 = vld [vmem:[%s5567_s23 + $0x64] sm:$0xf] }
  0xac   : > { %v1989_v13 = vshrl.u32 %v4825_v62, 16  ;;  %v1974_v19 = vsel %vm5579_vm2, %v1969_v21, %v1973_v7  ;;  %v1164_v29 = vrot.slane %v1162_v12, 4 }
  0xad   : > { %v1265_v15 = vpack.c.b16 %v1239_v11, %v1238_v10  ;;  %v2233_v54 = vpack.c.b16 %v2207_v43, %v2206_v42  ;;  %v1979_v10 = vshll.u32 %v4824_v3, 16  ;;  %v1985_v11 = vshll.u32 %v4825_v62, 16  ;;  %v4827_v62 = vld [vmem:[%s5567_s23 + $0x6c] sm:$0xf] }
  0xae   : > { %v5874_v31 = vpop.f32.mrf.mxu1  ;;  %v1991_v44 = vrot.slane %v1989_v13, 4  ;;  %v1068_v13 = vld [vmem:[%s5567_s23 + $0x60] sm:$0xe] }
  0xaf   : > { %v1981_v24 = vrot.slane %v1979_v10, 5  ;;  %v5338_v10 = vld [vmem:[%s5567_s23 + $0x64] sm:$0xf] }
  0xb0   : > { %v5876_v34 = vpop.f32.mrf.mxu2  ;;  %4866 = vmatmul.msk.bf16.gmra.mxu0 %vm693_vm3, %v2231_v27  ;;  %v1066_v27 = vld [vmem:[%s5567_s23 + $0x48] sm:$0xe] }
  0xb1   : > { %4623 = vmatmul.msk.bf16.gmra.mxu1 %vm693_vm3, %v5208_v30  ;;  %v1952_v30 = vshrl.u32 %v4821_v18, 16  ;;  %v4641_v40 = vrot.slane %v1066_v27, 9  ;;  %v1987_v27 = vrot.slane %v1985_v11, 5  ;;  %v1169_v11 = vrot.slane %v5338_v10, 5 }
  0xb3   : > { %v5882_v39 = vpop.f32.mrf.mxu0  ;;  %v1954_v61 = vrot.slane %v1952_v30, 4  ;;  %v5232_v30 = vld [vmem:[%s5567_s23 + $0x54] sm:$0xff] }
  0xb4   : > { %v5888_v47 = vpop.f32.mrf.mxu3 }
  0xb5   : > { %v1958_v58 = vor.u32 %v1957_v45, %v1954_v61  ;;  %v1166_v45 = vsel %vm5774_vm6, %v1164_v29, %v1165_v33  ;;  %v5233_v29 = vld [vmem:[%s5567_s23 + $0x60] sm:$0xff] }
  0xb6   : > { %4667 = vmatmul.msk.bf16.gmra.mxu2 %vm693_vm3, %v1264_v41  ;;  %v1158_v41 = vrot.slane %v5668_v56, 5 }
  0xb8   : > { %v5894_v55 = vpop.f32.mrf.mxu1  ;;  %v5897_v1 = vpop.f32.mrf.mxu2  ;;  %v1159_v56 = vsel %vm5774_vm6, %v1157_v38, %v1158_v41  ;;  %v4826_v38 = vld [vmem:[%s5567_s23 + $0x68] sm:$0x1] }
  0xb9   : > { %v1241_v63 = vunpack.c.l.b16 %v1159_v56  ;;  %v1995_v49 = vshll.u32 %v4826_v38, 16 }
  0xbb   : > { %4791 = vmatmul.msk.bf16.gmra.mxu3 %vm693_vm3, %v5230_v53  ;;  %v5905_v6 = vpop.f32.mrf.mxu0  ;;  %v1156_v53 = vsel %vm5774_vm6, %v4641_v40, %v1155_v20  ;;  %v2209_v40 = vunpack.c.l.b16 %v1974_v19 }
  0xbc   : > { %v5907_v2 = vpop.f32.mrf.mxu3  ;;  %v1240_v60 = vunpack.c.l.b16 %v1156_v53  ;;  %v5264_v53 = vld [vmem:[%s7032_s1 + $0x60] sm:$0xff] }
  0xbd   : > { %3023 = vmatpush.bf16.msra.mxu2 %v5264_v53 }
  0xbe   : > { %v1266_v8 = vpack.c.b16 %v1241_v63, %v1240_v60  ;;  %v1997_v60 = vrot.slane %v1995_v49, 5  ;;  %v5266_v63 = vld [vmem:[%s7032_s1 + $0x70] sm:$0xff] }
  0xbf   : > { %3689 = vmatpush.bf16.msra.mxu3 %v5266_v63  ;;  %v4829_v49 = vld [vmem:[%s5567_s23 + $0x74] sm:$0x1] }
  0xc0   : > { %4867 = vmatmul.msk.bf16.gmra.mxu0 %vm693_vm3, %v2232_v5  ;;  %v5911_v25 = vpop.f32.mrf.mxu1  ;;  %v1959_v5 = vrot.slane %v1958_v58, 4 }
  0xc1   : > { %4624 = vmatmul.msk.bf16.gmra.mxu1 %vm693_vm3, %v5209_v9  ;;  %v1976_v9 = vshrl.u32 %v4824_v3, 16  ;;  %v5246_v3 = vld [vmem:[%s7032_s1 + $0x50] sm:$0xff] }
  0xc2   : > { %v1964_v18 = vsel %vm5579_vm2, %v1959_v5, %v1963_v48  ;;  %v1992_v48 = vor.u32 %v1991_v44, %v1987_v27  ;;  %v4828_v5 = vld [vmem:[%s5567_s23 + $0x70] sm:$0xf]  ;;  %2721 = vmatpush.bf16.msra.mxu1 %v5246_v3 }
  0xc3   : > { %v5914_v17 = vpop.f32.mrf.mxu2  ;;  %v1978_v23 = vrot.slane %v1976_v9, 4  ;;  %v2009_v19 = vshll.u32 %v4828_v5, 16 }
  0xc4   : > { %v1993_v16 = vrot.slane %v1992_v48, 4 }
  0xc5   : > { %v1982_v43 = vor.u32 %v1981_v24, %v1978_v23  ;;  %v2013_v23 = vshrl.u32 %v4828_v5, 16  ;;  %v5268_v24 = vld [vmem:[%s7032_s1 + $0x80] sm:$0xff] }
  0xc6   : > { %4668 = vmatmul.msk.bf16.gmra.mxu2 %vm693_vm3, %v1265_v15  ;;  %v1067_v15 = vld [vmem:[%s5567_s23 + $0x54] sm:$0xe]  ;;  %v1998_v9 = vsel %vm5579_vm2, %v1993_v16, %v1997_v60  ;;  %4099 = vmatpush.bf16.msra.mxu0 %v5268_v24  ;;  %v5212_v60 = vld [vmem:[%s5567_s23 + $0x60] sm:$0xff] }
  0xc7   : > { %v5924_v35 = vpop.f32.mrf.mxu0  ;;  %v4642_v22 = vrot.slane %v1067_v15, 9  ;;  %v1983_v59 = vrot.slane %v1982_v43, 4  ;;  %v2000_v15 = vshrl.u32 %v4827_v62, 16  ;;  %v2211_v44 = vunpack.c.l.b16 %v1998_v9 }
  0xc8   : > { %v5928_v37 = vpop.f32.mrf.mxu3 }
  0xc9   : > { %v1163_v61 = vsel %vm5774_vm6, %v4642_v22, %v1162_v12  ;;  %v2002_v38 = vrot.slane %v2000_v15, 4  ;;  %v4830_v15 = vld [vmem:[%s5567_s23 + $0x78] sm:$0xf] }
  0xca   : > { %v5931_v50 = vpop.f32.mrf.mxu1 }
  0xcb   : > { %4792 = vmatmul.msk.bf16.gmra.mxu3 %vm693_vm3, %v5231_v36  ;;  %v5935_v52 = vpop.f32.mrf.mxu2  ;;  %v2208_v36 = vunpack.c.l.b16 %v1964_v18  ;;  %v2003_v18 = vshll.u32 %v4827_v62, 16 }
  0xcd   : > { %v2234_v28 = vpack.c.b16 %v2209_v40, %v2208_v36  ;;  %v4643_v36 = vrot.slane %v1068_v13, 9  ;;  %v1171_v40 = vrot.slane %v1169_v11, 4  ;;  %v2005_v43 = vrot.slane %v2003_v18, 5  ;;  %v4831_v18 = vld [vmem:[%s5567_s23 + $0x7c] sm:$0xf] }
  0xcf   : > { %v5942_v0 = vpop.f32.mrf.mxu0 }
  0xd0   : > { %4868 = vmatmul.msk.bf16.gmra.mxu0 %vm693_vm3, %v2233_v54  ;;  %v5947_v4 = vpop.f32.mrf.mxu3  ;;  %v1242_v54 = vunpack.c.l.b16 %v1163_v61  ;;  %v2011_v61 = vrot.slane %v2009_v19, 5  ;;  %v5340_v19 = vld [vmem:[%s5567_s23 + $0x70] sm:$0xf] }
  0xd1   : > { %4625 = vmatmul.msk.bf16.gmra.mxu1 %vm693_vm3, %v5210_v57  ;;  %v1243_v57 = vunpack.c.l.b16 %v1166_v45  ;;  %v2015_v45 = vrot.slane %v2013_v23, 4  ;;  %v1176_v23 = vrot.slane %v5340_v19, 5 }
  0xd2   : > { %v5951_v14 = vpop.f32.mrf.mxu1 }
  0xd3   : > { %v1267_v21 = vpack.c.b16 %v1243_v57, %v1242_v54  ;;  %v2006_v54 = vor.u32 %v2005_v43, %v2002_v38  ;;  %v2016_v57 = vor.u32 %v2015_v45, %v2011_v61  ;;  %v5341_v43 = vld [vmem:[%s5567_s23 + $0x74] sm:$0x1] }
  0xd4   : > { %v1179_v45 = vrot.slane %v5341_v43, 5 }
  0xd5   : > { %v2017_v9 = vrot.slane %v2016_v57, 4 }
  0xd6   : > { %v5958_v20 = vpop.f32.mrf.mxu2  ;;  %4669 = vmatmul.msk.bf16.gmra.mxu2 %vm693_vm3, %v1266_v8  ;;  %v1988_v8 = vsel %vm5579_vm2, %v1983_v59, %v1987_v27  ;;  %v2019_v59 = vshll.u32 %v4829_v49, 16  ;;  %v5234_v49 = vld [vmem:[%s5567_s23 + $0x6c] sm:$0xff] }
  0xd7   : > { %v2210_v33 = vunpack.c.l.b16 %v1988_v8  ;;  %v2007_v8 = vrot.slane %v2006_v54, 4 }
  0xd8   : > { %v2021_v10 = vrot.slane %v2019_v59, 5 }
  0xd9   : > { %v5964_v41 = vpop.f32.mrf.mxu0  ;;  %v2235_v53 = vpack.c.b16 %v2211_v44, %v2210_v33  ;;  %v2012_v24 = vsel %vm5579_vm2, %v2007_v8, %v2011_v61  ;;  %v2027_v33 = vshll.u32 %v4830_v15, 16  ;;  %v2033_v44 = vshll.u32 %v4831_v18, 16  ;;  %v4832_v8 = vld [vmem:[%s5567_s23 + $0x80] sm:$0x1] }
  0xda   : > { %v5966_v42 = vpop.f32.mrf.mxu3 }
  0xdb   : > { %4793 = vmatmul.msk.bf16.gmra.mxu3 %vm693_vm3, %v5232_v30  ;;  %v5339_v30 = vld [vmem:[%s5567_s23 + $0x68] sm:$0x1] }
  0xdc   : > { %v1172_v22 = vrot.slane %v5339_v30, 5  ;;  %v1069_v30 = vld [vmem:[%s5567_s23 + $0x6c] sm:$0xe] }
  0xde   : > { %v5977_v56 = vpop.f32.mrf.mxu1  ;;  %v5979_v58 = vpop.f32.mrf.mxu2 }
  0xe0   : > { %4869 = vmatmul.msk.bf16.gmra.mxu0 %vm693_vm3, %v2234_v28  ;;  %v1170_v28 = vsel %vm5774_vm6, %v4643_v36, %v1169_v11  ;;  %v2037_v36 = vshrl.u32 %v4831_v18, 16 }
  0xe1   : > { %4626 = vmatmul.msk.bf16.gmra.mxu1 %vm693_vm3, %v5211_v51  ;;  %v5991_v7 = vpop.f32.mrf.mxu0  ;;  %v1173_v51 = vsel %vm5774_vm6, %v1171_v40, %v1172_v22  ;;  %v1244_v62 = vunpack.c.l.b16 %v1170_v28  ;;  %v4644_v28 = vrot.slane %v1069_v30, 9 }
  0xe2   : > { %v5998_v12 = vpop.f32.mrf.mxu3  ;;  %v1245_v5 = vunpack.c.l.b16 %v1173_v51  ;;  %v1178_v51 = vrot.slane %v1176_v23, 4 }
  0xe4   : > { %v1268_v13 = vpack.c.b16 %v1245_v5, %v1244_v62  ;;  %v2039_v62 = vrot.slane %v2037_v36, 4 }
  0xe6   : > { %4670 = vmatmul.msk.bf16.gmra.mxu2 %vm693_vm3, %v1267_v21  ;;  %v6006_v27 = vpop.f32.mrf.mxu1 }
  0xe9   : > { %v6009_v48 = vpop.f32.mrf.mxu2 }
  0xeb   : > { %4794 = vmatmul.msk.bf16.gmra.mxu3 %vm693_vm3, %v5233_v29  ;;  %v2024_v29 = vshrl.u32 %v4830_v15, 16  ;;  %v5213_v15 = vld [vmem:[%s5567_s23 + $0x6c] sm:$0xff] }
  0xed   : > { %v6017_v16 = vpop.f32.mrf.mxu0  ;;  %v2026_v59 = vrot.slane %v2024_v29, 4 }
  0xee   : > { %v6020_v63 = vpop.f32.mrf.mxu3  ;;  %v980_v3 = vpop.f32.mrf.mxu1 }
  0xef   : > { %v981_v21 = vadd.f32 %v980_v3, %v5882_v39  ;;  %v2022_v39 = vsel %vm5579_vm2, %v2017_v9, %v2021_v10  ;;  %v2035_v3 = vrot.slane %v2033_v44, 5  ;;  %v1177_v9 = vsel %vm5774_vm6, %v4644_v28, %v1176_v23 }
  0xf0   : > { %4870 = vmatmul.msk.bf16.gmra.mxu0 %vm693_vm3, %v2235_v53  ;;  %v2212_v53 = vunpack.c.l.b16 %v2012_v24  ;;  %v2213_v54 = vunpack.c.l.b16 %v2022_v39  ;;  %v2043_v24 = vshll.u32 %v4832_v8, 16 }
  0xf1   : > { %v6024_v11 = vpop.f32.mrf.mxu2  ;;  %4627 = vmatmul.msk.bf16.gmra.mxu1 %vm693_vm3, %v5212_v60  ;;  %v2029_v60 = vrot.slane %v2027_v33, 5  ;;  %v2040_v19 = vor.u32 %v2039_v62, %v2035_v3 }
  0xf2   : > { %v2236_v10 = vpack.c.b16 %v2213_v54, %v2212_v53  ;;  %v2045_v43 = vrot.slane %v2043_v24, 5  ;;  %v4834_v53 = vld [vmem:[%s5567_s23 + $0x88] sm:$0xf]  ;;  %v5342_v54 = vld [vmem:[%s5567_s23 + $0x7c] sm:$0xf] }
  0xf3   : > { %v2030_v18 = vor.u32 %v2029_v60, %v2026_v59  ;;  %v1070_v59 = vld [vmem:[%s5567_s23 + $0x78] sm:$0xe] }
  0xf5   : > { %v6035_v22 = vpop.f32.mrf.mxu0  ;;  %v2031_v36 = vrot.slane %v2030_v18, 4 }
  0xf6   : > { %v6037_v40 = vpop.f32.mrf.mxu3  ;;  %4671 = vmatmul.msk.bf16.gmra.mxu2 %vm693_vm3, %v1268_v13  ;;  %v982_v38 = vpop.f32.mrf.mxu1 }
  0xf7   : > { %v983_v61 = vadd.f32 %v982_v38, %v5905_v6  ;;  %v1180_v6 = vsel %vm5774_vm6, %v1178_v51, %v1179_v45  ;;  %v2041_v38 = vrot.slane %v2040_v19, 4  ;;  %v4833_v45 = vld [vmem:[%s5567_s23 + $0x84] sm:$0xf]  ;;  %v5235_v19 = vld [vmem:[%s5567_s23 + $0x78] sm:$0xff] }
  0xf8   : > { %v1247_v29 = vunpack.c.l.b16 %v1180_v6  ;;  %v2051_v60 = vshll.u32 %v4833_v45, 16  ;;  %v2061_v6 = vshrl.u32 %v4834_v53, 16 }
  0xf9   : > { %v1345_v57 = vpop.f32.mrf.mxu2  ;;  %v2046_v8 = vsel %vm5579_vm2, %v2041_v38, %v2045_v43 }
  0xfa   : > { %v1425_v5 = vadd.f32 %v1345_v57, %v981_v21  ;;  %v1246_v21 = vunpack.c.l.b16 %v1177_v9  ;;  %v1183_v57 = vrot.slane %v5342_v54, 5  ;;  %v2057_v9 = vshll.u32 %v4834_v53, 16 }
  0xfb   : > { %4795 = vmatmul.msk.bf16.gmra.mxu3 %vm693_vm3, %v5234_v49  ;;  %v2063_v38 = vrot.slane %v2061_v6, 4 }
  0xfc   : > { %v1269_v51 = vpack.c.b16 %v1247_v29, %v1246_v21 }
  0xfd   : > { %v2313_v13 = vpop.f32.mrf.mxu0 }
  0xfe   : > { %v1647_v39 = vpop.f32.mrf.mxu3  ;;  %v985_v30 = vpop.f32.mrf.mxu1 }
  0xff   : > { %v1727_v33 = vadd.f32 %v1647_v39, %v1425_v5  ;;  %v986_v23 = vadd.f32 %v985_v30, %v5924_v35  ;;  %v2048_v35 = vshrl.u32 %v4833_v45, 16  ;;  %v2036_v5 = vsel %vm5579_vm2, %v2031_v36, %v2035_v3 }
 0x100   : > { %4871 = vmatmul.msk.bf16.gmra.mxu0 %vm693_vm3, %v2236_v10  ;;  %v5343_v10 = vld [vmem:[%s5567_s23 + $0x80] sm:$0x1]  ;;  %v4645_v39 = vrot.slane %v1070_v59, 9  ;;  %v1185_v30 = vrot.slane %v1183_v57, 4  ;;  %v2214_v21 = vunpack.c.l.b16 %v2036_v5  ;;  %v2215_v3 = vunpack.c.l.b16 %v2046_v8 }
 0x101   : > { %v1347_v44 = vpop.f32.mrf.mxu2  ;;  %4628 = vmatmul.msk.bf16.gmra.mxu1 %vm693_vm3, %v5213_v15  ;;  %v6054_v49 = vadd.f32 %v2313_v13, %v1727_v33  ;;  %v1186_v13 = vrot.slane %v5343_v10, 5  ;;  %v2050_v29 = vrot.slane %v2048_v35, 4  ;;  %v2053_v33 = vrot.slane %v2051_v60, 5  ;;  %v5214_v35 = vld [vmem:[%s5567_s23 + $0x78] sm:$0xff] }
 0x102   : > { %v1426_v28 = vadd.f32 %v1347_v44, %v983_v61  ;;  %v2059_v36 = vrot.slane %v2057_v9, 5  ;;  %v2237_v53 = vpack.c.b16 %v2215_v3, %v2214_v21  ;;  %v4837_v21 = vld [vmem:[%s5567_s23 + $0x94] sm:$0xf]  ;;  %v5344_v3 = vld [vmem:[%s5567_s23 + $0x88] sm:$0xf] }
 0x103   : > { %v2054_v54 = vor.u32 %v2053_v33, %v2050_v29  ;;  %v1190_v29 = vrot.slane %v5344_v3, 5  ;;  %v1071_v33 = vld [vmem:[%s5567_s23 + $0x84] sm:$0xe] }
 0x104   : > { %v2064_v60 = vor.u32 %v2063_v38, %v2059_v36 }
 0x105   : > { %v2315_v62 = vpop.f32.mrf.mxu0  ;;  %v2055_v10 = vrot.slane %v2054_v54, 4 }
 0x106   : > { %v1649_v61 = vpop.f32.mrf.mxu3  ;;  %4672 = vmatmul.msk.bf16.gmra.mxu2 %vm693_vm3, %v1269_v51  ;;  %v987_v15 = vpop.f32.mrf.mxu1  ;;  %v4835_v51 = vld [vmem:[%s5567_s23 + $0x8c] sm:$0x1] }
 0x107   : > { %v1728_v18 = vadd.f32 %v1649_v61, %v1426_v28  ;;  %v988_v24 = vadd.f32 %v987_v15, %v5942_v0  ;;  %v1184_v28 = vsel %vm5774_vm6, %v4645_v39, %v1183_v57  ;;  %v1187_v0 = vsel %vm5774_vm6, %v1185_v30, %v1186_v13 }
 0x108   : > { %v2067_v5 = vshll.u32 %v4835_v51, 16  ;;  %v1249_v9 = vunpack.c.l.b16 %v1187_v0  ;;  %v2065_v61 = vrot.slane %v2064_v60, 4  ;;  %v2085_v0 = vshrl.u32 %v4837_v21, 16  ;;  %v5236_v60 = vld [vmem:[%s5567_s23 + $0x84] sm:$0xff] }
 0x109   : > { %v1350_v44 = vpop.f32.mrf.mxu2  ;;  %v6067_v43 = vadd.f32 %v2315_v62, %v1728_v18  ;;  %v4836_v18 = vld [vmem:[%s5567_s23 + $0x90] sm:$0xf] }
 0x10a   : > { %v1427_v45 = vadd.f32 %v1350_v44, %v986_v23  ;;  %v1248_v23 = vunpack.c.l.b16 %v1184_v28  ;;  %v2069_v15 = vrot.slane %v2067_v5, 5  ;;  %v2072_v44 = vshrl.u32 %v4836_v18, 16 }
 0x10b   : > { %4796 = vmatmul.msk.bf16.gmra.mxu3 %vm693_vm3, %v5235_v19  ;;  %v2075_v51 = vshll.u32 %v4836_v18, 16  ;;  %v2081_v28 = vshll.u32 %v4837_v21, 16  ;;  %v4646_v5 = vrot.slane %v1071_v33, 9 }
 0x10c   : > { %v1270_v30 = vpack.c.b16 %v1249_v9, %v1248_v23  ;;  %v2074_v9 = vrot.slane %v2072_v44, 4 }
 0x10d   : > { %v2318_v59 = vpop.f32.mrf.mxu0 }
 0x10e   : > { %v1652_v8 = vpop.f32.mrf.mxu3  ;;  %v990_v62 = vpop.f32.mrf.mxu1 }
 0x10f   : > { %v1729_v6 = vadd.f32 %v1652_v8, %v1427_v45  ;;  %v991_v57 = vadd.f32 %v990_v62, %v5964_v41  ;;  %v2060_v41 = vsel %vm5579_vm2, %v2055_v10, %v2059_v36  ;;  %v2070_v45 = vsel %vm5579_vm2, %v2065_v61, %v2069_v15 }
 0x110   : > { %4872 = vmatmul.msk.bf16.gmra.mxu0 %vm693_vm3, %v2237_v53  ;;  %v5345_v53 = vld [vmem:[%s5567_s23 + $0x8c] sm:$0x1]  ;;  %v1192_v8 = vrot.slane %v1190_v29, 4  ;;  %v2216_v62 = vunpack.c.l.b16 %v2060_v41  ;;  %v2217_v23 = vunpack.c.l.b16 %v2070_v45  ;;  %v2077_v10 = vrot.slane %v2075_v51, 5  ;;  %v5215_v41 = vld [vmem:[%s5567_s23 + $0x84] sm:$0xff] }
 0x111   : > { %v1352_v13 = vpop.f32.mrf.mxu2  ;;  %4629 = vmatmul.msk.bf16.gmra.mxu1 %vm693_vm3, %v5214_v35  ;;  %v6080_v19 = vadd.f32 %v2318_v59, %v1729_v6  ;;  %v1193_v54 = vrot.slane %v5345_v53, 5  ;;  %v2087_v61 = vrot.slane %v2085_v0, 4 }
 0x112   : > { %v1428_v39 = vadd.f32 %v1352_v13, %v988_v24  ;;  %v2083_v13 = vrot.slane %v2081_v28, 5  ;;  %v2238_v21 = vpack.c.b16 %v2217_v23, %v2216_v62  ;;  %v2078_v33 = vor.u32 %v2077_v10, %v2074_v9  ;;  %v4840_v62 = vld [vmem:[%s5567_s23 + $0xa0] sm:$0xf]  ;;  %v1072_v10 = vld [vmem:[%s5567_s23 + $0x90] sm:$0xe] }
 0x114   : > { %v2088_v44 = vor.u32 %v2087_v61, %v2083_v13 }
 0x115   : > { %v2320_v38 = vpop.f32.mrf.mxu0 }
 0x116   : > { %v1654_v24 = vpop.f32.mrf.mxu3  ;;  %4673 = vmatmul.msk.bf16.gmra.mxu2 %vm693_vm3, %v1270_v30  ;;  %v992_v59 = vpop.f32.mrf.mxu1  ;;  %v4838_v30 = vld [vmem:[%s5567_s23 + $0x98] sm:$0x1] }
 0x117   : > { %v1730_v35 = vadd.f32 %v1654_v24, %v1428_v39  ;;  %v993_v36 = vadd.f32 %v992_v59, %v5991_v7  ;;  %v1191_v7 = vsel %vm5774_vm6, %v4646_v5, %v1190_v29  ;;  %v1194_v39 = vsel %vm5774_vm6, %v1192_v8, %v1193_v54  ;;  %v4839_v29 = vld [vmem:[%s5567_s23 + $0x9c] sm:$0xf] }
 0x118   : > { %v2091_v45 = vshll.u32 %v4838_v30, 16  ;;  %v1251_v28 = vunpack.c.l.b16 %v1194_v39  ;;  %v2079_v24 = vrot.slane %v2078_v33, 4  ;;  %v2089_v59 = vrot.slane %v2088_v44, 4 }
 0x119   : > { %v1355_v6 = vpop.f32.mrf.mxu2  ;;  %v6093_v15 = vadd.f32 %v2320_v38, %v1730_v35  ;;  %v2096_v23 = vshrl.u32 %v4839_v29, 16  ;;  %v2099_v9 = vshll.u32 %v4839_v29, 16  ;;  %v2109_v39 = vshrl.u32 %v4840_v62, 16 }
 0x11a   : > { %v1429_v18 = vadd.f32 %v1355_v6, %v991_v57  ;;  %v1250_v57 = vunpack.c.l.b16 %v1191_v7  ;;  %v2093_v35 = vrot.slane %v2091_v45, 5  ;;  %v5346_v6 = vld [vmem:[%s5567_s23 + $0x94] sm:$0xf]  ;;  %v2105_v7 = vshll.u32 %v4840_v62, 16 }
 0x11b   : > { %4797 = vmatmul.msk.bf16.gmra.mxu3 %vm693_vm3, %v5236_v60  ;;  %v2098_v33 = vrot.slane %v2096_v23, 4  ;;  %v2101_v44 = vrot.slane %v2099_v9, 5 }
 0x11c   : > { %v1271_v8 = vpack.c.b16 %v1251_v28, %v1250_v57  ;;  %v2094_v30 = vsel %vm5579_vm2, %v2089_v59, %v2093_v35  ;;  %v4647_v57 = vrot.slane %v1072_v10, 9 }
 0x11d   : > { %v2323_v3 = vpop.f32.mrf.mxu0  ;;  %v2102_v62 = vor.u32 %v2101_v44, %v2098_v33  ;;  %v4843_v33 = vld [vmem:[%s5567_s23 + $0xac] sm:$0xf] }
 0x11e   : > { %v1657_v51 = vpop.f32.mrf.mxu3  ;;  %v995_v38 = vpop.f32.mrf.mxu1 }
 0x11f   : > { %v1731_v0 = vadd.f32 %v1657_v51, %v1429_v18  ;;  %v996_v53 = vadd.f32 %v995_v38, %v6017_v16  ;;  %v1197_v16 = vrot.slane %v5346_v6, 5  ;;  %v2084_v18 = vsel %vm5579_vm2, %v2079_v24, %v2083_v13  ;;  %v5237_v51 = vld [vmem:[%s5567_s23 + $0x90] sm:$0xff] }
 0x120   : > { %4873 = vmatmul.msk.bf16.gmra.mxu0 %vm693_vm3, %v2238_v21  ;;  %v5347_v21 = vld [vmem:[%s5567_s23 + $0x98] sm:$0x1]  ;;  %v2218_v28 = vunpack.c.l.b16 %v2084_v18  ;;  %v2111_v24 = vrot.slane %v2109_v39, 4  ;;  %v5216_v6 = vld [vmem:[%s5567_s23 + $0x90] sm:$0xff] }
 0x121   : > { %v1357_v54 = vpop.f32.mrf.mxu2  ;;  %4630 = vmatmul.msk.bf16.gmra.mxu1 %vm693_vm3, %v5215_v41  ;;  %v6106_v60 = vadd.f32 %v2323_v3, %v1731_v0  ;;  %v1200_v3 = vrot.slane %v5347_v21, 5  ;;  %v1199_v13 = vrot.slane %v1197_v16, 4  ;;  %v2219_v0 = vunpack.c.l.b16 %v2094_v30 }
 0x122   : > { %v1430_v5 = vadd.f32 %v1357_v54, %v993_v36  ;;  %v2107_v54 = vrot.slane %v2105_v7, 5  ;;  %v2103_v21 = vrot.slane %v2102_v62, 4  ;;  %v5349_v62 = vld [vmem:[%s5567_s23 + $0xa4] sm:$0x1] }
 0x123   : > { %v2239_v23 = vpack.c.b16 %v2219_v0, %v2218_v28  ;;  %v5348_v28 = vld [vmem:[%s5567_s23 + $0xa0] sm:$0xf] }
 0x124   : > { %v2112_v10 = vor.u32 %v2111_v24, %v2107_v54  ;;  %v1204_v0 = vrot.slane %v5348_v28, 5  ;;  %v1073_v24 = vld [vmem:[%s5567_s23 + $0x9c] sm:$0xe] }
 0x125   : > { %v2325_v61 = vpop.f32.mrf.mxu0 }
 0x126   : > { %v1659_v36 = vpop.f32.mrf.mxu3  ;;  %4674 = vmatmul.msk.bf16.gmra.mxu2 %vm693_vm3, %v1271_v8  ;;  %v997_v41 = vpop.f32.mrf.mxu1  ;;  %v4841_v8 = vld [vmem:[%s5567_s23 + $0xa4] sm:$0x1] }
 0x127   : > { %v1732_v45 = vadd.f32 %v1659_v36, %v1430_v5  ;;  %v998_v38 = vadd.f32 %v997_v41, %v6035_v22  ;;  %v1198_v5 = vsel %vm5774_vm6, %v4647_v57, %v1197_v16  ;;  %v1201_v22 = vsel %vm5774_vm6, %v1199_v13, %v1200_v3  ;;  %v4842_v36 = vld [vmem:[%s5567_s23 + $0xa8] sm:$0xf] }
 0x128   : > { %v2115_v18 = vshll.u32 %v4841_v8, 16  ;;  %v1253_v7 = vunpack.c.l.b16 %v1201_v22  ;;  %v2113_v3 = vrot.slane %v2112_v10, 4  ;;  %v2120_v57 = vshrl.u32 %v4842_v36, 16 }
 0x129   : > { %v1360_v29 = vpop.f32.mrf.mxu2  ;;  %v6119_v59 = vadd.f32 %v2325_v61, %v1732_v45  ;;  %v2108_v13 = vsel %vm5579_vm2, %v2103_v21, %v2107_v54  ;;  %v2133_v8 = vshrl.u32 %v4843_v33, 16 }
 0x12a   : > { %v1431_v35 = vadd.f32 %v1360_v29, %v996_v53  ;;  %v1252_v53 = vunpack.c.l.b16 %v1198_v5  ;;  %v2117_v41 = vrot.slane %v2115_v18, 5  ;;  %v2123_v29 = vshll.u32 %v4842_v36, 16  ;;  %v5238_v18 = vld [vmem:[%s5567_s23 + $0x9c] sm:$0xff] }
 0x12b   : > { %4798 = vmatmul.msk.bf16.gmra.mxu3 %vm693_vm3, %v5237_v51  ;;  %v2122_v54 = vrot.slane %v2120_v57, 4 }
 0x12c   : > { %v1272_v51 = vpack.c.b16 %v1253_v7, %v1252_v53  ;;  %v2118_v22 = vsel %vm5579_vm2, %v2113_v3, %v2117_v41  ;;  %v1206_v53 = vrot.slane %v1204_v0, 4  ;;  %v2125_v7 = vrot.slane %v2123_v29, 5  ;;  %v4844_v41 = vld [vmem:[%s5567_s23 + $0xb0] sm:$0x1] }
 0x12d   : > { %v2328_v9 = vpop.f32.mrf.mxu0  ;;  %v2221_v21 = vunpack.c.l.b16 %v2118_v22 }
 0x12e   : > { %v1662_v61 = vpop.f32.mrf.mxu3  ;;  %v1000_v30 = vpop.f32.mrf.mxu1  ;;  %v2126_v57 = vor.u32 %v2125_v7, %v2122_v54 }
 0x12f   : > { %v1733_v39 = vadd.f32 %v1662_v61, %v1431_v35  ;;  %v2129_v35 = vshll.u32 %v4843_v33, 16  ;;  %v4648_v61 = vrot.slane %v1073_v24, 9  ;;  %v5217_v24 = vld [vmem:[%s5567_s23 + $0x9c] sm:$0xff] }
 0x130   : > { %4874 = vmatmul.msk.bf16.gmra.mxu0 %vm693_vm3, %v2239_v23  ;;  %v1207_v23 = vrot.slane %v5349_v62, 5 }
 0x131   : > { %v1362_v16 = vpop.f32.mrf.mxu2  ;;  %4631 = vmatmul.msk.bf16.gmra.mxu1 %vm693_vm3, %v5216_v6  ;;  %v6132_v44 = vadd.f32 %v2328_v9, %v1733_v39  ;;  %v2220_v9 = vunpack.c.l.b16 %v2108_v13  ;;  %v1001_v39 = vadd.f32 %v1000_v30, %v5858_v46  ;;  %v2131_v36 = vrot.slane %v2129_v35, 5 }
 0x132   : > { %v1432_v45 = vadd.f32 %v1362_v16, %v998_v38  ;;  %v2135_v16 = vrot.slane %v2133_v8, 4  ;;  %v2139_v13 = vshll.u32 %v4844_v41, 16 }
 0x133   : > { %v2240_v46 = vpack.c.b16 %v2221_v21, %v2220_v9  ;;  %v4845_v9 = vld [vmem:[%s5567_s23 + $0xb4] sm:$0xf] }
 0x134   : > { %v2136_v30 = vor.u32 %v2135_v16, %v2131_v36  ;;  %v2141_v54 = vrot.slane %v2139_v13, 5  ;;  %v2147_v41 = vshll.u32 %v4845_v9, 16 }
 0x135   : > { %v2330_v5 = vpop.f32.mrf.mxu0 }
 0x136   : > { %v1664_v38 = vpop.f32.mrf.mxu3  ;;  %4675 = vmatmul.msk.bf16.gmra.mxu2 %vm693_vm3, %v1272_v51  ;;  %v1002_v6 = vpop.f32.mrf.mxu1  ;;  %v1208_v51 = vsel %vm5774_vm6, %v1206_v53, %v1207_v23  ;;  %v2137_v23 = vrot.slane %v2136_v30, 4 }
 0x137   : > { %v1734_v10 = vadd.f32 %v1664_v38, %v1432_v45  ;;  %v1205_v45 = vsel %vm5774_vm6, %v4648_v61, %v1204_v0  ;;  %v1255_v22 = vunpack.c.l.b16 %v1208_v51  ;;  %v2127_v38 = vrot.slane %v2126_v57, 4  ;;  %v5351_v57 = vld [vmem:[%s5567_s23 + $0xb0] sm:$0x1] }
 0x138   : > { %v1003_v0 = vadd.f32 %v1002_v6, %v5874_v31  ;;  %v2144_v31 = vshrl.u32 %v4845_v9, 16  ;;  %v2142_v6 = vsel %vm5579_vm2, %v2137_v23, %v2141_v54 }
 0x139   : > { %v1365_v3 = vpop.f32.mrf.mxu2  ;;  %v6145_v33 = vadd.f32 %v2330_v5, %v1734_v10  ;;  %v1254_v5 = vunpack.c.l.b16 %v1205_v45  ;;  %v2132_v16 = vsel %vm5579_vm2, %v2127_v38, %v2131_v36 }
 0x13a   : > { %v1433_v28 = vadd.f32 %v1365_v3, %v1001_v39  ;;  %v5350_v39 = vld [vmem:[%s5567_s23 + $0xac] sm:$0xf]  ;;  %v1074_v3 = vld [vmem:[%s5567_s23 + $0xa8] sm:$0xe] }
 0x13b   : > { %4799 = vmatmul.msk.bf16.gmra.mxu3 %vm693_vm3, %v5238_v18  ;;  %v4846_v18 = vld [vmem:[%s5567_s23 + $0xb8] sm:$0xf]  ;;  %v1273_v7 = vpack.c.b16 %v1255_v22, %v1254_v5  ;;  %v1211_v21 = vrot.slane %v5350_v39, 5  ;;  %v2222_v5 = vunpack.c.l.b16 %v2132_v16  ;;  %v2223_v22 = vunpack.c.l.b16 %v2142_v6  ;;  %v4847_v39 = vld [vmem:[%s5567_s23 + $0xbc] sm:$0x1] }
 0x13c   : > { %v2157_v45 = vshrl.u32 %v4846_v18, 16 }
 0x13d   : > { %v2333_v29 = vpop.f32.mrf.mxu0 }
 0x13e   : > { %v1667_v35 = vpop.f32.mrf.mxu3  ;;  %v1005_v8 = vpop.f32.mrf.mxu1  ;;  %v2159_v54 = vrot.slane %v2157_v45, 4 }
 0x13f   : > { %v1735_v62 = vadd.f32 %v1667_v35, %v1433_v28  ;;  %v2153_v28 = vshll.u32 %v4846_v18, 16  ;;  %v5239_v35 = vld [vmem:[%s5567_s23 + $0xa8] sm:$0xff]  ;;  %v1006_v38 = vadd.f32 %v1005_v8, %v5894_v55  ;;  %v2241_v55 = vpack.c.b16 %v2223_v22, %v2222_v5 }
 0x140   : > { %4875 = vmatmul.msk.bf16.gmra.mxu0 %vm693_vm3, %v2240_v46  ;;  %v1214_v46 = vrot.slane %v5351_v57, 5 }
 0x141   : > { %v1367_v10 = vpop.f32.mrf.mxu2  ;;  %4632 = vmatmul.msk.bf16.gmra.mxu1 %vm693_vm3, %v5217_v24  ;;  %v6158_v61 = vadd.f32 %v2333_v29, %v1735_v62  ;;  %v4649_v29 = vrot.slane %v1074_v3, 9  ;;  %v1213_v24 = vrot.slane %v1211_v21, 4  ;;  %v2146_v62 = vrot.slane %v2144_v31, 4  ;;  %v5218_v31 = vld [vmem:[%s5567_s23 + $0xa8] sm:$0xff] }
 0x142   : > { %v1434_v53 = vadd.f32 %v1367_v10, %v1003_v0  ;;  %v2149_v0 = vrot.slane %v2147_v41, 5  ;;  %v6170_v23 = vrot.slane %v2153_v28, 5  ;;  %v2163_v28 = vshll.u32 %v4847_v39, 16 }
 0x144   : > { %v2150_v8 = vor.u32 %v2149_v0, %v2146_v62  ;;  %v2160_v16 = vor.u32 %v2159_v54, %v6170_v23  ;;  %v2165_v62 = vrot.slane %v2163_v28, 5 }
 0x145   : > { %v2335_v51 = vpop.f32.mrf.mxu0 }
 0x146   : > { %v1669_v30 = vpop.f32.mrf.mxu3  ;;  %4676 = vmatmul.msk.bf16.gmra.mxu2 %vm693_vm3, %v1273_v7  ;;  %v1007_v13 = vpop.f32.mrf.mxu1  ;;  %v1212_v7 = vsel %vm5774_vm6, %v4649_v29, %v1211_v21  ;;  %v4848_v21 = vld [vmem:[%s5567_s23 + $0xc0] sm:$0xf]  ;;  %v5352_v29 = vld [vmem:[%s5567_s23 + $0x10] sm:$0xf] }
 0x147   : > { %v1736_v36 = vadd.f32 %v1669_v30, %v1434_v53  ;;  %v1215_v53 = vsel %vm5774_vm6, %v1213_v24, %v1214_v46  ;;  %v1256_v6 = vunpack.c.l.b16 %v1212_v7  ;;  %v4849_v30 = vld [vmem:[%s5567_s23 + $0xc4] sm:$0xf]  ;;  %v2491_v46 = vrot.slane %v5352_v29, 5 }
 0x148   : > { %v1257_v41 = vunpack.c.l.b16 %v1215_v53  ;;  %v1008_v24 = vadd.f32 %v1007_v13, %v5911_v25  ;;  %v2171_v0 = vshll.u32 %v4848_v21, 16  ;;  %v5353_v53 = vld [vmem:[%s5567_s23 + $0xb8] sm:$0xf]  ;;  %v1075_v13 = vld [vmem:[%s5567_s23 + $0xb4] sm:$0xe] }
 0x149   : > { %v1370_v9 = vpop.f32.mrf.mxu2  ;;  %v6172_v10 = vadd.f32 %v2335_v51, %v1736_v36  ;;  %v2151_v36 = vrot.slane %v2150_v8, 4  ;;  %v1218_v39 = vrot.slane %v5353_v53, 5  ;;  %v2493_v8 = vrot.slane %v2491_v46, 4  ;;  %v5240_v53 = vld [vmem:[%s5567_s23 + $0xb4] sm:$0xff] }
 0x14a   : > { %v1435_v18 = vadd.f32 %v1370_v9, %v1006_v38  ;;  %v1274_v22 = vpack.c.b16 %v1257_v41, %v1256_v6  ;;  %v2168_v38 = vshrl.u32 %v4848_v21, 16  ;;  %v2177_v9 = vshll.u32 %v4849_v30, 16 }
 0x14b   : > { %4800 = vmatmul.msk.bf16.gmra.mxu3 %vm693_vm3, %v5239_v35  ;;  %v2161_v35 = vrot.slane %v2160_v16, 4  ;;  %v5355_v16 = vld [vmem:[%s5567_s23 + $0x14] sm:$0x1]  ;;  %v2156_v6 = vsel %vm5579_vm2, %v2151_v36, %v6170_v23 }
 0x14c   : > { %v2170_v21 = vrot.slane %v2168_v38, 4  ;;  %v2224_v36 = vunpack.c.l.b16 %v2156_v6 }
 0x14d   : > { %v2338_v3 = vpop.f32.mrf.mxu0  ;;  %v2166_v41 = vsel %vm5579_vm2, %v2161_v35, %v2165_v62 }
 0x14e   : > { %v1672_v45 = vpop.f32.mrf.mxu3  ;;  %v1010_v51 = vpop.f32.mrf.mxu1  ;;  %v2225_v35 = vunpack.c.l.b16 %v2166_v41 }
 0x14f   : > { %v1737_v57 = vadd.f32 %v1672_v45, %v1435_v18  ;;  %v2181_v18 = vshrl.u32 %v4849_v30, 16  ;;  %v2494_v45 = vrot.slane %v5355_v16, 5  ;;  %v6200_v30 = vrot.slane %v2177_v9, 5 }
 0x150   : > { %4876 = vmatmul.msk.bf16.gmra.mxu0 %vm693_vm3, %v2241_v55  ;;  %v5354_v55 = vld [vmem:[%s5567_s23 + $0xbc] sm:$0x1]  ;;  %v1220_v16 = vrot.slane %v1218_v39, 4  ;;  %v1011_v23 = vadd.f32 %v1010_v51, %v5931_v50 }
 0x151   : > { %v1372_v5 = vpop.f32.mrf.mxu2  ;;  %4633 = vmatmul.msk.bf16.gmra.mxu1 %vm693_vm3, %v5218_v31  ;;  %v6188_v7 = vadd.f32 %v2338_v3, %v1737_v57  ;;  %v1221_v25 = vrot.slane %v5354_v55, 5  ;;  %v2173_v57 = vrot.slane %v2171_v0, 5  ;;  %v2183_v29 = vrot.slane %v2181_v18, 4 }
 0x152   : > { %v1436_v54 = vadd.f32 %v1372_v5, %v1008_v24  ;;  %v4879_v24 = vld [vmem:[%s5567_s23 + $0xc] sm:$0xe]  ;;  %v4650_v55 = vrot.slane %v1075_v13, 9  ;;  %v2495_v0 = vsel %vm5774_vm6, %v2493_v8, %v2494_v45  ;;  %v5063_v8 = vld [vmem:[%s5567_s23 + $0x18] sm:$0xf] }
 0x153   : > { %7041 = vst [vmem:[#allocation5_spill] sm:$0xff] %v6188_v7  ;;  %v4895_v7 = vrot.slane %v4879_v24, 9  ;;  %v2174_v9 = vor.u32 %v2173_v57, %v2170_v21  ;;  %v2607_v13 = vunpack.c.l.b16 %v2495_v0  ;;  %v1222_v51 = vsel %vm5774_vm6, %v1220_v16, %v1221_v25  ;;  %v5219_v21 = vld [vmem:[%s5567_s23 + $0xb4] sm:$0xff]  ;;  %v6223_v57 = vld [vmem:[%s5567_s23 + $0x1c] sm:$0xf] }
 0x154   : > { %v1219_v50 = vsel %vm5774_vm6, %v4650_v55, %v1218_v39  ;;  %v2184_v6 = vor.u32 %v2183_v29, %v6200_v30  ;;  %v1259_v39 = vunpack.c.l.b16 %v1222_v51  ;;  %v3186_v16 = vshrl.u32 %v5063_v8, 16 }
 0x155   : > { %v2340_v31 = vpop.f32.mrf.mxu0  ;;  %v2492_v38 = vsel %vm5774_vm6, %v4895_v7, %v2491_v46  ;;  %v2242_v46 = vpack.c.b16 %v2225_v35, %v2224_v36  ;;  %v2175_v55 = vrot.slane %v2174_v9, 4  ;;  %v3189_v29 = vshll.u32 %v5063_v8, 16 }
 0x156   : > { %v1674_v3 = vpop.f32.mrf.mxu3  ;;  %4677 = vmatmul.msk.bf16.gmra.mxu2 %vm693_vm3, %v1274_v22  ;;  %v1012_v28 = vpop.f32.mrf.mxu1  ;;  %v4850_v22 = vld [vmem:[%s5567_s23 + $0xc8] sm:$0x1]  ;;  %v2606_v18 = vunpack.c.l.b16 %v2492_v38  ;;  %v2185_v25 = vrot.slane %v2184_v6, 4  ;;  %v3199_v35 = vshrl.u32 %v6223_v57, 16  ;;  %v3188_v9 = vrot.slane %v3186_v16, 4 }
 0x157   : > { %v1738_v5 = vadd.f32 %v1674_v3, %v1436_v54  ;;  %v2187_v7 = vshll.u32 %v4850_v22, 16  ;;  %v1013_v36 = vadd.f32 %v1012_v28, %v5951_v14  ;;  %v2180_v14 = vsel %vm5579_vm2, %v2175_v55, %v6200_v30  ;;  %v5065_v6 = vld [vmem:[%s5567_s23 + $0x20] sm:$0x1]  ;;  %v5066_v16 = vld [vmem:[%s5567_s23 + $0x24] sm:$0xf] }
 0x158   : > { %v6216_v41 = vpack.c.b16 %v2607_v13, %v2606_v18  ;;  %v3191_v18 = vrot.slane %v3189_v29, 5  ;;  %v3205_v55 = vshll.u32 %v5065_v6, 16  ;;  %v6243_v29 = vld [vmem:[%s5567_s23 + $0x28] sm:$0xf] }
 0x159   : > { %v1375_v62 = vpop.f32.mrf.mxu2  ;;  %v6219_v45 = vadd.f32 %v2340_v31, %v1738_v5  ;;  %v2189_v31 = vrot.slane %v2187_v7, 5  ;;  %v3195_v5 = vshll.u32 %v6223_v57, 16 }
 0x15a   : > { %v1437_v54 = vadd.f32 %v1375_v62, %v1011_v23  ;;  %v1258_v23 = vunpack.c.l.b16 %v1219_v50  ;;  %v3201_v50 = vrot.slane %v3199_v35, 4  ;;  %v3207_v35 = vrot.slane %v3205_v55, 5 }
 0x15b   : > { %4801 = vmatmul.msk.bf16.gmra.mxu3 %vm693_vm3, %v5240_v53  ;;  %v2190_v28 = vsel %vm5579_vm2, %v2185_v25, %v2189_v31  ;;  %v3197_v13 = vrot.slane %v3195_v5, 5 }
 0x15c   : > { %v1275_v0 = vpack.c.b16 %v1259_v39, %v1258_v23  ;;  %v3192_v23 = vor.u32 %v3191_v18, %v3188_v9  ;;  %v3213_v9 = vshll.u32 %v5066_v16, 16  ;;  %v3219_v18 = vshll.u32 %v6243_v29, 16 }
 0x15d   : > { %v2343_v3 = vpop.f32.mrf.mxu0  ;;  %v3202_v39 = vor.u32 %v3201_v50, %v3197_v13 }
 0x15e   : > { %v1677_v24 = vpop.f32.mrf.mxu3  ;;  %v1015_v53 = vpop.f32.mrf.mxu1  ;;  %v3193_v31 = vrot.slane %v3192_v23, 4 }
 0x15f   : > { %v1739_v62 = vadd.f32 %v1677_v24, %v1437_v54  ;;  %v2227_v24 = vunpack.c.l.b16 %v2190_v28  ;;  %v1016_v30 = vadd.f32 %v1015_v53, %v5977_v56  ;;  %v3203_v5 = vrot.slane %v3202_v39, 4 }
 0x160   : > { %4877 = vmatmul.msk.bf16.gmra.mxu0 %vm693_vm3, %v2242_v46 }
 0x161   : > { %v1377_v22 = vpop.f32.mrf.mxu2  ;;  %4634 = vmatmul.msk.bf16.gmra.mxu1 %vm693_vm3, %v5219_v21  ;;  %v6230_v54 = vadd.f32 %v2343_v3, %v1739_v62  ;;  %v5241_v3 = vld [vmem:[%s5567_s23 + $0xc0] sm:$0xff]  ;;  %v2226_v21 = vunpack.c.l.b16 %v2180_v14  ;;  %v3223_v14 = vshrl.u32 %v6243_v29, 16  ;;  %v3208_v39 = vsel %vm5579_vm2, %v3203_v5, %v3207_v35  ;;  %v6269_v35 = vld [vmem:[%s5567_s23 + $0x2c] sm:$0x1] }
 0x162   : > { %v1438_v38 = vadd.f32 %v1377_v22, %v1013_v36  ;;  %v5139_v22 = vld [vmem:[%s5567_s23 + $0x18] sm:$0xe]  ;;  %v3575_v5 = vunpack.c.l.b16 %v3208_v39 }
 0x163   : > { %v2243_v36 = vpack.c.b16 %v2227_v24, %v2226_v21  ;;  %v5357_v21 = vld [vmem:[%s5567_s23 + $0x20] sm:$0x1] }
 0x164   : > { %v2501_v24 = vrot.slane %v5357_v21, 5 }
 0x165   : > { %v2345_v51 = vpop.f32.mrf.mxu0 }
 0x166   : > { %v1679_v46 = vpop.f32.mrf.mxu3  ;;  %4678 = vmatmul.msk.bf16.gmra.mxu2 %vm693_vm3, %v1275_v0  ;;  %v1017_v7 = vpop.f32.mrf.mxu1  ;;  %v3210_v0 = vshrl.u32 %v5066_v16, 16 }
 0x167   : > { %v1740_v8 = vadd.f32 %v1679_v46, %v1438_v38  ;;  %v3869_v38 = vrot.slane %v6223_v57, 5  ;;  %v5356_v46 = vld [vmem:[%s5567_s23 + $0x1c] sm:$0xf]  ;;  %v3198_v57 = vsel %vm5579_vm2, %v3193_v31, %v3197_v13  ;;  %v3225_v13 = vrot.slane %v3223_v14, 4 }
 0x169   : > { %v1380_v62 = vpop.f32.mrf.mxu2  ;;  %v6248_v56 = vadd.f32 %v2345_v51, %v1740_v8  ;;  %v5155_v51 = vrot.slane %v5139_v22, 9  ;;  %v4880_v8 = vld [vmem:[%s5567_s23 + $0x18] sm:$0xe]  ;;  %v3871_v55 = vrot.slane %v3869_v38, 4 }
 0x16a   : > { %v1439_v25 = vadd.f32 %v1380_v62, %v1016_v30  ;;  %v1018_v30 = vadd.f32 %v1017_v7, %v6006_v27  ;;  %v3872_v62 = vrot.slane %v5065_v6, 5  ;;  %v5248_v22 = vld [vmem:[%s5567_s23 + $0x18] sm:$0xff]  ;;  %v3574_v7 = vunpack.c.l.b16 %v3198_v57 }
 0x16b   : > { %4802 = vmatmul.msk.bf16.gmra.mxu3 %vm693_vm3, %v5241_v3  ;;  %7042 = vst [vmem:[#allocation6_spill] sm:$0xff] %v6248_v56  ;;  %v2498_v3 = vrot.slane %v5356_v46, 5  ;;  %v6263_v46 = vrot.slane %v3219_v18, 5  ;;  %v3870_v56 = vsel %vm5774_vm6, %v5155_v51, %v3869_v38  ;;  %v3229_v38 = vshll.u32 %v6269_v35, 16 }
 0x16c   : > { %v3606_v51 = vpack.c.b16 %v3575_v5, %v3574_v7  ;;  %v5358_v7 = vld [vmem:[%s5567_s23 + $0x28] sm:$0xf] }
 0x16d   : > { %v2348_v53 = vpop.f32.mrf.mxu0  ;;  %v2500_v21 = vrot.slane %v2498_v3, 4  ;;  %v2505_v5 = vrot.slane %v5358_v7, 5 }
 0x16e   : > { %v1682_v28 = vpop.f32.mrf.mxu3  ;;  %v1020_v50 = vpop.f32.mrf.mxu1 }
 0x16f   : > { %v1741_v23 = vadd.f32 %v1682_v28, %v1439_v25  ;;  %v3212_v25 = vrot.slane %v3210_v0, 4  ;;  %v3215_v28 = vrot.slane %v3213_v9, 5  ;;  %v2502_v14 = vsel %vm5774_vm6, %v2500_v21, %v2501_v24  ;;  %v6288_v21 = vld [vmem:[%s5567_s23 + $0x34] sm:$0xf] }
 0x170   : > { %4878 = vmatmul.msk.bf16.gmra.mxu0 %vm693_vm3, %v2243_v36  ;;  %v4896_v36 = vrot.slane %v4880_v8, 9  ;;  %v1021_v8 = vadd.f32 %v1020_v50, %v5876_v34 }
 0x171   : > { %v1382_v16 = vpop.f32.mrf.mxu2  ;;  %4923 = vmatmul.msk.bf16.vlgmr.msra.gmra.mxu1 %vm693_vm3, %v6216_v41  ;;  %v6266_v27 = vadd.f32 %v2348_v53, %v1741_v23  ;;  %v3873_v41 = vsel %vm5774_vm6, %v3871_v55, %v3872_v62  ;;  %v3216_v0 = vor.u32 %v3215_v28, %v3212_v25  ;;  %v3226_v23 = vor.u32 %v3225_v13, %v6263_v46  ;;  %v5140_v13 = vld [vmem:[%s5567_s23 + $0x24] sm:$0xe] }
 0x172   : > { %v1440_v31 = vadd.f32 %v1382_v16, %v1018_v30  ;;  %v2499_v53 = vsel %vm5774_vm6, %v4896_v36, %v2498_v3  ;;  %v3984_v30 = vunpack.c.l.b16 %v3870_v56  ;;  %v3985_v39 = vunpack.c.l.b16 %v3873_v41 }
 0x173   : > { %v2608_v62 = vunpack.c.l.b16 %v2499_v53  ;;  %v2609_v3 = vunpack.c.l.b16 %v2502_v14  ;;  %v3217_v25 = vrot.slane %v3216_v0, 4  ;;  %v3227_v24 = vrot.slane %v3226_v23, 4 }
 0x174   : > { %v3231_v28 = vrot.slane %v3229_v38, 5  ;;  %v3876_v36 = vrot.slane %v6243_v29, 5  ;;  %v5156_v14 = vrot.slane %v5140_v13, 9  ;;  %v4881_v29 = vld [vmem:[%s5567_s23 + $0x24] sm:$0xe] }
 0x175   : > { %v2350_v6 = vpop.f32.mrf.mxu0  ;;  %v2639_v50 = vpack.c.b16 %v2609_v3, %v2608_v62 }
 0x176   : > { %v1684_v9 = vpop.f32.mrf.mxu3  ;;  %5047 = vmatmul.msk.bf16.vlgmr.msra.gmra.mxu2 %vm693_vm3, %v5248_v22  ;;  %v1022_v18 = vpop.f32.mrf.mxu1  ;;  %v5069_v22 = vld [vmem:[%s5567_s23 + $0x30] sm:$0xf]  ;;  %v3232_v53 = vsel %vm5579_vm2, %v3227_v24, %v3231_v28  ;;  %v5249_v28 = vld [vmem:[%s5567_s23 + $0x24] sm:$0xff] }
 0x177   : > { %v1742_v57 = vadd.f32 %v1684_v9, %v1440_v31  ;;  %v4016_v31 = vpack.c.b16 %v3985_v39, %v3984_v30  ;;  %v3222_v9 = vsel %vm5579_vm2, %v3217_v25, %v6263_v46  ;;  %v3234_v23 = vshrl.u32 %v5069_v22, 16  ;;  %v5359_v39 = vld [vmem:[%s5567_s23 + $0x2c] sm:$0x1] }
 0x178   : > { %v3878_v30 = vrot.slane %v3876_v36, 4  ;;  %v3879_v46 = vrot.slane %v6269_v35, 5  ;;  %v3576_v3 = vunpack.c.l.b16 %v3222_v9  ;;  %v2507_v25 = vrot.slane %v2505_v5, 4 }
 0x179   : > { %v1385_v55 = vpop.f32.mrf.mxu2  ;;  %v6290_v34 = vadd.f32 %v2350_v6, %v1742_v57  ;;  %v3237_v6 = vshll.u32 %v5069_v22, 16  ;;  %v3243_v57 = vshll.u32 %v6288_v21, 16  ;;  %v3577_v13 = vunpack.c.l.b16 %v3232_v53 }
 0x17a   : > { %v1441_v16 = vadd.f32 %v1385_v55, %v1021_v8  ;;  %v1023_v8 = vadd.f32 %v1022_v18, %v5897_v1  ;;  %v2508_v55 = vrot.slane %v5359_v39, 5  ;;  %v3877_v22 = vsel %vm5774_vm6, %v5156_v14, %v3876_v36 }
 0x17b   : > { %5123 = vmatmul.msk.bf16.vlgmr.msra.gmra.mxu3 %vm693_vm3, %v3606_v51  ;;  %v3247_v51 = vshrl.u32 %v6288_v21, 16  ;;  %v3236_v1 = vrot.slane %v3234_v23, 4  ;;  %v3239_v18 = vrot.slane %v3237_v6, 5  ;;  %v6311_v35 = vrot.slane %v3243_v57, 5 }
 0x17c   : > { %v2509_v53 = vsel %vm5774_vm6, %v2507_v25, %v2508_v55  ;;  %v3986_v14 = vunpack.c.l.b16 %v3877_v22  ;;  %v5141_v22 = vld [vmem:[%s5567_s23 + $0x30] sm:$0xe] }
 0x17d   : > { %v2353_v56 = vpop.f32.mrf.mxu0  ;;  %v3249_v7 = vrot.slane %v3247_v51, 4  ;;  %v3240_v57 = vor.u32 %v3239_v18, %v3236_v1 }
 0x17e   : > { %v1687_v41 = vpop.f32.mrf.mxu3  ;;  %v1025_v0 = vpop.f32.mrf.mxu1 }
 0x17f   : > { %v1743_v38 = vadd.f32 %v1687_v41, %v1441_v16  ;;  %v4897_v16 = vrot.slane %v4881_v29, 9  ;;  %v6320_v29 = vld [vmem:[%s5567_s23 + $0x38] sm:$0x1]  ;;  %v3250_v51 = vor.u32 %v3249_v7, %v6311_v35  ;;  %v3241_v25 = vrot.slane %v3240_v57, 4 }
 0x180   : > { %5183 = vmatmul.msk.bf16.vlgmr.msra.gmra.mxu0 %vm693_vm3, %v4016_v31 }
 0x181   : > { %v1387_v62 = vpop.f32.mrf.mxu2  ;;  %4924 = vmatmul.msk.bf16.gmra.mxu1 %vm693_vm3, %v2639_v50  ;;  %v6309_v31 = vadd.f32 %v2353_v56, %v1743_v38  ;;  %v3880_v50 = vsel %vm5774_vm6, %v3878_v30, %v3879_v46  ;;  %v2506_v9 = vsel %vm5774_vm6, %v4897_v16, %v2505_v5  ;;  %v3607_v56 = vpack.c.b16 %v3577_v13, %v3576_v3  ;;  %v6328_v16 = vld [vmem:[%s5567_s23 + $0x40] sm:$0xf] }
 0x182   : > { %v1442_v24 = vadd.f32 %v1387_v62, %v1023_v8  ;;  %v3987_v6 = vunpack.c.l.b16 %v3880_v50  ;;  %v1026_v5 = vadd.f32 %v1025_v0, %v5914_v17  ;;  %v2610_v8 = vunpack.c.l.b16 %v2506_v9  ;;  %v5072_v62 = vld [vmem:[%s5567_s23 + $0x3c] sm:$0xf] }
 0x183   : > { %v2611_v30 = vunpack.c.l.b16 %v2509_v53  ;;  %v3253_v46 = vshll.u32 %v6320_v29, 16  ;;  %v3883_v17 = vrot.slane %v6288_v21, 5  ;;  %v3258_v18 = vshrl.u32 %v5072_v62, 16 }
 0x184   : > { %v4017_v3 = vpack.c.b16 %v3987_v6, %v3986_v14  ;;  %v3261_v7 = vshll.u32 %v5072_v62, 16  ;;  %v3267_v50 = vshll.u32 %v6328_v16, 16  ;;  %v3271_v9 = vshrl.u32 %v6328_v16, 16  ;;  %v5361_v6 = vld [vmem:[%s5567_s23 + $0x38] sm:$0x1] }
 0x185   : > { %v2355_v41 = vpop.f32.mrf.mxu0  ;;  %v3255_v13 = vrot.slane %v3253_v46, 5  ;;  %v2515_v57 = vrot.slane %v5361_v6, 5  ;;  %v3886_v21 = vrot.slane %v6320_v29, 5  ;;  %v3885_v46 = vrot.slane %v3883_v17, 4  ;;  %v6355_v6 = vld [vmem:[%s5567_s23 + $0x44] sm:$0x1] }
 0x186   : > { %v1689_v36 = vpop.f32.mrf.mxu3  ;;  %5048 = vmatmul.msk.bf16.gmra.mxu2 %vm693_vm3, %v5249_v28  ;;  %v1027_v23 = vpop.f32.mrf.mxu1  ;;  %v2640_v28 = vpack.c.b16 %v2611_v30, %v2610_v8  ;;  %v3246_v8 = vsel %vm5579_vm2, %v3241_v25, %v6311_v35  ;;  %v3263_v62 = vrot.slane %v3261_v7, 5  ;;  %v6349_v29 = vrot.slane %v3267_v50, 5 }
 0x187   : > { %v1744_v38 = vadd.f32 %v1689_v36, %v1442_v24  ;;  %v3251_v24 = vrot.slane %v3250_v51, 4  ;;  %v3578_v35 = vunpack.c.l.b16 %v3246_v8 }
 0x189   : > { %v1390_v39 = vpop.f32.mrf.mxu2  ;;  %v6333_v0 = vadd.f32 %v2355_v41, %v1744_v38  ;;  %v4882_v41 = vld [vmem:[%s5567_s23 + $0x30] sm:$0xe]  ;;  %v1028_v38 = vadd.f32 %v1027_v23, %v5935_v52  ;;  %v3256_v30 = vsel %vm5579_vm2, %v3251_v24, %v3255_v13 }
 0x18a   : > { %v1443_v55 = vadd.f32 %v1390_v39, %v1026_v5  ;;  %v5157_v5 = vrot.slane %v5141_v22, 9  ;;  %v3273_v22 = vrot.slane %v3271_v9, 4  ;;  %v4898_v52 = vrot.slane %v4882_v41, 9 }
 0x18b   : > { %5124 = vmatmul.msk.bf16.gmra.mxu3 %vm693_vm3, %v3607_v56  ;;  %v5360_v56 = vld [vmem:[%s5567_s23 + $0x34] sm:$0xf]  ;;  %v3579_v25 = vunpack.c.l.b16 %v3256_v30 }
 0x18c   : > { %v2512_v14 = vrot.slane %v5360_v56, 5  ;;  %v3884_v13 = vsel %vm5774_vm6, %v5157_v5, %v3883_v17  ;;  %v3277_v17 = vshll.u32 %v6355_v6, 16 }
 0x18d   : > { %v2358_v1 = vpop.f32.mrf.mxu0  ;;  %v3608_v41 = vpack.c.b16 %v3579_v25, %v3578_v35  ;;  %v5362_v25 = vld [vmem:[%s5567_s23 + $0x40] sm:$0xf] }
 0x18e   : > { %v1692_v53 = vpop.f32.mrf.mxu3  ;;  %v1030_v36 = vpop.f32.mrf.mxu1  ;;  %v2514_v23 = vrot.slane %v2512_v14, 4 }
 0x18f   : > { %v1745_v51 = vadd.f32 %v1692_v53, %v1443_v55  ;;  %v3260_v55 = vrot.slane %v3258_v18, 4  ;;  %v5250_v53 = vld [vmem:[%s5567_s23 + $0x30] sm:$0xff] }
 0x190   : > { %5184 = vmatmul.msk.bf16.gmra.mxu0 %vm693_vm3, %v4017_v3  ;;  %v2516_v9 = vsel %vm5774_vm6, %v2514_v23, %v2515_v57  ;;  %v6374_v23 = vld [vmem:[%s5567_s23 + $0x4c] sm:$0xf] }
 0x191   : > { %v1392_v39 = vpop.f32.mrf.mxu2  ;;  %4925 = vmatmul.msk.bf16.gmra.mxu1 %vm693_vm3, %v2640_v28  ;;  %v6352_v56 = vadd.f32 %v2358_v1, %v1745_v51  ;;  %v3887_v28 = vsel %vm5774_vm6, %v3885_v46, %v3886_v21  ;;  %v3264_v18 = vor.u32 %v3263_v62, %v3260_v55  ;;  %v2513_v1 = vsel %vm5774_vm6, %v4898_v52, %v2512_v14 }
 0x192   : > { %v1444_v3 = vadd.f32 %v1392_v39, %v1028_v38  ;;  %v3274_v51 = vor.u32 %v3273_v22, %v6349_v29  ;;  %v1031_v21 = vadd.f32 %v1030_v36, %v5958_v20  ;;  %v3988_v38 = vunpack.c.l.b16 %v3884_v13  ;;  %v5142_v22 = vld [vmem:[%s5567_s23 + $0x3c] sm:$0xe] }
 0x193   : > { %v3989_v8 = vunpack.c.l.b16 %v3887_v28  ;;  %v2612_v46 = vunpack.c.l.b16 %v2513_v1  ;;  %v2613_v14 = vunpack.c.l.b16 %v2516_v9  ;;  %v3265_v55 = vrot.slane %v3264_v18, 4 }
 0x194   : > { %v3275_v57 = vrot.slane %v3274_v51, 4  ;;  %v3279_v62 = vrot.slane %v3277_v17, 5  ;;  %v3890_v52 = vrot.slane %v6328_v16, 5  ;;  %v2519_v13 = vrot.slane %v5362_v25, 5  ;;  %v4883_v16 = vld [vmem:[%s5567_s23 + $0x3c] sm:$0xe] }
 0x195   : > { %v2360_v24 = vpop.f32.mrf.mxu0  ;;  %v2641_v35 = vpack.c.b16 %v2613_v14, %v2612_v46  ;;  %v5158_v9 = vrot.slane %v5142_v22, 9 }
 0x196   : > { %v1694_v7 = vpop.f32.mrf.mxu3  ;;  %5049 = vmatmul.msk.bf16.gmra.mxu2 %vm693_vm3, %v5250_v53  ;;  %v1032_v50 = vpop.f32.mrf.mxu1  ;;  %v5075_v53 = vld [vmem:[%s5567_s23 + $0x48] sm:$0xf]  ;;  %v3280_v1 = vsel %vm5579_vm2, %v3275_v57, %v3279_v62  ;;  %v5251_v62 = vld [vmem:[%s5567_s23 + $0x3c] sm:$0xff] }
 0x197   : > { %v1746_v5 = vadd.f32 %v1694_v7, %v1444_v3  ;;  %v4018_v3 = vpack.c.b16 %v3989_v8, %v3988_v38  ;;  %v3270_v7 = vsel %vm5579_vm2, %v3265_v55, %v6349_v29  ;;  %v3282_v51 = vshrl.u32 %v5075_v53, 16  ;;  %v5363_v8 = vld [vmem:[%s5567_s23 + $0x44] sm:$0x1] }
 0x198   : > { %v3892_v38 = vrot.slane %v3890_v52, 4  ;;  %v3893_v29 = vrot.slane %v6355_v6, 5  ;;  %v3580_v14 = vunpack.c.l.b16 %v3270_v7  ;;  %v2521_v55 = vrot.slane %v2519_v13, 4 }
 0x199   : > { %v1395_v30 = vpop.f32.mrf.mxu2  ;;  %v6376_v20 = vadd.f32 %v2360_v24, %v1746_v5  ;;  %v3285_v24 = vshll.u32 %v5075_v53, 16  ;;  %v3291_v5 = vshll.u32 %v6374_v23, 16  ;;  %v3581_v22 = vunpack.c.l.b16 %v3280_v1 }
 0x19a   : > { %v1445_v39 = vadd.f32 %v1395_v30, %v1031_v21  ;;  %v1033_v21 = vadd.f32 %v1032_v50, %v5979_v58  ;;  %v2522_v30 = vrot.slane %v5363_v8, 5  ;;  %v3891_v53 = vsel %vm5774_vm6, %v5158_v9, %v3890_v52 }
 0x19b   : > { %5125 = vmatmul.msk.bf16.gmra.mxu3 %vm693_vm3, %v3608_v41  ;;  %v3295_v41 = vshrl.u32 %v6374_v23, 16  ;;  %v3284_v58 = vrot.slane %v3282_v51, 4  ;;  %v3287_v50 = vrot.slane %v3285_v24, 5  ;;  %v6397_v6 = vrot.slane %v3291_v5, 5 }
 0x19c   : > { %v2523_v1 = vsel %vm5774_vm6, %v2521_v55, %v2522_v30  ;;  %v3990_v9 = vunpack.c.l.b16 %v3891_v53  ;;  %v5143_v53 = vld [vmem:[%s5567_s23 + $0x48] sm:$0xe] }
 0x19d   : > { %v2363_v36 = vpop.f32.mrf.mxu0  ;;  %v3297_v25 = vrot.slane %v3295_v41, 4  ;;  %v3288_v5 = vor.u32 %v3287_v50, %v3284_v58 }
 0x19e   : > { %v1697_v28 = vpop.f32.mrf.mxu3  ;;  %v1035_v18 = vpop.f32.mrf.mxu1 }
 0x19f   : > { %v1747_v17 = vadd.f32 %v1697_v28, %v1445_v39  ;;  %v4899_v39 = vrot.slane %v4883_v16, 9  ;;  %v6406_v16 = vld [vmem:[%s5567_s23 + $0x50] sm:$0x1]  ;;  %v3298_v41 = vor.u32 %v3297_v25, %v6397_v6  ;;  %v3289_v55 = vrot.slane %v3288_v5, 4 }
 0x1a0   : > { %5185 = vmatmul.msk.bf16.gmra.mxu0 %vm693_vm3, %v4018_v3 }
 0x1a1   : > { %v1397_v46 = vpop.f32.mrf.mxu2  ;;  %4926 = vmatmul.msk.bf16.gmra.mxu1 %vm693_vm3, %v2641_v35  ;;  %v6395_v3 = vadd.f32 %v2363_v36, %v1747_v17  ;;  %v3894_v35 = vsel %vm5774_vm6, %v3892_v38, %v3893_v29  ;;  %v2520_v7 = vsel %vm5774_vm6, %v4899_v39, %v2519_v13  ;;  %v3609_v36 = vpack.c.b16 %v3581_v22, %v3580_v14  ;;  %v6414_v39 = vld [vmem:[%s5567_s23 + $0x58] sm:$0xf] }
 0x1a2   : > { %v1446_v57 = vadd.f32 %v1397_v46, %v1033_v21  ;;  %v3991_v24 = vunpack.c.l.b16 %v3894_v35  ;;  %v1036_v13 = vadd.f32 %v1035_v18, %v6009_v48  ;;  %v2614_v21 = vunpack.c.l.b16 %v2520_v7  ;;  %v5078_v46 = vld [vmem:[%s5567_s23 + $0x54] sm:$0xf] }
 0x1a3   : > { %v2615_v38 = vunpack.c.l.b16 %v2523_v1  ;;  %v3301_v29 = vshll.u32 %v6406_v16, 16  ;;  %v3897_v48 = vrot.slane %v6374_v23, 5  ;;  %v3306_v50 = vshrl.u32 %v5078_v46, 16 }
 0x1a4   : > { %v4019_v14 = vpack.c.b16 %v3991_v24, %v3990_v9  ;;  %v3309_v25 = vshll.u32 %v5078_v46, 16  ;;  %v3315_v35 = vshll.u32 %v6414_v39, 16  ;;  %v3319_v7 = vshrl.u32 %v6414_v39, 16  ;;  %v5365_v24 = vld [vmem:[%s5567_s23 + $0x50] sm:$0x1] }
 0x1a5   : > { %v2365_v28 = vpop.f32.mrf.mxu0  ;;  %v3303_v22 = vrot.slane %v3301_v29, 5  ;;  %v2529_v5 = vrot.slane %v5365_v24, 5  ;;  %v3900_v23 = vrot.slane %v6406_v16, 5  ;;  %v3899_v29 = vrot.slane %v3897_v48, 4  ;;  %v6441_v24 = vld [vmem:[%s5567_s23 + $0x5c] sm:$0x1] }
 0x1a6   : > { %v1699_v52 = vpop.f32.mrf.mxu3  ;;  %5050 = vmatmul.msk.bf16.gmra.mxu2 %vm693_vm3, %v5251_v62  ;;  %v1037_v51 = vpop.f32.mrf.mxu1  ;;  %v2642_v62 = vpack.c.b16 %v2615_v38, %v2614_v21  ;;  %v3294_v21 = vsel %vm5579_vm2, %v3289_v55, %v6397_v6  ;;  %v3311_v46 = vrot.slane %v3309_v25, 5  ;;  %v6435_v16 = vrot.slane %v3315_v35, 5 }
 0x1a7   : > { %v1748_v17 = vadd.f32 %v1699_v52, %v1446_v57  ;;  %v3299_v57 = vrot.slane %v3298_v41, 4  ;;  %v3582_v6 = vunpack.c.l.b16 %v3294_v21 }
 0x1a9   : > { %v1400_v8 = vpop.f32.mrf.mxu2  ;;  %v6419_v18 = vadd.f32 %v2365_v28, %v1748_v17  ;;  %v4884_v28 = vld [vmem:[%s5567_s23 + $0x48] sm:$0xe]  ;;  %v1038_v17 = vadd.f32 %v1037_v51, %v6024_v11  ;;  %v3304_v38 = vsel %vm5579_vm2, %v3299_v57, %v3303_v22 }
 0x1aa   : > { %v1447_v30 = vadd.f32 %v1400_v8, %v1036_v13  ;;  %v5159_v13 = vrot.slane %v5143_v53, 9  ;;  %v3321_v53 = vrot.slane %v3319_v7, 4  ;;  %v4900_v11 = vrot.slane %v4884_v28, 9 }
 0x1ab   : > { %5126 = vmatmul.msk.bf16.gmra.mxu3 %vm693_vm3, %v3609_v36  ;;  %v5364_v36 = vld [vmem:[%s5567_s23 + $0x4c] sm:$0xf]  ;;  %v3583_v55 = vunpack.c.l.b16 %v3304_v38 }
 0x1ac   : > { %v2526_v9 = vrot.slane %v5364_v36, 5  ;;  %v3898_v22 = vsel %vm5774_vm6, %v5159_v13, %v3897_v48  ;;  %v3325_v48 = vshll.u32 %v6441_v24, 16 }
 0x1ad   : > { %v2368_v58 = vpop.f32.mrf.mxu0  ;;  %v3610_v28 = vpack.c.b16 %v3583_v55, %v3582_v6  ;;  %v5366_v55 = vld [vmem:[%s5567_s23 + $0x58] sm:$0xf] }
 0x1ae   : > { %v1702_v1 = vpop.f32.mrf.mxu3  ;;  %v1040_v52 = vpop.f32.mrf.mxu1  ;;  %v2528_v51 = vrot.slane %v2526_v9, 4 }
 0x1af   : > { %v1749_v41 = vadd.f32 %v1702_v1, %v1447_v30  ;;  %v3308_v30 = vrot.slane %v3306_v50, 4  ;;  %v5252_v1 = vld [vmem:[%s5567_s23 + $0x48] sm:$0xff] }
 0x1b0   : > { %5186 = vmatmul.msk.bf16.gmra.mxu0 %vm693_vm3, %v4019_v14  ;;  %v2530_v7 = vsel %vm5774_vm6, %v2528_v51, %v2529_v5  ;;  %v6460_v51 = vld [vmem:[%s5567_s23 + $0x64] sm:$0xf] }
 0x1b1   : > { %v1402_v8 = vpop.f32.mrf.mxu2  ;;  %4927 = vmatmul.msk.bf16.gmra.mxu1 %vm693_vm3, %v2642_v62  ;;  %v6438_v36 = vadd.f32 %v2368_v58, %v1749_v41  ;;  %v3901_v62 = vsel %vm5774_vm6, %v3899_v29, %v3900_v23  ;;  %v3312_v50 = vor.u32 %v3311_v46, %v3308_v30  ;;  %v2527_v58 = vsel %vm5774_vm6, %v4900_v11, %v2526_v9 }
 0x1b2   : > { %v1448_v14 = vadd.f32 %v1402_v8, %v1038_v17  ;;  %v3322_v41 = vor.u32 %v3321_v53, %v6435_v16  ;;  %v1041_v23 = vadd.f32 %v1040_v52, %v5888_v47  ;;  %v3992_v17 = vunpack.c.l.b16 %v3898_v22  ;;  %v5144_v53 = vld [vmem:[%s5567_s23 + $0x54] sm:$0xe] }
 0x1b3   : > { %v3993_v21 = vunpack.c.l.b16 %v3901_v62  ;;  %v2616_v29 = vunpack.c.l.b16 %v2527_v58  ;;  %v2617_v9 = vunpack.c.l.b16 %v2530_v7  ;;  %v3313_v30 = vrot.slane %v3312_v50, 4 }
 0x1b4   : > { %v3323_v5 = vrot.slane %v3322_v41, 4  ;;  %v3327_v46 = vrot.slane %v3325_v48, 5  ;;  %v3904_v11 = vrot.slane %v6414_v39, 5  ;;  %v2533_v22 = vrot.slane %v5366_v55, 5  ;;  %v4885_v39 = vld [vmem:[%s5567_s23 + $0x54] sm:$0xe] }
 0x1b5   : > { %v2370_v57 = vpop.f32.mrf.mxu0  ;;  %v2643_v6 = vpack.c.b16 %v2617_v9, %v2616_v29  ;;  %v5160_v7 = vrot.slane %v5144_v53, 9 }
 0x1b6   : > { %v1704_v25 = vpop.f32.mrf.mxu3  ;;  %5051 = vmatmul.msk.bf16.gmra.mxu2 %vm693_vm3, %v5252_v1  ;;  %v1042_v35 = vpop.f32.mrf.mxu1  ;;  %v5081_v1 = vld [vmem:[%s5567_s23 + $0x60] sm:$0xf]  ;;  %v3328_v58 = vsel %vm5579_vm2, %v3323_v5, %v3327_v46  ;;  %v5253_v46 = vld [vmem:[%s5567_s23 + $0x54] sm:$0xff] }
 0x1b7   : > { %v1750_v13 = vadd.f32 %v1704_v25, %v1448_v14  ;;  %v4020_v14 = vpack.c.b16 %v3993_v21, %v3992_v17  ;;  %v3318_v25 = vsel %vm5579_vm2, %v3313_v30, %v6435_v16  ;;  %v3330_v41 = vshrl.u32 %v5081_v1, 16  ;;  %v5367_v21 = vld [vmem:[%s5567_s23 + $0x5c] sm:$0x1] }
 0x1b8   : > { %v3906_v17 = vrot.slane %v3904_v11, 4  ;;  %v3907_v16 = vrot.slane %v6441_v24, 5  ;;  %v3584_v9 = vunpack.c.l.b16 %v3318_v25  ;;  %v2535_v30 = vrot.slane %v2533_v22, 4 }
 0x1b9   : > { %v1405_v38 = vpop.f32.mrf.mxu2  ;;  %v6462_v47 = vadd.f32 %v2370_v57, %v1750_v13  ;;  %v3333_v57 = vshll.u32 %v5081_v1, 16  ;;  %v3339_v13 = vshll.u32 %v6460_v51, 16  ;;  %v3585_v53 = vunpack.c.l.b16 %v3328_v58 }
 0x1ba   : > { %v1449_v8 = vadd.f32 %v1405_v38, %v1041_v23  ;;  %v1043_v23 = vadd.f32 %v1042_v35, %v5907_v2  ;;  %v2536_v38 = vrot.slane %v5367_v21, 5  ;;  %v3905_v1 = vsel %vm5774_vm6, %v5160_v7, %v3904_v11 }
 0x1bb   : > { %5127 = vmatmul.msk.bf16.gmra.mxu3 %vm693_vm3, %v3610_v28  ;;  %v3343_v28 = vshrl.u32 %v6460_v51, 16  ;;  %v3332_v2 = vrot.slane %v3330_v41, 4  ;;  %v3335_v35 = vrot.slane %v3333_v57, 5  ;;  %v6483_v24 = vrot.slane %v3339_v13, 5 }
 0x1bc   : > { %v2537_v58 = vsel %vm5774_vm6, %v2535_v30, %v2536_v38  ;;  %v3994_v7 = vunpack.c.l.b16 %v3905_v1  ;;  %v5145_v1 = vld [vmem:[%s5567_s23 + $0x60] sm:$0xe] }
 0x1bd   : > { %v2373_v52 = vpop.f32.mrf.mxu0  ;;  %v3345_v55 = vrot.slane %v3343_v28, 4  ;;  %v3336_v13 = vor.u32 %v3335_v35, %v3332_v2 }
 0x1be   : > { %v1707_v62 = vpop.f32.mrf.mxu3  ;;  %v1045_v50 = vpop.f32.mrf.mxu1 }
 0x1bf   : > { %v1751_v48 = vadd.f32 %v1707_v62, %v1449_v8  ;;  %v4901_v8 = vrot.slane %v4885_v39, 9  ;;  %v6492_v39 = vld [vmem:[%s5567_s23 + $0x68] sm:$0x1]  ;;  %v3346_v28 = vor.u32 %v3345_v55, %v6483_v24  ;;  %v3337_v30 = vrot.slane %v3336_v13, 4 }
 0x1c0   : > { %5187 = vmatmul.msk.bf16.gmra.mxu0 %vm693_vm3, %v4020_v14 }
 0x1c1   : > { %v1407_v29 = vpop.f32.mrf.mxu2  ;;  %4928 = vmatmul.msk.bf16.gmra.mxu1 %vm693_vm3, %v2643_v6  ;;  %v6481_v14 = vadd.f32 %v2373_v52, %v1751_v48  ;;  %v3908_v6 = vsel %vm5774_vm6, %v3906_v17, %v3907_v16  ;;  %v2534_v25 = vsel %vm5774_vm6, %v4901_v8, %v2533_v22  ;;  %v3611_v52 = vpack.c.b16 %v3585_v53, %v3584_v9  ;;  %v6500_v8 = vld [vmem:[%s5567_s23 + $0x70] sm:$0xf] }
 0x1c2   : > { %v1450_v5 = vadd.f32 %v1407_v29, %v1043_v23  ;;  %v3995_v57 = vunpack.c.l.b16 %v3908_v6  ;;  %v1046_v22 = vadd.f32 %v1045_v50, %v5928_v37  ;;  %v2618_v23 = vunpack.c.l.b16 %v2534_v25  ;;  %v5084_v29 = vld [vmem:[%s5567_s23 + $0x6c] sm:$0xf] }
 0x1c3   : > { %v2619_v17 = vunpack.c.l.b16 %v2537_v58  ;;  %v3349_v16 = vshll.u32 %v6492_v39, 16  ;;  %v3911_v37 = vrot.slane %v6460_v51, 5  ;;  %v3354_v35 = vshrl.u32 %v5084_v29, 16 }
 0x1c4   : > { %v4021_v9 = vpack.c.b16 %v3995_v57, %v3994_v7  ;;  %v3357_v55 = vshll.u32 %v5084_v29, 16  ;;  %v3363_v6 = vshll.u32 %v6500_v8, 16  ;;  %v3367_v25 = vshrl.u32 %v6500_v8, 16  ;;  %v5369_v57 = vld [vmem:[%s5567_s23 + $0x68] sm:$0x1] }
 0x1c5   : > { %v2375_v62 = vpop.f32.mrf.mxu0  ;;  %v3351_v53 = vrot.slane %v3349_v16, 5  ;;  %v2543_v13 = vrot.slane %v5369_v57, 5  ;;  %v3914_v51 = vrot.slane %v6492_v39, 5  ;;  %v3913_v16 = vrot.slane %v3911_v37, 4 }
 0x1c6   : > { %v1709_v11 = vpop.f32.mrf.mxu3  ;;  %5052 = vmatmul.msk.bf16.gmra.mxu2 %vm693_vm3, %v5253_v46  ;;  %v1047_v41 = vpop.f32.mrf.mxu1  ;;  %v2644_v46 = vpack.c.b16 %v2619_v17, %v2618_v23  ;;  %v3342_v23 = vsel %vm5579_vm2, %v3337_v30, %v6483_v24  ;;  %v3359_v29 = vrot.slane %v3357_v55, 5  ;;  %v3365_v39 = vrot.slane %v3363_v6, 5  ;;  %v6525_v30 = vld [vmem:[%s5567_s23 + $0x74] sm:$0x1] }
 0x1c7   : > { %v1752_v48 = vadd.f32 %v1709_v11, %v1450_v5  ;;  %v3347_v5 = vrot.slane %v3346_v28, 4  ;;  %v3586_v57 = vunpack.c.l.b16 %v3342_v23 }
 0x1c9   : > { %v1410_v21 = vpop.f32.mrf.mxu2  ;;  %v6505_v50 = vadd.f32 %v2375_v62, %v1752_v48  ;;  %v4886_v62 = vld [vmem:[%s5567_s23 + $0x60] sm:$0xe]  ;;  %v1048_v48 = vadd.f32 %v1047_v41, %v5947_v4  ;;  %v3352_v17 = vsel %vm5579_vm2, %v3347_v5, %v3351_v53 }
 0x1ca   : > { %v1451_v38 = vadd.f32 %v1410_v21, %v1046_v22  ;;  %v5161_v22 = vrot.slane %v5145_v1, 9  ;;  %v3369_v1 = vrot.slane %v3367_v25, 4  ;;  %v3587_v24 = vunpack.c.l.b16 %v3352_v17 }
 0x1cb   : > { %5128 = vmatmul.msk.bf16.gmra.mxu3 %vm693_vm3, %v3611_v52  ;;  %7043 = vst [vmem:[#allocation7_spill] sm:$0xff] %v6505_v50  ;;  %v5368_v52 = vld [vmem:[%s5567_s23 + $0x64] sm:$0xf] }
 0x1cc   : > { %v2540_v7 = vrot.slane %v5368_v52, 5  ;;  %v4902_v52 = vrot.slane %v4886_v62, 9  ;;  %v3912_v5 = vsel %vm5774_vm6, %v5161_v22, %v3911_v37  ;;  %v3370_v25 = vor.u32 %v3369_v1, %v3365_v39 }
 0x1cd   : > { %v2378_v2 = vpop.f32.mrf.mxu0  ;;  %v3612_v22 = vpack.c.b16 %v3587_v24, %v3586_v57  ;;  %v3996_v62 = vunpack.c.l.b16 %v3912_v5 }
 0x1ce   : > { %v1712_v58 = vpop.f32.mrf.mxu3  ;;  %v1050_v11 = vpop.f32.mrf.mxu1  ;;  %v2542_v4 = vrot.slane %v2540_v7, 4 }
 0x1cf   : > { %v1753_v28 = vadd.f32 %v1712_v58, %v1451_v38  ;;  %v3356_v38 = vrot.slane %v3354_v35, 4 }
 0x1d0   : > { %5188 = vmatmul.msk.bf16.gmra.mxu0 %vm693_vm3, %v4021_v9  ;;  %v5254_v9 = vld [vmem:[%s5567_s23 + $0x60] sm:$0xff]  ;;  %v2544_v6 = vsel %vm5774_vm6, %v2542_v4, %v2543_v13  ;;  %v3918_v4 = vrot.slane %v6500_v8, 5 }
 0x1d1   : > { %v1412_v21 = vpop.f32.mrf.mxu2  ;;  %4929 = vmatmul.msk.bf16.gmra.mxu1 %vm693_vm3, %v2644_v46  ;;  %v6522_v41 = vadd.f32 %v2378_v2, %v1753_v28  ;;  %v3915_v46 = vsel %vm5774_vm6, %v3913_v16, %v3914_v51  ;;  %v3360_v53 = vor.u32 %v3359_v29, %v3356_v38  ;;  %v2541_v2 = vsel %vm5774_vm6, %v4902_v52, %v2540_v7  ;;  %v5087_v29 = vld [vmem:[%s5567_s23 + $0x78] sm:$0xf]  ;;  %v5146_v52 = vld [vmem:[%s5567_s23 + $0x6c] sm:$0xe] }
 0x1d2   : > { %v1452_v58 = vadd.f32 %v1412_v21, %v1048_v48  ;;  %v3373_v28 = vshll.u32 %v6525_v30, 16  ;;  %v1051_v51 = vadd.f32 %v1050_v11, %v5966_v42  ;;  %v3997_v48 = vunpack.c.l.b16 %v3915_v46 }
 0x1d3   : > { %v2620_v17 = vunpack.c.l.b16 %v2541_v2  ;;  %v2621_v16 = vunpack.c.l.b16 %v2544_v6  ;;  %v3361_v7 = vrot.slane %v3360_v53, 4  ;;  %v3371_v38 = vrot.slane %v3370_v25, 4  ;;  %v4887_v53 = vld [vmem:[%s5567_s23 + $0x6c] sm:$0xe] }
 0x1d4   : > { %v3375_v13 = vrot.slane %v3373_v28, 5  ;;  %v4022_v1 = vpack.c.b16 %v3997_v48, %v3996_v62  ;;  %v3378_v6 = vshrl.u32 %v5087_v29, 16  ;;  %v3381_v25 = vshll.u32 %v5087_v29, 16 }
 0x1d5   : > { %v2380_v50 = vpop.f32.mrf.mxu0  ;;  %v2645_v11 = vpack.c.b16 %v2621_v16, %v2620_v17  ;;  %v3366_v5 = vsel %vm5579_vm2, %v3361_v7, %v3365_v39  ;;  %v5162_v39 = vrot.slane %v5146_v52, 9  ;;  %v4903_v17 = vrot.slane %v4887_v53, 9 }
 0x1d6   : > { %v1714_v35 = vpop.f32.mrf.mxu3  ;;  %5053 = vmatmul.msk.bf16.gmra.mxu2 %vm693_vm3, %v5254_v9  ;;  %v1052_v55 = vpop.f32.mrf.mxu1  ;;  %v3376_v46 = vsel %vm5579_vm2, %v3371_v38, %v3375_v13  ;;  %v3588_v62 = vunpack.c.l.b16 %v3366_v5  ;;  %v5371_v38 = vld [vmem:[%s5567_s23 + $0x74] sm:$0x1]  ;;  %v6570_v5 = vld [vmem:[%s5567_s23 + $0x80] sm:$0x1] }
 0x1d7   : > { %v1754_v37 = vadd.f32 %v1714_v35, %v1452_v58  ;;  %v6541_v58 = vld [vmem:[%s5567_s23 + $0x7c] sm:$0xf]  ;;  %v5370_v35 = vld [vmem:[%s5567_s23 + $0x70] sm:$0xf]  ;;  %v3589_v48 = vunpack.c.l.b16 %v3376_v46  ;;  %v2550_v13 = vrot.slane %v5371_v38, 5 }
 0x1d8   : > { %v2547_v2 = vrot.slane %v5370_v35, 5  ;;  %v3387_v28 = vshll.u32 %v6541_v58, 16  ;;  %v3391_v8 = vshrl.u32 %v6541_v58, 16 }
 0x1d9   : > { %v1415_v23 = vpop.f32.mrf.mxu2  ;;  %v6543_v9 = vadd.f32 %v2380_v50, %v1754_v37  ;;  %v1053_v37 = vadd.f32 %v1052_v55, %v5998_v12  ;;  %v3383_v12 = vrot.slane %v3381_v25, 5 }
 0x1da   : > { %v1453_v21 = vadd.f32 %v1415_v23, %v1051_v51  ;;  %v3920_v23 = vrot.slane %v3918_v4, 4  ;;  %v2549_v7 = vrot.slane %v2547_v2, 4  ;;  %v6563_v55 = vrot.slane %v3387_v28, 5 }
 0x1db   : > { %5129 = vmatmul.msk.bf16.gmra.mxu3 %vm693_vm3, %v3612_v22  ;;  %v3921_v22 = vrot.slane %v6525_v30, 5  ;;  %v3393_v30 = vrot.slane %v3391_v8, 4  ;;  %v2548_v53 = vsel %vm5774_vm6, %v4903_v17, %v2547_v2  ;;  %v5090_v17 = vld [vmem:[%s5567_s23 + $0x84] sm:$0xf] }
 0x1dc   : > { %v2551_v35 = vsel %vm5774_vm6, %v2549_v7, %v2550_v13  ;;  %v5147_v7 = vld [vmem:[%s5567_s23 + $0x78] sm:$0xe] }
 0x1dd   : > { %v2383_v42 = vpop.f32.mrf.mxu0 }
 0x1de   : > { %v1717_v57 = vpop.f32.mrf.mxu3  ;;  %v1055_v24 = vpop.f32.mrf.mxu1 }
 0x1df   : > { %v1755_v50 = vadd.f32 %v1717_v57, %v1453_v21  ;;  %v5255_v21 = vld [vmem:[%s5567_s23 + $0x6c] sm:$0xff]  ;;  %v3922_v57 = vsel %vm5774_vm6, %v3920_v23, %v3921_v22  ;;  %v1056_v28 = vadd.f32 %v1055_v24, %v6020_v63  ;;  %v2623_v23 = vunpack.c.l.b16 %v2551_v35  ;;  %v6585_v24 = vld [vmem:[%s5567_s23 + $0x88] sm:$0xf] }
 0x1e0   : > { %5189 = vmatmul.msk.bf16.gmra.mxu0 %vm693_vm3, %v4022_v1  ;;  %v3380_v1 = vrot.slane %v3378_v6, 4  ;;  %v3925_v63 = vrot.slane %v6541_v58, 5  ;;  %v3415_v58 = vshrl.u32 %v6585_v24, 16 }
 0x1e1   : > { %v1417_v51 = vpop.f32.mrf.mxu2  ;;  %4930 = vmatmul.msk.bf16.gmra.mxu1 %vm693_vm3, %v2645_v11  ;;  %v6561_v29 = vadd.f32 %v2383_v42, %v1755_v50  ;;  %v3919_v11 = vsel %vm5774_vm6, %v5162_v39, %v3918_v4  ;;  %v3613_v50 = vpack.c.b16 %v3589_v48, %v3588_v62  ;;  %v3394_v4 = vor.u32 %v3393_v30, %v6563_v55 }
 0x1e2   : > { %v1454_v16 = vadd.f32 %v1417_v51, %v1053_v37  ;;  %v3384_v25 = vor.u32 %v3383_v12, %v3380_v1  ;;  %v3998_v8 = vunpack.c.l.b16 %v3919_v11  ;;  %v3999_v37 = vunpack.c.l.b16 %v3922_v57 }
 0x1e3   : > { %v3397_v39 = vshll.u32 %v6570_v5, 16  ;;  %v2622_v51 = vunpack.c.l.b16 %v2548_v53  ;;  %v3395_v48 = vrot.slane %v3394_v4, 4  ;;  %v3402_v1 = vshrl.u32 %v5090_v17, 16  ;;  %v5372_v53 = vld [vmem:[%s5567_s23 + $0x7c] sm:$0xf] }
 0x1e4   : > { %v3385_v62 = vrot.slane %v3384_v25, 4  ;;  %v3405_v12 = vshll.u32 %v5090_v17, 16  ;;  %v2554_v35 = vrot.slane %v5372_v53, 5  ;;  %v5163_v25 = vrot.slane %v5147_v7, 9  ;;  %v5256_v17 = vld [vmem:[%s5567_s23 + $0x78] sm:$0xff] }
 0x1e5   : > { %v2385_v52 = vpop.f32.mrf.mxu0  ;;  %v2646_v13 = vpack.c.b16 %v2623_v23, %v2622_v51  ;;  %v3411_v4 = vshll.u32 %v6585_v24, 16  ;;  %v3404_v51 = vrot.slane %v3402_v1, 4 }
 0x1e6   : > { %v1719_v46 = vpop.f32.mrf.mxu3  ;;  %5054 = vmatmul.msk.bf16.gmra.mxu2 %vm693_vm3, %v5255_v21  ;;  %v1057_v42 = vpop.f32.mrf.mxu1  ;;  %v3399_v21 = vrot.slane %v3397_v39, 5  ;;  %v3927_v39 = vrot.slane %v3925_v63, 4  ;;  %v3407_v23 = vrot.slane %v3405_v12, 5 }
 0x1e7   : > { %v1756_v6 = vadd.f32 %v1719_v46, %v1454_v16  ;;  %v4023_v16 = vpack.c.b16 %v3999_v37, %v3998_v8  ;;  %v4888_v46 = vld [vmem:[%s5567_s23 + $0x78] sm:$0xe]  ;;  %v3928_v8 = vrot.slane %v6570_v5, 5  ;;  %v6607_v5 = vld [vmem:[%s5567_s23 + $0x8c] sm:$0x1] }
 0x1e9   : > { %v1420_v22 = vpop.f32.mrf.mxu2  ;;  %v6587_v30 = vadd.f32 %v2385_v52, %v1756_v6  ;;  %v3390_v52 = vsel %vm5579_vm2, %v3385_v62, %v6563_v55  ;;  %v3400_v6 = vsel %vm5579_vm2, %v3395_v48, %v3399_v21  ;;  %v3413_v48 = vrot.slane %v3411_v4, 5 }
 0x1ea   : > { %v1455_v2 = vadd.f32 %v1420_v22, %v1056_v28  ;;  %v1058_v28 = vadd.f32 %v1057_v42, %v6037_v40  ;;  %v4904_v22 = vrot.slane %v4888_v46, 9  ;;  %v2556_v40 = vrot.slane %v2554_v35, 4  ;;  %v5373_v42 = vld [vmem:[%s5567_s23 + $0x80] sm:$0x1] }
 0x1eb   : > { %5130 = vmatmul.msk.bf16.gmra.mxu3 %vm693_vm3, %v3613_v50  ;;  %v3590_v55 = vunpack.c.l.b16 %v3390_v52  ;;  %v3591_v62 = vunpack.c.l.b16 %v3400_v6  ;;  %v3417_v21 = vrot.slane %v3415_v58, 4  ;;  %v3929_v1 = vsel %vm5774_vm6, %v3927_v39, %v3928_v8 }
 0x1ec   : > { %v4001_v52 = vunpack.c.l.b16 %v3929_v1 }
 0x1ed   : > { %v2388_v38 = vpop.f32.mrf.mxu0  ;;  %v3614_v58 = vpack.c.b16 %v3591_v62, %v3590_v55  ;;  %v5374_v55 = vld [vmem:[%s5567_s23 + $0x88] sm:$0xf] }
 0x1ee   : > { %v1722_v11 = vpop.f32.mrf.mxu3  ;;  %v2723_v57 = vpop.f32.mrf.mxu1  ;;  %v2561_v62 = vrot.slane %v5374_v55, 5 }
 0x1ef   : > { %v1757_v50 = vadd.f32 %v1722_v11, %v1455_v2  ;;  %v2803_v6 = vadd.f32 %v2723_v57, %v6054_v49 }
 0x1f0   : > { %5190 = vmatmul.msk.bf16.gmra.mxu0 %vm693_vm3, %v4023_v16  ;;  %v2557_v16 = vrot.slane %v5373_v42, 5  ;;  %v5093_v42 = vld [vmem:[%s5567_s23 + $0x90] sm:$0xf] }
 0x1f1   : > { %v1422_v37 = vpop.f32.mrf.mxu2  ;;  %4931 = vmatmul.msk.bf16.gmra.mxu1 %vm693_vm3, %v2646_v13  ;;  %v6604_v7 = vadd.f32 %v2388_v38, %v1757_v50  ;;  %v3926_v13 = vsel %vm5774_vm6, %v5163_v25, %v3925_v63  ;;  %v2555_v38 = vsel %vm5774_vm6, %v4904_v22, %v2554_v35  ;;  %v3408_v50 = vor.u32 %v3407_v23, %v3404_v51 }
 0x1f2   : > { %v1456_v2 = vadd.f32 %v1422_v37, %v1058_v28  ;;  %v2558_v53 = vsel %vm5774_vm6, %v2556_v40, %v2557_v16  ;;  %v3418_v28 = vor.u32 %v3417_v21, %v3413_v48  ;;  %v3421_v63 = vshll.u32 %v6607_v5, 16  ;;  %v6628_v21 = vld [vmem:[%s5567_s23 + $0x94] sm:$0xf] }
 0x1f3   : > { %v4000_v25 = vunpack.c.l.b16 %v3926_v13  ;;  %v2624_v37 = vunpack.c.l.b16 %v2555_v38  ;;  %v2625_v35 = vunpack.c.l.b16 %v2558_v53  ;;  %v3409_v39 = vrot.slane %v3408_v50, 4  ;;  %v4889_v50 = vld [vmem:[%s5567_s23 + $0x84] sm:$0xe] }
 0x1f4   : > { %v3932_v22 = vrot.slane %v6585_v24, 5  ;;  %v3419_v23 = vrot.slane %v3418_v28, 4  ;;  %v3935_v53 = vrot.slane %v6607_v5, 5  ;;  %v3426_v28 = vshrl.u32 %v5093_v42, 16 }
 0x1f5   : > { %v2390_v11 = vpop.f32.mrf.mxu0  ;;  %v4024_v40 = vpack.c.b16 %v4001_v52, %v4000_v25  ;;  %v2647_v57 = vpack.c.b16 %v2625_v35, %v2624_v37  ;;  %v3414_v1 = vsel %vm5579_vm2, %v3409_v39, %v3413_v48  ;;  %v3435_v5 = vshll.u32 %v6628_v21, 16  ;;  %v5375_v35 = vld [vmem:[%s5567_s23 + $0x8c] sm:$0x1] }
 0x1f6   : > { %v1724_v12 = vpop.f32.mrf.mxu3  ;;  %5055 = vmatmul.msk.bf16.gmra.mxu2 %vm693_vm3, %v5256_v17  ;;  %v2725_v46 = vpop.f32.mrf.mxu1  ;;  %v5148_v17 = vld [vmem:[%s5567_s23 + $0x84] sm:$0xe]  ;;  %v3934_v38 = vrot.slane %v3932_v22, 4  ;;  %v3439_v25 = vshrl.u32 %v6628_v21, 16  ;;  %v2563_v37 = vrot.slane %v2561_v62, 4  ;;  %v2564_v39 = vrot.slane %v5375_v35, 5 }
 0x1f7   : > { %v1758_v4 = vadd.f32 %v1724_v12, %v1456_v2  ;;  %v3423_v2 = vrot.slane %v3421_v63, 5  ;;  %v5164_v12 = vrot.slane %v5148_v17, 9  ;;  %v3429_v63 = vshll.u32 %v5093_v42, 16 }
 0x1f8   : > { %v2804_v48 = vadd.f32 %v2725_v46, %v6067_v43  ;;  %v3936_v46 = vsel %vm5774_vm6, %v3934_v38, %v3935_v53  ;;  %v3428_v42 = vrot.slane %v3426_v28, 4  ;;  %v6659_v55 = vrot.slane %v3435_v5, 5 }
 0x1f9   : > { %v3025_v8 = vpop.f32.mrf.mxu2  ;;  %v6624_v16 = vadd.f32 %v2390_v11, %v1758_v4  ;;  %v6637_v4 = vld [vmem:[%s7033_s2] ss:$0 sm:$0xff]  ;;  %v3933_v43 = vsel %vm5774_vm6, %v5164_v12, %v3932_v22  ;;  %v2565_v12 = vsel %vm5774_vm6, %v2563_v37, %v2564_v39 }
 0x1fa   : > { %v3105_v51 = vadd.f32 %v3025_v8, %v2803_v6  ;;  %v4905_v8 = vrot.slane %v4889_v50, 9 }
 0x1fb   : > { %5131 = vmatmul.msk.bf16.gmra.mxu3 %vm693_vm3, %v3614_v58  ;;  %v3424_v58 = vsel %vm5579_vm2, %v3419_v23, %v3423_v2  ;;  %v3592_v23 = vunpack.c.l.b16 %v3414_v1 }
 0x1fc   : > { %v3593_v2 = vunpack.c.l.b16 %v3424_v58  ;;  %v2562_v22 = vsel %vm5774_vm6, %v4905_v8, %v2561_v62  ;;  %v4003_v58 = vunpack.c.l.b16 %v3936_v46  ;;  %v2627_v8 = vunpack.c.l.b16 %v2565_v12 }
 0x1fd   : > { %v4101_v49 = vpop.f32.mrf.mxu0  ;;  %v2626_v62 = vunpack.c.l.b16 %v2562_v22 }
 0x1fe   : > { %v3691_v13 = vpop.f32.mrf.mxu3  ;;  %v2728_v24 = vpop.f32.mrf.mxu1  ;;  %v3615_v53 = vpack.c.b16 %v3593_v2, %v3592_v23  ;;  %v6675_v23 = vld [vmem:[%s5567_s23 + $0xa0] sm:$0xf] }
 0x1ff   : > { %v3771_v11 = vadd.f32 %v3691_v13, %v3105_v51  ;;  %v5257_v51 = vld [vmem:[%s5567_s23 + $0x84] sm:$0xff]  ;;  %v3441_v13 = vrot.slane %v3439_v25, 4  ;;  %v2805_v39 = vadd.f32 %v2728_v24, %v6080_v19  ;;  %v3459_v12 = vshll.u32 %v6675_v23, 16 }
 0x200   : > { %5191 = vmatmul.msk.bf16.gmra.mxu0 %vm693_vm3, %v4024_v40 }
 0x201   : > { %v4181_v52 = vadd.f32 %v4101_v49, %v3771_v11  ;;  %v3027_v6 = vpop.f32.mrf.mxu2  ;;  %4932 = vmatmul.msk.bf16.gmra.mxu1 %vm693_vm3, %v2647_v57  ;;  %v3431_v49 = vrot.slane %v3429_v63, 5  ;;  %v6657_v57 = vld [vmem:[%s5567_s23 + $0x98] sm:$0x1]  ;;  %v4002_v11 = vunpack.c.l.b16 %v3933_v43  ;;  %v3442_v37 = vor.u32 %v3441_v13, %v6659_v55  ;;  %v5149_v13 = vld [vmem:[%s5567_s23 + $0x90] sm:$0xe] }
 0x202   : > { %v3106_v40 = vadd.f32 %v3027_v6, %v2804_v48  ;;  %v3445_v25 = vshll.u32 %v6657_v57, 16 }
 0x203   : > { %v4217_v17 = vadd.f32 %v6637_v4, %v4181_v52  ;;  %v3432_v5 = vor.u32 %v3431_v49, %v3428_v42  ;;  %v5096_v52 = vld [vmem:[%s5567_s23 + $0x9c] sm:$0xf]  ;;  %v2648_v49 = vpack.c.b16 %v2627_v8, %v2626_v62  ;;  %v3443_v19 = vrot.slane %v3442_v37, 4  ;;  %v4890_v62 = vld [vmem:[%s5567_s23 + $0x90] sm:$0xe] }
 0x204   : > { %v3450_v2 = vshrl.u32 %v5096_v52, 16  ;;  %v3453_v43 = vshll.u32 %v5096_v52, 16  ;;  %v3447_v24 = vrot.slane %v3445_v25, 5 }
 0x205   : > { %vm4249_vm7 = vcmp.ge.f32.partialorder %v4217_v17, 0.0  ;;  %v4281_v1 = vmul.f32 0.2, %v4217_v17  ;;  %v4103_v50 = vpop.f32.mrf.mxu0  ;;  %v3433_v42 = vrot.slane %v3432_v5, 4 }
 0x206   : > { %v3693_v38 = vpop.f32.mrf.mxu3  ;;  %5056 = vmatmul.msk.bf16.gmra.mxu2 %vm693_vm3, %v5257_v51  ;;  %v2730_v28 = vpop.f32.mrf.mxu1  ;;  %v3455_v5 = vrot.slane %v3453_v43, 5 }
 0x207   : > { %v4313_v63 = vsel %vm4249_vm7, %v4217_v17, %v4281_v1  ;;  %v3772_v48 = vadd.f32 %v3693_v38, %v3106_v40  ;;  %v4025_v17 = vpack.c.b16 %v4003_v58, %v4002_v11  ;;  %v3939_v1 = vrot.slane %v6628_v21, 5 }
 0x208   : > { %v4345_v6 = vpack.c.bf16 %v4313_v63, %v4313_v63  ;;  %v3463_v38 = vshrl.u32 %v6675_v23, 16  ;;  %v3452_v58 = vrot.slane %v3450_v2, 4  ;;  %v3942_v21 = vrot.slane %v6657_v57, 5 }
 0x209   : > { %v4182_v35 = vadd.f32 %v4103_v50, %v3772_v48  ;;  %v3030_v51 = vpop.f32.mrf.mxu2  ;;  %v5376_v48 = vld [vmem:[%s5567_s23 + $0x94] sm:$0xf]  ;;  %v3438_v37 = vsel %vm5579_vm2, %v3433_v42, %v6659_v55  ;;  %v2806_v2 = vadd.f32 %v2730_v28, %v6093_v15  ;;  %v3461_v57 = vrot.slane %v3459_v12, 5  ;;  %v6700_v15 = vld [vmem:[%s5567_s23 + $0xa4] sm:$0x1] }
 0x20a   : > { %4378 = vst.msk [vmem:[%s6670_s11] sm:$0xf] %vm4377_vm8, %v4345_v6  ;;  %v3107_v40 = vadd.f32 %v3030_v51, %v2805_v39  ;;  %v2568_v11 = vrot.slane %v5376_v48, 5  ;;  %v5165_v6 = vrot.slane %v5149_v13, 9  ;;  %v3941_v39 = vrot.slane %v3939_v1, 4 }
 0x20b   : > { %v4218_v46 = vadd.f32 %v6637_v4, %v4182_v35  ;;  %5132 = vmatmul.msk.bf16.gmra.mxu3 %vm693_vm3, %v3615_v53  ;;  %v3448_v35 = vsel %vm5579_vm2, %v3443_v19, %v3447_v24  ;;  %v3456_v42 = vor.u32 %v3455_v5, %v3452_v58 }
 0x20c   : > { %v2570_v13 = vrot.slane %v2568_v11, 4  ;;  %v3940_v28 = vsel %vm5774_vm6, %v5165_v6, %v3939_v1  ;;  %v3469_v6 = vshll.u32 %v6700_v15, 16 }
 0x20d   : > { %vm4250_vm9 = vcmp.ge.f32.partialorder %v4218_v46, 0.0  ;;  %v4282_v50 = vmul.f32 0.2, %v4218_v46  ;;  %v4106_v22 = vpop.f32.mrf.mxu0  ;;  %v3457_v1 = vrot.slane %v3456_v42, 4 }
 0x20e   : > { %v3696_v63 = vpop.f32.mrf.mxu3  ;;  %v2733_v53 = vpop.f32.mrf.mxu1 }
 0x20f   : > { %v4314_v52 = vsel %vm4250_vm9, %v4218_v46, %v4282_v50  ;;  %v3773_v25 = vadd.f32 %v3696_v63, %v3107_v40  ;;  %v3465_v46 = vrot.slane %v3463_v38, 4  ;;  %v4906_v40 = vrot.slane %v4890_v62, 9  ;;  %v5377_v50 = vld [vmem:[%s5567_s23 + $0x98] sm:$0x1] }
 0x210   : > { %v4346_v8 = vpack.c.bf16 %v4314_v52, %v4314_v52  ;;  %5192 = vmatmul.msk.bf16.gmra.mxu0 %vm693_vm3, %v4025_v17  ;;  %v5258_v17 = vld [vmem:[%s5567_s23 + $0x90] sm:$0xff]  ;;  %v2571_v55 = vrot.slane %v5377_v50, 5  ;;  %v3595_v63 = vunpack.c.l.b16 %v3448_v35  ;;  %v3943_v38 = vsel %vm5774_vm6, %v3941_v39, %v3942_v21 }
 0x211   : > { %v4183_v51 = vadd.f32 %v4106_v22, %v3773_v25  ;;  %v3032_v43 = vpop.f32.mrf.mxu2  ;;  %4933 = vmatmul.msk.bf16.gmra.mxu1 %vm693_vm3, %v2648_v49  ;;  %v3594_v22 = vunpack.c.l.b16 %v3438_v37  ;;  %v3466_v48 = vor.u32 %v3465_v46, %v3461_v57  ;;  %v2569_v5 = vsel %vm5774_vm6, %v4906_v40, %v2568_v11  ;;  %v6715_v40 = vld [vmem:[%s5567_s23 + $0xac] sm:$0xf] }
 0x212   : > { %4379 = vst.msk [vmem:[%s6670_s11 + $0x4] sm:$0xf] %vm4377_vm8, %v4346_v8  ;;  %v3108_v24 = vadd.f32 %v3032_v43, %v2806_v2  ;;  %v2572_v25 = vsel %vm5774_vm6, %v2570_v13, %v2571_v55  ;;  %v4004_v35 = vunpack.c.l.b16 %v3940_v28  ;;  %v4005_v39 = vunpack.c.l.b16 %v3943_v38 }
 0x213   : > { %v4219_v19 = vadd.f32 %v6637_v4, %v4183_v51  ;;  %v3616_v37 = vpack.c.b16 %v3595_v63, %v3594_v22  ;;  %v5099_v51 = vld [vmem:[%s5567_s23 + $0xa8] sm:$0xf]  ;;  %v2807_v43 = vadd.f32 %v2733_v53, %v6106_v60  ;;  %v2628_v11 = vunpack.c.l.b16 %v2569_v5 }
 0x214   : > { %v3462_v13 = vsel %vm5579_vm2, %v3457_v1, %v3461_v57  ;;  %v3467_v50 = vrot.slane %v3466_v48, 4  ;;  %v3471_v55 = vrot.slane %v3469_v6, 5  ;;  %v3474_v60 = vshrl.u32 %v5099_v51, 16  ;;  %v5378_v1 = vld [vmem:[%s5567_s23 + $0xa0] sm:$0xf] }
 0x215   : > { %vm4251_vm10 = vcmp.ge.f32.partialorder %v4219_v19, 0.0  ;;  %v4283_v49 = vmul.f32 0.2, %v4219_v19  ;;  %v4108_v12 = vpop.f32.mrf.mxu0  ;;  %v3477_v53 = vshll.u32 %v5099_v51, 16  ;;  %v3483_v22 = vshll.u32 %v6715_v40, 16 }
 0x216   : > { %v3698_v52 = vpop.f32.mrf.mxu3  ;;  %5057 = vmatmul.msk.bf16.gmra.mxu2 %vm693_vm3, %v5258_v17  ;;  %v2735_v58 = vpop.f32.mrf.mxu1  ;;  %v2629_v17 = vunpack.c.l.b16 %v2572_v25  ;;  %v3487_v63 = vshrl.u32 %v6715_v40, 16  ;;  %v3946_v38 = vrot.slane %v6675_v23, 5  ;;  %v3472_v5 = vsel %vm5579_vm2, %v3467_v50, %v3471_v55  ;;  %v6738_v50 = vld [vmem:[%s5567_s23 + $0xb0] sm:$0x1]  ;;  %v5259_v55 = vld [vmem:[%s5567_s23 + $0x9c] sm:$0xff] }
 0x217   : > { %v4315_v62 = vsel %vm4251_vm10, %v4219_v19, %v4283_v49  ;;  %v3774_v8 = vadd.f32 %v3698_v52, %v3108_v24  ;;  %v4026_v24 = vpack.c.b16 %v4005_v39, %v4004_v35  ;;  %v3596_v25 = vunpack.c.l.b16 %v3462_v13 }
 0x218   : > { %v4347_v21 = vpack.c.bf16 %v4315_v62, %v4315_v62  ;;  %v2649_v57 = vpack.c.b16 %v2629_v17, %v2628_v11  ;;  %v2575_v6 = vrot.slane %v5378_v1, 5  ;;  %v3479_v35 = vrot.slane %v3477_v53, 5  ;;  %v5379_v53 = vld [vmem:[%s5567_s23 + $0xa4] sm:$0x1] }
 0x219   : > { %v4184_v2 = vadd.f32 %v4108_v12, %v3774_v8  ;;  %v3035_v46 = vpop.f32.mrf.mxu2  ;;  %v5150_v12 = vld [vmem:[%s5567_s23 + $0x9c] sm:$0xe]  ;;  %v6732_v51 = vrot.slane %v3483_v22, 5  ;;  %v3948_v17 = vrot.slane %v3946_v38, 4  ;;  %v3949_v13 = vrot.slane %v6700_v15, 5 }
 0x21a   : > { %4380 = vst.msk [vmem:[%s6670_s11 + $0x8] sm:$0xf] %vm4377_vm8, %v4347_v21  ;;  %v3109_v19 = vadd.f32 %v3035_v46, %v2807_v43  ;;  %v3476_v21 = vrot.slane %v3474_v60, 4  ;;  %v5166_v23 = vrot.slane %v5150_v12, 9  ;;  %v2808_v46 = vadd.f32 %v2735_v58, %v6119_v59 }
 0x21b   : > { %v4220_v42 = vadd.f32 %v6637_v4, %v4184_v2  ;;  %5133 = vmatmul.msk.bf16.gmra.mxu3 %vm693_vm3, %v3616_v37  ;;  %v4891_v37 = vld [vmem:[%s5567_s23 + $0x9c] sm:$0xe]  ;;  %v3489_v2 = vrot.slane %v3487_v63, 4  ;;  %v2577_v60 = vrot.slane %v2575_v6, 4  ;;  %v3493_v15 = vshll.u32 %v6738_v50, 16 }
 0x21c   : > { %v3480_v59 = vor.u32 %v3479_v35, %v3476_v21  ;;  %v3947_v58 = vsel %vm5774_vm6, %v5166_v23, %v3946_v38  ;;  %v3950_v12 = vsel %vm5774_vm6, %v3948_v17, %v3949_v13  ;;  %v5102_v13 = vld [vmem:[%s5567_s23 + $0xb4] sm:$0xf] }
 0x21d   : > { %vm4252_vm11 = vcmp.ge.f32.partialorder %v4220_v42, 0.0  ;;  %v4284_v28 = vmul.f32 0.2, %v4220_v42  ;;  %v4111_v49 = vpop.f32.mrf.mxu0  ;;  %v4006_v21 = vunpack.c.l.b16 %v3947_v58  ;;  %v4007_v23 = vunpack.c.l.b16 %v3950_v12 }
 0x21e   : > { %v3701_v48 = vpop.f32.mrf.mxu3  ;;  %v2738_v52 = vpop.f32.mrf.mxu1  ;;  %v3481_v35 = vrot.slane %v3480_v59, 4  ;;  %v5151_v59 = vld [vmem:[%s5567_s23 + $0xa8] sm:$0xe]  ;;  %v3498_v58 = vshrl.u32 %v5102_v13, 16  ;;  %v3501_v12 = vshll.u32 %v5102_v13, 16 }
 0x21f   : > { %v4316_v62 = vsel %vm4252_vm11, %v4220_v42, %v4284_v28  ;;  %v3775_v8 = vadd.f32 %v3701_v48, %v3109_v19  ;;  %v3597_v42 = vunpack.c.l.b16 %v3472_v5  ;;  %v4907_v19 = vrot.slane %v4891_v37, 9 }
 0x220   : > { %v4348_v39 = vpack.c.bf16 %v4316_v62, %v4316_v62  ;;  %5193 = vmatmul.msk.bf16.gmra.mxu0 %vm693_vm3, %v4026_v24  ;;  %v2578_v24 = vrot.slane %v5379_v53, 5  ;;  %v3490_v28 = vor.u32 %v3489_v2, %v6732_v51  ;;  %v6769_v53 = vld [vmem:[%s5567_s23 + $0xb8] sm:$0xf] }
 0x221   : > { %v4185_v43 = vadd.f32 %v4111_v49, %v3775_v8  ;;  %v3037_v11 = vpop.f32.mrf.mxu2  ;;  %4934 = vmatmul.msk.bf16.gmra.mxu1 %vm693_vm3, %v2649_v57  ;;  %v3617_v5 = vpack.c.b16 %v3597_v42, %v3596_v25  ;;  %v2576_v62 = vsel %vm5774_vm6, %v4907_v19, %v2575_v6  ;;  %v2809_v25 = vadd.f32 %v2738_v52, %v6132_v44 }
 0x222   : > { %4381 = vst.msk [vmem:[%s6670_s11 + $0xc] sm:$0xf] %vm4377_vm8, %v4348_v39  ;;  %v3110_v63 = vadd.f32 %v3037_v11, %v2808_v46  ;;  %v2579_v38 = vsel %vm5774_vm6, %v2577_v60, %v2578_v24  ;;  %v3491_v2 = vrot.slane %v3490_v28, 4  ;;  %v2630_v17 = vunpack.c.l.b16 %v2576_v62 }
 0x223   : > { %v4221_v22 = vadd.f32 %v6637_v4, %v4185_v43  ;;  %v3495_v43 = vrot.slane %v3493_v15, 5  ;;  %v2631_v6 = vunpack.c.l.b16 %v2579_v38  ;;  %v3486_v19 = vsel %vm5579_vm2, %v3481_v35, %v6732_v51 }
 0x224   : > { %v4027_v60 = vpack.c.b16 %v4007_v23, %v4006_v21  ;;  %v3953_v52 = vrot.slane %v6715_v40, 5  ;;  %v4892_v40 = vld [vmem:[%s5567_s23 + $0xa8] sm:$0xe]  ;;  %v3507_v62 = vshll.u32 %v6769_v53, 16  ;;  %v3511_v38 = vshrl.u32 %v6769_v53, 16 }
 0x225   : > { %vm4253_vm12 = vcmp.ge.f32.partialorder %v4221_v22, 0.0  ;;  %v4285_v49 = vmul.f32 0.2, %v4221_v22  ;;  %v4113_v57 = vpop.f32.mrf.mxu0  ;;  %v3496_v44 = vsel %vm5579_vm2, %v3491_v2, %v3495_v43  ;;  %v5167_v21 = vrot.slane %v5151_v59, 9  ;;  %v5260_v43 = vld [vmem:[%s5567_s23 + $0xa8] sm:$0xff] }
 0x226   : > { %v3703_v48 = vpop.f32.mrf.mxu3  ;;  %5058 = vmatmul.msk.bf16.gmra.mxu2 %vm693_vm3, %v5259_v55  ;;  %v2740_v1 = vpop.f32.mrf.mxu1  ;;  %v3956_v35 = vrot.slane %v6738_v50, 5 }
 0x227   : > { %v4317_v8 = vsel %vm4253_vm12, %v4221_v22, %v4285_v49  ;;  %v3776_v37 = vadd.f32 %v3703_v48, %v3110_v63  ;;  %v2650_v63 = vpack.c.b16 %v2631_v6, %v2630_v17  ;;  %v3598_v49 = vunpack.c.l.b16 %v3486_v19  ;;  %v5381_v6 = vld [vmem:[%s5567_s23 + $0xb0] sm:$0x1] }
 0x228   : > { %v4349_v39 = vpack.c.bf16 %v4317_v8, %v4317_v8  ;;  %v2810_v23 = vadd.f32 %v2740_v1, %v6145_v33  ;;  %v2585_v13 = vrot.slane %v5381_v6, 5  ;;  %v6785_v19 = vrot.slane %v3507_v62, 5  ;;  %v6788_v1 = vld [vmem:[%s5567_s23 + $0xbc] sm:$0x1]  ;;  %v5152_v6 = vld [vmem:[%s5567_s23 + $0xb4] sm:$0xe] }
 0x229   : > { %v4186_v46 = vadd.f32 %v4113_v57, %v3776_v37  ;;  %v3040_v11 = vpop.f32.mrf.mxu2  ;;  %v5380_v57 = vld [vmem:[%s5567_s23 + $0xac] sm:$0xf]  ;;  %v3599_v37 = vunpack.c.l.b16 %v3496_v44  ;;  %v3513_v33 = vrot.slane %v3511_v38, 4 }
 0x22a   : > { %4382 = vst.msk [vmem:[%s6670_s11 + $0x10] sm:$0xf] %vm4377_vm8, %v4349_v39  ;;  %v3111_v42 = vadd.f32 %v3040_v11, %v2809_v25  ;;  %v2582_v51 = vrot.slane %v5380_v57, 5  ;;  %v3500_v25 = vrot.slane %v3498_v58, 4  ;;  %v4908_v11 = vrot.slane %v4892_v40, 9 }
 0x22b   : > { %v4222_v55 = vadd.f32 %v6637_v4, %v4186_v46  ;;  %5134 = vmatmul.msk.bf16.gmra.mxu3 %vm693_vm3, %v3617_v5  ;;  %v3955_v46 = vrot.slane %v3953_v52, 4  ;;  %v3618_v59 = vpack.c.b16 %v3599_v37, %v3598_v49  ;;  %v3517_v40 = vshll.u32 %v6788_v1, 16 }
 0x22c   : > { %v2584_v17 = vrot.slane %v2582_v51, 4 }
 0x22d   : > { %vm4254_vm13 = vcmp.ge.f32.partialorder %v4222_v55, 0.0  ;;  %v4286_v24 = vmul.f32 0.2, %v4222_v55  ;;  %v4116_v22 = vpop.f32.mrf.mxu0 }
 0x22e   : > { %v3706_v28 = vpop.f32.mrf.mxu3  ;;  %v2743_v15 = vpop.f32.mrf.mxu1  ;;  %v2586_v57 = vsel %vm5774_vm6, %v2584_v17, %v2585_v13 }
 0x22f   : > { %v4318_v48 = vsel %vm4254_vm13, %v4222_v55, %v4286_v24  ;;  %v3777_v5 = vadd.f32 %v3706_v28, %v3111_v42  ;;  %v3503_v55 = vrot.slane %v3501_v12, 5  ;;  %v3954_v24 = vsel %vm5774_vm6, %v5167_v21, %v3953_v52 }
 0x230   : > { %v4350_v8 = vpack.c.bf16 %v4318_v48, %v4318_v48  ;;  %5194 = vmatmul.msk.bf16.gmra.mxu0 %vm693_vm3, %v4027_v60  ;;  %v2583_v28 = vsel %vm5774_vm6, %v4908_v11, %v2582_v51  ;;  %v4008_v38 = vunpack.c.l.b16 %v3954_v24  ;;  %v2811_v37 = vadd.f32 %v2743_v15, %v6158_v61 }
 0x231   : > { %v4187_v39 = vadd.f32 %v4116_v22, %v3777_v5  ;;  %v3042_v2 = vpop.f32.mrf.mxu2  ;;  %4935 = vmatmul.msk.bf16.gmra.mxu1 %vm693_vm3, %v2650_v63  ;;  %v3957_v22 = vsel %vm5774_vm6, %v3955_v46, %v3956_v35  ;;  %v3504_v12 = vor.u32 %v3503_v55, %v3500_v25  ;;  %v3514_v5 = vor.u32 %v3513_v33, %v6785_v19 }
 0x232   : > { %4383 = vst.msk [vmem:[%s6670_s11 + $0x14] sm:$0xf] %vm4377_vm8, %v4350_v8  ;;  %v3112_v50 = vadd.f32 %v3042_v2, %v2810_v23  ;;  %v4009_v49 = vunpack.c.l.b16 %v3957_v22  ;;  %v2632_v21 = vunpack.c.l.b16 %v2583_v28  ;;  %v2633_v35 = vunpack.c.l.b16 %v2586_v57  ;;  %v6806_v2 = vld [vmem:[%s5567_s23 + $0xc4] sm:$0xf]  ;;  %v5382_v22 = vld [vmem:[%s5567_s23 + $0xb8] sm:$0xf] }
 0x233   : > { %v4223_v42 = vadd.f32 %v6637_v4, %v4187_v39  ;;  %v5105_v39 = vld [vmem:[%s5567_s23 + $0xc0] sm:$0xf]  ;;  %v3505_v23 = vrot.slane %v3504_v12, 4  ;;  %v3515_v25 = vrot.slane %v3514_v5, 4  ;;  %v3519_v11 = vrot.slane %v3517_v40, 5 }
 0x234   : > { %v4028_v17 = vpack.c.b16 %v4009_v49, %v4008_v38  ;;  %v3960_v61 = vrot.slane %v6769_v53, 5  ;;  %v3522_v15 = vshrl.u32 %v5105_v39, 16  ;;  %v3525_v13 = vshll.u32 %v5105_v39, 16  ;;  %v5383_v39 = vld [vmem:[%s5567_s23 + $0xbc] sm:$0x1] }
 0x235   : > { %vm4255_vm14 = vcmp.ge.f32.partialorder %v4223_v42, 0.0  ;;  %v4287_v60 = vmul.f32 0.2, %v4223_v42  ;;  %v4118_v44 = vpop.f32.mrf.mxu0  ;;  %v3531_v33 = vshll.u32 %v6806_v2, 16  ;;  %v3510_v24 = vsel %vm5579_vm2, %v3505_v23, %v6785_v19 }
 0x236   : > { %v3708_v63 = vpop.f32.mrf.mxu3  ;;  %5059 = vmatmul.msk.bf16.gmra.mxu2 %vm693_vm3, %v5260_v43  ;;  %v2745_v58 = vpop.f32.mrf.mxu1  ;;  %v3535_v53 = vshrl.u32 %v6806_v2, 16  ;;  %v3520_v57 = vsel %vm5579_vm2, %v3515_v25, %v3519_v11  ;;  %v5168_v12 = vrot.slane %v5152_v6, 9  ;;  %v3963_v5 = vrot.slane %v6788_v1, 5 }
 0x237   : > { %v4319_v48 = vsel %vm4255_vm14, %v4223_v42, %v4287_v60  ;;  %v3778_v52 = vadd.f32 %v3708_v63, %v3112_v50  ;;  %v2651_v50 = vpack.c.b16 %v2633_v35, %v2632_v21  ;;  %v2589_v63 = vrot.slane %v5382_v22, 5 }
 0x238   : > { %v4351_v62 = vpack.c.bf16 %v4319_v48, %v4319_v48  ;;  %v4893_v48 = vld [vmem:[%s5567_s23 + $0xb4] sm:$0xe]  ;;  %v3524_v19 = vrot.slane %v3522_v15, 4  ;;  %v3527_v40 = vrot.slane %v3525_v13, 5  ;;  %v2812_v38 = vadd.f32 %v2745_v58, %v6172_v10  ;;  %v6833_v58 = vld [vmem:[%s5567_s23 + $0xc8] sm:$0x1] }
 0x239   : > { %v4188_v8 = vadd.f32 %v4118_v44, %v3778_v52  ;;  %v3045_v51 = vpop.f32.mrf.mxu2  ;;  %v4909_v21 = vrot.slane %v4893_v48, 9  ;;  %v2591_v35 = vrot.slane %v2589_v63, 4  ;;  %v2592_v23 = vrot.slane %v5383_v39, 5  ;;  %v5108_v39 = vld [vmem:[%s5567_s23 + $0xcc] sm:$0xf] }
 0x23a   : > { %4384 = vst.msk [vmem:[%s6670_s11 + $0x18] sm:$0xf] %vm4377_vm8, %v4351_v62  ;;  %v3113_v46 = vadd.f32 %v3045_v51, %v2811_v37  ;;  %v3962_v37 = vrot.slane %v3960_v61, 4  ;;  %v6826_v51 = vrot.slane %v3531_v33, 5  ;;  %v3537_v1 = vrot.slane %v3535_v53, 4 }
 0x23b   : > { %v4224_v43 = vadd.f32 %v6637_v4, %v4188_v8  ;;  %5135 = vmatmul.msk.bf16.gmra.mxu3 %vm693_vm3, %v3618_v59  ;;  %v5261_v8 = vld [vmem:[%s5567_s23 + $0xb4] sm:$0xff]  ;;  %v3600_v25 = vunpack.c.l.b16 %v3510_v24  ;;  %v3601_v10 = vunpack.c.l.b16 %v3520_v57  ;;  %v3528_v11 = vor.u32 %v3527_v40, %v3524_v19 }
 0x23c   : > { %v3961_v15 = vsel %vm5774_vm6, %v5168_v12, %v3960_v61  ;;  %v3964_v13 = vsel %vm5774_vm6, %v3962_v37, %v3963_v5  ;;  %v2593_v33 = vsel %vm5774_vm6, %v2591_v35, %v2592_v23  ;;  %v3541_v24 = vshll.u32 %v6833_v58, 16  ;;  %v5153_v37 = vld [vmem:[%s5567_s23 + $0xc0] sm:$0xe] }
 0x23d   : > { %vm4256_vm15 = vcmp.ge.f32.partialorder %v4224_v43, 0.0  ;;  %v4288_v55 = vmul.f32 0.2, %v4224_v43  ;;  %v4121_v42 = vpop.f32.mrf.mxu0  ;;  %v3619_v53 = vpack.c.b16 %v3601_v10, %v3600_v25  ;;  %v4011_v57 = vunpack.c.l.b16 %v3964_v13 }
 0x23e   : > { %v3711_v60 = vpop.f32.mrf.mxu3  ;;  %v2748_v44 = vpop.f32.mrf.mxu1  ;;  %v3529_v12 = vrot.slane %v3528_v11, 4  ;;  %v2635_v40 = vunpack.c.l.b16 %v2593_v33  ;;  %v4894_v33 = vld [vmem:[%s5567_s23 + $0xc0] sm:$0xe] }
 0x23f   : > { %v4320_v59 = vsel %vm4256_vm15, %v4224_v43, %v4288_v55  ;;  %v3779_v28 = vadd.f32 %v3711_v60, %v3113_v46  ;;  %v3538_v60 = vor.u32 %v3537_v1, %v6826_v51 }
 0x240   : > { %v4352_v52 = vpack.c.bf16 %v4320_v59, %v4320_v59  ;;  %5195 = vmatmul.msk.bf16.gmra.mxu0 %vm693_vm3, %v4028_v17 }
 0x241   : > { %v4189_v62 = vadd.f32 %v4121_v42, %v3779_v28  ;;  %v3047_v49 = vpop.f32.mrf.mxu2  ;;  %4936 = vmatmul.msk.bf16.gmra.mxu1 %vm693_vm3, %v2651_v50  ;;  %v2590_v50 = vsel %vm5774_vm6, %v4909_v21, %v2589_v63  ;;  %v4010_v28 = vunpack.c.l.b16 %v3961_v15  ;;  %v3967_v21 = vrot.slane %v6806_v2, 5 }
 0x242   : > { %4385 = vst.msk [vmem:[%s6670_s11 + $0x1c] sm:$0xf] %vm4377_vm8, %v4352_v52  ;;  %v3114_v46 = vadd.f32 %v3047_v49, %v2812_v38  ;;  %v7044_v52 = vld [vmem:[#allocation5_spill] sm:$0xff]  ;;  %v2634_v19 = vunpack.c.l.b16 %v2590_v50  ;;  %v3543_v38 = vrot.slane %v3541_v24, 5  ;;  %v3970_v2 = vrot.slane %v6833_v58, 5 }
 0x243   : > { %v4225_v43 = vadd.f32 %v6637_v4, %v4189_v62  ;;  %v2813_v63 = vadd.f32 %v2748_v44, %v7044_v52  ;;  %v3539_v62 = vrot.slane %v3538_v60, 4  ;;  %v4029_v35 = vpack.c.b16 %v4011_v57, %v4010_v28  ;;  %v5262_v57 = vld [vmem:[%s5567_s23 + $0xc0] sm:$0xff] }
 0x244   : > { %v2652_v1 = vpack.c.b16 %v2635_v40, %v2634_v19  ;;  %v3969_v50 = vrot.slane %v3967_v21, 4  ;;  %v3546_v60 = vshrl.u32 %v5108_v39, 16  ;;  %v3549_v24 = vshll.u32 %v5108_v39, 16  ;;  %v5110_v39 = vld [vmem:[%s5567_s23 + $0xd4] sm:$0x1] }
 0x245   : > { %vm4257_vm0 = vcmp.ge.f32.partialorder %v4225_v43, 0.0  ;;  %v4289_v17 = vmul.f32 0.2, %v4225_v43  ;;  %v4123_v6 = vpop.f32.mrf.mxu0  ;;  %v3544_v11 = vsel %vm5579_vm2, %v3539_v62, %v3543_v38 }
 0x246   : > { %v3713_v55 = vpop.f32.mrf.mxu3  ;;  %5060 = vmatmul.msk.bf16.gmra.mxu2 %vm693_vm3, %v5261_v8  ;;  %v2750_v42 = vpop.f32.mrf.mxu1  ;;  %v3551_v38 = vrot.slane %v3549_v24, 5 }
 0x247   : > { %v4321_v22 = vsel %vm4257_vm0, %v4225_v43, %v4289_v17  ;;  %v3780_v61 = vadd.f32 %v3713_v55, %v3114_v46  ;;  %v3534_v43 = vsel %vm5579_vm2, %v3529_v12, %v6826_v51  ;;  %v6858_v46 = vld [vmem:[%s5567_s23 + $0xd0] sm:$0xf]  ;;  %v5169_v17 = vrot.slane %v5153_v37, 9 }
 0x248   : > { %v4353_v59 = vpack.c.bf16 %v4321_v22, %v4321_v22  ;;  %v3555_v22 = vshll.u32 %v6858_v46, 16  ;;  %v2814_v58 = vadd.f32 %v2750_v42, %v6219_v45  ;;  %v3602_v28 = vunpack.c.l.b16 %v3534_v43 }
 0x249   : > { %v4190_v48 = vadd.f32 %v4123_v6, %v3780_v61  ;;  %v3050_v5 = vpop.f32.mrf.mxu2  ;;  %v5384_v6 = vld [vmem:[%s5567_s23 + $0xc4] sm:$0xf]  ;;  %v3559_v61 = vshrl.u32 %v6858_v46, 16  ;;  %v3603_v12 = vunpack.c.l.b16 %v3544_v11  ;;  %v3968_v62 = vsel %vm5774_vm6, %v5169_v17, %v3967_v21 }
 0x24a   : > { %4386 = vst.msk [vmem:[%s6670_s11 + $0x20] sm:$0xf] %vm4377_vm8, %v4353_v59  ;;  %v3115_v8 = vadd.f32 %v3050_v5, %v2813_v63  ;;  %v2596_v15 = vrot.slane %v5384_v6, 5  ;;  %v5385_v63 = vld [vmem:[%s5567_s23 + $0xc8] sm:$0x1]  ;;  %v3971_v45 = vsel %vm5774_vm6, %v3969_v50, %v3970_v2  ;;  %v3548_v42 = vrot.slane %v3546_v60, 4 }
 0x24b   : > { %v4226_v49 = vadd.f32 %v6637_v4, %v4190_v48  ;;  %5136 = vmatmul.msk.bf16.gmra.mxu3 %vm693_vm3, %v3619_v53  ;;  %v4910_v48 = vrot.slane %v4894_v33, 9  ;;  %v2599_v5 = vrot.slane %v5385_v63, 5  ;;  %v4012_v17 = vunpack.c.l.b16 %v3968_v62 }
 0x24c   : > { %v2598_v52 = vrot.slane %v2596_v15, 4  ;;  %v4013_v2 = vunpack.c.l.b16 %v3971_v45  ;;  %v3565_v50 = vshll.u32 %v5110_v39, 16 }
 0x24d   : > { %vm4258_vm1 = vcmp.ge.f32.partialorder %v4226_v49, 0.0  ;;  %v4290_v44 = vmul.f32 0.2, %v4226_v49  ;;  %v4126_v23 = vpop.f32.mrf.mxu0  ;;  %v2597_v21 = vsel %vm5774_vm6, %v4910_v48, %v2596_v15 }
 0x24e   : > { %v3716_v25 = vpop.f32.mrf.mxu3  ;;  %v2753_v10 = vpop.f32.mrf.mxu1  ;;  %v2600_v43 = vsel %vm5774_vm6, %v2598_v52, %v2599_v5  ;;  %v2636_v24 = vunpack.c.l.b16 %v2597_v21 }
 0x24f   : > { %v4322_v13 = vsel %vm4258_vm1, %v4226_v49, %v4290_v44  ;;  %v3781_v55 = vadd.f32 %v3716_v25, %v3115_v8  ;;  %v3557_v49 = vrot.slane %v3555_v22, 5  ;;  %v3561_v8 = vrot.slane %v3559_v61, 4 }
 0x250   : > { %v4354_v51 = vpack.c.bf16 %v4322_v13, %v4322_v13  ;;  %5196 = vmatmul.msk.bf16.gmra.mxu0 %vm693_vm3, %v4029_v35  ;;  %v3552_v13 = vor.u32 %v3551_v38, %v3548_v42  ;;  %v2815_v60 = vadd.f32 %v2753_v10, %v6230_v54  ;;  %v2637_v22 = vunpack.c.l.b16 %v2600_v43  ;;  %v5154_v54 = vld [vmem:[%s5567_s23 + $0xcc] sm:$0xe] }
 0x251   : > { %v4191_v53 = vadd.f32 %v4126_v23, %v3781_v55  ;;  %v3052_v59 = vpop.f32.mrf.mxu2  ;;  %4937 = vmatmul.msk.bf16.gmra.mxu1 %vm693_vm3, %v2652_v1  ;;  %v3620_v23 = vpack.c.b16 %v3603_v12, %v3602_v28  ;;  %v3562_v55 = vor.u32 %v3561_v8, %v3557_v49  ;;  %v3567_v28 = vrot.slane %v3565_v50, 5  ;;  %v7045_v8 = vld [vmem:[#allocation6_spill] sm:$0xff] }
 0x252   : > { %4387 = vst.msk [vmem:[%s6670_s11 + $0x24] sm:$0xf] %vm4377_vm8, %v4354_v51  ;;  %v3116_v40 = vadd.f32 %v3052_v59, %v2814_v58  ;;  %v3553_v58 = vrot.slane %v3552_v13, 4  ;;  %v2653_v48 = vpack.c.b16 %v2637_v22, %v2636_v24  ;;  %v3974_v10 = vrot.slane %v6858_v46, 5 }
 0x253   : > { %v4227_v19 = vadd.f32 %v6637_v4, %v4191_v53  ;;  %v4030_v53 = vpack.c.b16 %v4013_v2, %v4012_v17  ;;  %v3563_v59 = vrot.slane %v3562_v55, 4  ;;  %v5170_v42 = vrot.slane %v5154_v54, 9 }
 0x254   : > { %v3558_v62 = vsel %vm5579_vm2, %v3553_v58, %v3557_v49 }
 0x255   : > { %vm4259_vm4 = vcmp.ge.f32.partialorder %v4227_v19, 0.0  ;;  %v4291_v37 = vmul.f32 0.2, %v4227_v19  ;;  %v4128_v35 = vpop.f32.mrf.mxu0  ;;  %v3568_v45 = vsel %vm5579_vm2, %v3563_v59, %v3567_v28 }
 0x256   : > { %v3718_v44 = vpop.f32.mrf.mxu3  ;;  %5061 = vmatmul.msk.bf16.gmra.mxu2 %vm693_vm3, %v5262_v57  ;;  %v2755_v1 = vpop.f32.mrf.mxu1  ;;  %v3605_v49 = vunpack.c.l.b16 %v3568_v45 }
 0x257   : > { %v4323_v25 = vsel %vm4259_vm4, %v4227_v19, %v4291_v37  ;;  %v3782_v11 = vadd.f32 %v3718_v44, %v3116_v40  ;;  %v2816_v37 = vadd.f32 %v2755_v1, %v7045_v8  ;;  %v3977_v44 = vrot.slane %v5110_v39, 5 }
 0x258   : > { %v4355_v6 = vpack.c.bf16 %v4323_v25, %v4323_v25  ;;  %v3604_v25 = vunpack.c.l.b16 %v3558_v62  ;;  %v3975_v1 = vsel %vm5774_vm6, %v5170_v42, %v3974_v10 }
 0x259   : > { %v4192_v33 = vadd.f32 %v4128_v35, %v3782_v11  ;;  %v3055_v51 = vpop.f32.mrf.mxu2  ;;  %v3976_v35 = vrot.slane %v3974_v10, 4 }
 0x25a   : > { %4388 = vst.msk [vmem:[%s6670_s11 + $0x28] sm:$0xf] %vm4377_vm8, %v4355_v6  ;;  %v3117_v61 = vadd.f32 %v3055_v51, %v2815_v60  ;;  %v3621_v55 = vpack.c.b16 %v3605_v49, %v3604_v25 }
 0x25b   : > { %v4228_v15 = vadd.f32 %v6637_v4, %v4192_v33  ;;  %5137 = vmatmul.msk.bf16.gmra.mxu3 %vm693_vm3, %v3620_v23  ;;  %v5263_v23 = vld [vmem:[%s5567_s23 + $0xcc] sm:$0xff]  ;;  %v3978_v17 = vsel %vm5774_vm6, %v3976_v35, %v3977_v44  ;;  %v4014_v33 = vunpack.c.l.b16 %v3975_v1 }
 0x25c   : > { %v4015_v60 = vunpack.c.l.b16 %v3978_v17 }
 0x25d   : > { %vm4260_vm5 = vcmp.ge.f32.partialorder %v4228_v15, 0.0  ;;  %v4292_v57 = vmul.f32 0.2, %v4228_v15  ;;  %v4131_v12 = vpop.f32.mrf.mxu0 }
 0x25e   : > { %v3721_v52 = vpop.f32.mrf.mxu3  ;;  %v2758_v63 = vpop.f32.mrf.mxu1 }
 0x25f   : > { %v4324_v5 = vsel %vm4260_vm5, %v4228_v15, %v4292_v57  ;;  %v3783_v19 = vadd.f32 %v3721_v52, %v3117_v61  ;;  %v2817_v24 = vadd.f32 %v2758_v63, %v6266_v27  ;;  %v4031_v61 = vpack.c.b16 %v4015_v60, %v4014_v33 }
 0x260   : > { %v4356_v40 = vpack.c.bf16 %v4324_v5, %v4324_v5  ;;  %5197 = vmatmul.msk.bf16.gmra.mxu0 %vm693_vm3, %v4030_v53 }
 0x261   : > { %v4193_v38 = vadd.f32 %v4131_v12, %v3783_v19  ;;  %v3057_v46 = vpop.f32.mrf.mxu2  ;;  %4938 = vmatmul.msk.bf16.gmra.mxu1 %vm693_vm3, %v2653_v48 }
 0x262   : > { %4389 = vst.msk [vmem:[%s6670_s11 + $0x2c] sm:$0xf] %vm4377_vm8, %v4356_v40  ;;  %v3118_v43 = vadd.f32 %v3057_v46, %v2816_v37 }
 0x263   : > { %v4229_v21 = vadd.f32 %v6637_v4, %v4193_v38 }
 0x265   : > { %vm4261_vm7 = vcmp.ge.f32.partialorder %v4229_v21, 0.0  ;;  %v4293_v32 = vmul.f32 0.2, %v4229_v21  ;;  %v4133_v11 = vpop.f32.mrf.mxu0 }
 0x266   : > { %v3723_v2 = vpop.f32.mrf.mxu3  ;;  %5062 = vmatmul.msk.bf16.gmra.mxu2 %vm693_vm3, %v5263_v23  ;;  %v2760_v39 = vpop.f32.mrf.mxu1 }
 0x267   : > { %v4325_v6 = vsel %vm4261_vm7, %v4229_v21, %v4293_v32  ;;  %v3784_v13 = vadd.f32 %v3723_v2, %v3118_v43  ;;  %v2818_v54 = vadd.f32 %v2760_v39, %v6290_v34 }
 0x268   : > { %v4357_v50 = vpack.c.bf16 %v4325_v6, %v4325_v6 }
 0x269   : > { %v4194_v51 = vadd.f32 %v4133_v11, %v3784_v13  ;;  %v3060_v22 = vpop.f32.mrf.mxu2 }
 0x26a   : > { %4390 = vst.msk [vmem:[%s6670_s11 + $0x30] sm:$0xf] %vm4377_vm8, %v4357_v50  ;;  %v3119_v26 = vadd.f32 %v3060_v22, %v2817_v24 }
 0x26b   : > { %v4230_v15 = vadd.f32 %v6637_v4, %v4194_v51  ;;  %5138 = vmatmul.msk.bf16.gmra.mxu3 %vm693_vm3, %v3621_v55 }
 0x26d   : > { %vm4262_vm2 = vcmp.ge.f32.partialorder %v4230_v15, 0.0  ;;  %v4294_v53 = vmul.f32 0.2, %v4230_v15  ;;  %v4136_v58 = vpop.f32.mrf.mxu0 }
 0x26e   : > { %v3726_v59 = vpop.f32.mrf.mxu3  ;;  %v2763_v28 = vpop.f32.mrf.mxu1 }
 0x26f   : > { %v4326_v57 = vsel %vm4262_vm2, %v4230_v15, %v4294_v53  ;;  %v3785_v12 = vadd.f32 %v3726_v59, %v3119_v26  ;;  %v2819_v37 = vadd.f32 %v2763_v28, %v6309_v31  ;;  %v6928_v31 = vld [vmem:[%s7033_s2] ss:$0 sm:$0xff] }
 0x270   : > { %v4358_v48 = vpack.c.bf16 %v4326_v57, %v4326_v57  ;;  %5198 = vmatmul.msk.bf16.gmra.mxu0 %vm693_vm3, %v4031_v61 }
 0x271   : > { %v4195_v27 = vadd.f32 %v4136_v58, %v3785_v12  ;;  %v3062_v10 = vpop.f32.mrf.mxu2 }
 0x272   : > { %4391 = vst.msk [vmem:[%s6670_s11 + $0x34] sm:$0xf] %vm4377_vm8, %v4358_v48  ;;  %v3120_v63 = vadd.f32 %v3062_v10, %v2818_v54 }
 0x273   : > { %v4231_v52 = vadd.f32 %v6637_v4, %v4195_v27 }
 0x275   : > { %vm4263_vm6 = vcmp.ge.f32.partialorder %v4231_v52, 0.0  ;;  %v4295_v5 = vmul.f32 0.2, %v4231_v52  ;;  %v4138_v19 = vpop.f32.mrf.mxu0 }
 0x276   : > { %v3728_v40 = vpop.f32.mrf.mxu3  ;;  %v2765_v62 = vpop.f32.mrf.mxu1 }
 0x277   : > { %v4327_v45 = vsel %vm4263_vm6, %v4231_v52, %v4295_v5  ;;  %v3786_v42 = vadd.f32 %v3728_v40, %v3120_v63  ;;  %v2820_v1 = vadd.f32 %v2765_v62, %v6333_v0 }
 0x278   : > { %v4359_v38 = vpack.c.bf16 %v4327_v45, %v4327_v45 }
 0x279   : > { %v4196_v8 = vadd.f32 %v4138_v19, %v3786_v42  ;;  %v3065_v34 = vpop.f32.mrf.mxu2 }
 0x27a   : > { %4392 = vst.msk [vmem:[%s6670_s11 + $0x38] sm:$0xf] %vm4377_vm8, %v4359_v38  ;;  %v3121_v35 = vadd.f32 %v3065_v34, %v2819_v37 }
 0x27b   : > { %v4232_v46 = vadd.f32 %v6637_v4, %v4196_v8 }
 0x27d   : > { %vm4264_vm3 = vcmp.ge.f32.partialorder %v4232_v46, 0.0  ;;  %v4296_v44 = vmul.f32 0.2, %v4232_v46  ;;  %v4141_v23 = vpop.f32.mrf.mxu0 }
 0x27e   : > { %v3731_v21 = vpop.f32.mrf.mxu3  ;;  %v2768_v43 = vpop.f32.mrf.mxu1 }
 0x27f   : > { %v4328_v25 = vsel %vm4264_vm3, %v4232_v46, %v4296_v44  ;;  %v3787_v49 = vadd.f32 %v3731_v21, %v3121_v35  ;;  %v2821_v51 = vadd.f32 %v2768_v43, %v6352_v56 }
 0x280   : > { %v4360_v32 = vpack.c.bf16 %v4328_v25, %v4328_v25 }
 0x281   : > { %v4197_v11 = vadd.f32 %v4141_v23, %v3787_v49  ;;  %v3067_v17 = vpop.f32.mrf.mxu2 }
 0x282   : > { %4393 = vst.msk [vmem:[%s6670_s11 + $0x3c] sm:$0xf] %vm4377_vm8, %v4360_v32  ;;  %v3122_v2 = vadd.f32 %v3067_v17, %v2820_v1 }
 0x283   : > { %v4233_v4 = vadd.f32 %v6928_v31, %v4197_v11 }
 0x285   : > { %vm4265_vm9 = vcmp.ge.f32.partialorder %v4233_v4, 0.0  ;;  %v4297_v39 = vmul.f32 0.2, %v4233_v4  ;;  %v4143_v6 = vpop.f32.mrf.mxu0 }
 0x286   : > { %v3733_v13 = vpop.f32.mrf.mxu3  ;;  %v2770_v55 = vpop.f32.mrf.mxu1 }
 0x287   : > { %v4329_v50 = vsel %vm4265_vm9, %v4233_v4, %v4297_v39  ;;  %v3788_v33 = vadd.f32 %v3733_v13, %v3122_v2  ;;  %v2822_v48 = vadd.f32 %v2770_v55, %v6376_v20 }
 0x288   : > { %v4361_v0 = vpack.c.bf16 %v4329_v50, %v4329_v50 }
 0x289   : > { %v4198_v60 = vadd.f32 %v4143_v6, %v3788_v33  ;;  %v3070_v24 = vpop.f32.mrf.mxu2 }
 0x28a   : > { %4394 = vst.msk [vmem:[%s6670_s11 + $0x40] sm:$0xf] %vm4377_vm8, %v4361_v0  ;;  %v3123_v15 = vadd.f32 %v3070_v24, %v2821_v51 }
 0x28b   : > { %v4234_v22 = vadd.f32 %v6928_v31, %v4198_v60 }
 0x28d   : > { %vm4266_vm10 = vcmp.ge.f32.partialorder %v4234_v22, 0.0  ;;  %v4298_v26 = vmul.f32 0.2, %v4234_v22  ;;  %v4146_v61 = vpop.f32.mrf.mxu0 }
 0x28e   : > { %v3736_v53 = vpop.f32.mrf.mxu3  ;;  %v2773_v58 = vpop.f32.mrf.mxu1 }
 0x28f   : > { %v4330_v59 = vsel %vm4266_vm10, %v4234_v22, %v4298_v26  ;;  %v3789_v28 = vadd.f32 %v3736_v53, %v3123_v15  ;;  %v2823_v42 = vadd.f32 %v2773_v58, %v6395_v3 }
 0x290   : > { %v4362_v57 = vpack.c.bf16 %v4330_v59, %v4330_v59 }
 0x291   : > { %v4199_v12 = vadd.f32 %v4146_v61, %v3789_v28  ;;  %v3072_v56 = vpop.f32.mrf.mxu2 }
 0x292   : > { %4395 = vst.msk [vmem:[%s6670_s11 + $0x44] sm:$0xf] %vm4377_vm8, %v4362_v57  ;;  %v3124_v54 = vadd.f32 %v3072_v56, %v2822_v48 }
 0x293   : > { %v4235_v27 = vadd.f32 %v6928_v31, %v4199_v12 }
 0x295   : > { %vm4267_vm11 = vcmp.ge.f32.partialorder %v4235_v27, 0.0  ;;  %v4299_v10 = vmul.f32 0.2, %v4235_v27  ;;  %v4148_v52 = vpop.f32.mrf.mxu0 }
 0x296   : > { %v3738_v63 = vpop.f32.mrf.mxu3  ;;  %v2775_v5 = vpop.f32.mrf.mxu1 }
 0x297   : > { %v4331_v19 = vsel %vm4267_vm11, %v4235_v27, %v4299_v10  ;;  %v3790_v40 = vadd.f32 %v3738_v63, %v3124_v54  ;;  %v2824_v25 = vadd.f32 %v2775_v5, %v6419_v18 }
 0x298   : > { %v4363_v62 = vpack.c.bf16 %v4331_v19, %v4331_v19 }
 0x299   : > { %v4200_v45 = vadd.f32 %v4148_v52, %v3790_v40  ;;  %v3075_v20 = vpop.f32.mrf.mxu2 }
 0x29a   : > { %4396 = vst.msk [vmem:[%s6670_s11 + $0x48] sm:$0xf] %vm4377_vm8, %v4363_v62  ;;  %v3125_v8 = vadd.f32 %v3075_v20, %v2823_v42 }
 0x29b   : > { %v4236_v38 = vadd.f32 %v6928_v31, %v4200_v45 }
 0x29d   : > { %vm4268_vm12 = vcmp.ge.f32.partialorder %v4236_v38, 0.0  ;;  %v4300_v37 = vmul.f32 0.2, %v4236_v38  ;;  %v4151_v34 = vpop.f32.mrf.mxu0 }
 0x29e   : > { %v3741_v46 = vpop.f32.mrf.mxu3  ;;  %v2778_v35 = vpop.f32.mrf.mxu1 }
 0x29f   : > { %v4332_v44 = vsel %vm4268_vm12, %v4236_v38, %v4300_v37  ;;  %v3791_v23 = vadd.f32 %v3741_v46, %v3125_v8  ;;  %v2825_v55 = vadd.f32 %v2778_v35, %v6438_v36  ;;  %v7046_v37 = vld [vmem:[#allocation7_spill] sm:$0xff] }
 0x2a0   : > { %v4364_v21 = vpack.c.bf16 %v4332_v44, %v4332_v44 }
 0x2a1   : > { %v4201_v43 = vadd.f32 %v4151_v34, %v3791_v23  ;;  %v3077_v3 = vpop.f32.mrf.mxu2 }
 0x2a2   : > { %4397 = vst.msk [vmem:[%s6670_s11 + $0x4c] sm:$0xf] %vm4377_vm8, %v4364_v21  ;;  %v3126_v32 = vadd.f32 %v3077_v3, %v2824_v25 }
 0x2a3   : > { %v4237_v49 = vadd.f32 %v6928_v31, %v4201_v43 }
 0x2a5   : > { %vm4269_vm13 = vcmp.ge.f32.partialorder %v4237_v49, 0.0  ;;  %v4301_v11 = vmul.f32 0.2, %v4237_v49  ;;  %v4153_v1 = vpop.f32.mrf.mxu0 }
 0x2a6   : > { %v3743_v17 = vpop.f32.mrf.mxu3  ;;  %v2780_v4 = vpop.f32.mrf.mxu1 }
 0x2a7   : > { %v4333_v2 = vsel %vm4269_vm13, %v4237_v49, %v4301_v11  ;;  %v3792_v39 = vadd.f32 %v3743_v17, %v3126_v32  ;;  %v2826_v53 = vadd.f32 %v2780_v4, %v6462_v47 }
 0x2a8   : > { %v4365_v6 = vpack.c.bf16 %v4333_v2, %v4333_v2 }
 0x2a9   : > { %v4202_v13 = vadd.f32 %v4153_v1, %v3792_v39  ;;  %v3080_v18 = vpop.f32.mrf.mxu2 }
 0x2aa   : > { %4398 = vst.msk [vmem:[%s6670_s11 + $0x50] sm:$0xf] %vm4377_vm8, %v4365_v6  ;;  %v3127_v33 = vadd.f32 %v3080_v18, %v2825_v55 }
 0x2ab   : > { %v4238_v50 = vadd.f32 %v6928_v31, %v4202_v13 }
 0x2ad   : > { %vm4270_vm14 = vcmp.ge.f32.partialorder %v4238_v50, 0.0  ;;  %v4302_v0 = vmul.f32 0.2, %v4238_v50  ;;  %v4156_v60 = vpop.f32.mrf.mxu0 }
 0x2ae   : > { %v3746_v51 = vpop.f32.mrf.mxu3  ;;  %v2783_v24 = vpop.f32.mrf.mxu1 }
 0x2af   : > { %v4334_v22 = vsel %vm4270_vm14, %v4238_v50, %v4302_v0  ;;  %v3793_v15 = vadd.f32 %v3746_v51, %v3127_v33  ;;  %v2827_v52 = vadd.f32 %v2783_v24, %v6481_v14 }
 0x2b0   : > { %v4366_v26 = vpack.c.bf16 %v4334_v22, %v4334_v22 }
 0x2b1   : > { %v4203_v61 = vadd.f32 %v4156_v60, %v3793_v15  ;;  %v3082_v36 = vpop.f32.mrf.mxu2 }
 0x2b2   : > { %4399 = vst.msk [vmem:[%s6670_s11 + $0x54] sm:$0xf] %vm4377_vm8, %v4366_v26  ;;  %v3128_v59 = vadd.f32 %v3082_v36, %v2826_v53 }
 0x2b3   : > { %v4239_v58 = vadd.f32 %v6928_v31, %v4203_v61 }
 0x2b5   : > { %vm4271_vm15 = vcmp.ge.f32.partialorder %v4239_v58, 0.0  ;;  %v4303_v28 = vmul.f32 0.2, %v4239_v58  ;;  %v4158_v57 = vpop.f32.mrf.mxu0 }
 0x2b6   : > { %v3748_v12 = vpop.f32.mrf.mxu3  ;;  %v2785_v48 = vpop.f32.mrf.mxu1 }
 0x2b7   : > { %v4335_v56 = vsel %vm4271_vm15, %v4239_v58, %v4303_v28  ;;  %v3794_v27 = vadd.f32 %v3748_v12, %v3128_v59  ;;  %v2828_v34 = vadd.f32 %v2785_v48, %v7046_v37 }
 0x2b8   : > { %v4367_v54 = vpack.c.bf16 %v4335_v56, %v4335_v56 }
 0x2b9   : > { %v4204_v10 = vadd.f32 %v4158_v57, %v3794_v27  ;;  %v3085_v47 = vpop.f32.mrf.mxu2 }
 0x2ba   : > { %4400 = vst.msk [vmem:[%s6670_s11 + $0x58] sm:$0xf] %vm4377_vm8, %v4367_v54  ;;  %v3129_v5 = vadd.f32 %v3085_v47, %v2827_v52 }
 0x2bb   : > { %v4240_v63 = vadd.f32 %v6928_v31, %v4204_v10 }
 0x2bd   : > { %vm4272_vm0 = vcmp.ge.f32.partialorder %v4240_v63, 0.0  ;;  %v4304_v19 = vmul.f32 0.2, %v4240_v63  ;;  %v4161_v40 = vpop.f32.mrf.mxu0 }
 0x2be   : > { %v3751_v62 = vpop.f32.mrf.mxu3  ;;  %v2788_v45 = vpop.f32.mrf.mxu1 }
 0x2bf   : > { %v4336_v42 = vsel %vm4272_vm0, %v4240_v63, %v4304_v19  ;;  %v3795_v20 = vadd.f32 %v3751_v62, %v3129_v5  ;;  %v2829_v11 = vadd.f32 %v2788_v45, %v6522_v41 }
 0x2c0   : > { %v4368_v38 = vpack.c.bf16 %v4336_v42, %v4336_v42 }
 0x2c1   : > { %v4205_v8 = vadd.f32 %v4161_v40, %v3795_v20  ;;  %v3087_v14 = vpop.f32.mrf.mxu2 }
 0x2c2   : > { %4401 = vst.msk [vmem:[%s6670_s11 + $0x5c] sm:$0xf] %vm4377_vm8, %v4368_v38  ;;  %v3130_v35 = vadd.f32 %v3087_v14, %v2828_v34 }
 0x2c3   : > { %v4241_v46 = vadd.f32 %v6928_v31, %v4205_v8 }
 0x2c5   : > { %vm4273_vm1 = vcmp.ge.f32.partialorder %v4241_v46, 0.0  ;;  %v4305_v44 = vmul.f32 0.2, %v4241_v46  ;;  %v4163_v23 = vpop.f32.mrf.mxu0 }
 0x2c6   : > { %v3753_v21 = vpop.f32.mrf.mxu3  ;;  %v2790_v43 = vpop.f32.mrf.mxu1 }
 0x2c7   : > { %v4337_v25 = vsel %vm4273_vm1, %v4241_v46, %v4305_v44  ;;  %v3796_v3 = vadd.f32 %v3753_v21, %v3130_v35  ;;  %v2830_v0 = vadd.f32 %v2790_v43, %v6543_v9 }
 0x2c8   : > { %v4369_v49 = vpack.c.bf16 %v4337_v25, %v4337_v25 }
 0x2c9   : > { %v4206_v32 = vadd.f32 %v4163_v23, %v3796_v3  ;;  %v3090_v1 = vpop.f32.mrf.mxu2 }
 0x2ca   : > { %4402 = vst.msk [vmem:[%s6670_s11 + $0x60] sm:$0xf] %vm4377_vm8, %v4369_v49  ;;  %v3131_v4 = vadd.f32 %v3090_v1, %v2829_v11 }
 0x2cb   : > { %v4242_v17 = vadd.f32 %v6928_v31, %v4206_v32 }
 0x2cd   : > { %vm4274_vm4 = vcmp.ge.f32.partialorder %v4242_v17, 0.0  ;;  %v4306_v2 = vmul.f32 0.2, %v4242_v17  ;;  %v4166_v39 = vpop.f32.mrf.mxu0 }
 0x2ce   : > { %v3756_v6 = vpop.f32.mrf.mxu3  ;;  %v2793_v18 = vpop.f32.mrf.mxu1 }
 0x2cf   : > { %v4338_v13 = vsel %vm4274_vm4, %v4242_v17, %v4306_v2  ;;  %v3797_v55 = vadd.f32 %v3756_v6, %v3131_v4  ;;  %v2831_v58 = vadd.f32 %v2793_v18, %v6561_v29 }
 0x2d0   : > { %v4370_v50 = vpack.c.bf16 %v4338_v13, %v4338_v13 }
 0x2d1   : > { %v4207_v33 = vadd.f32 %v4166_v39, %v3797_v55  ;;  %v3092_v41 = vpop.f32.mrf.mxu2 }
 0x2d2   : > { %4403 = vst.msk [vmem:[%s6670_s11 + $0x64] sm:$0xf] %vm4377_vm8, %v4370_v50  ;;  %v3132_v51 = vadd.f32 %v3092_v41, %v2830_v0 }
 0x2d3   : > { %v4243_v60 = vadd.f32 %v6928_v31, %v4207_v33 }
 0x2d5   : > { %vm4275_vm5 = vcmp.ge.f32.partialorder %v4243_v60, 0.0  ;;  %v4307_v24 = vmul.f32 0.2, %v4243_v60  ;;  %v4168_v22 = vpop.f32.mrf.mxu0 }
 0x2d6   : > { %v3758_v15 = vpop.f32.mrf.mxu3  ;;  %v2795_v9 = vpop.f32.mrf.mxu1 }
 0x2d7   : > { %v4339_v26 = vsel %vm4275_vm5, %v4243_v60, %v4307_v24  ;;  %v3798_v61 = vadd.f32 %v3758_v15, %v3132_v51  ;;  %v2832_v47 = vadd.f32 %v2795_v9, %v6587_v30 }
 0x2d8   : > { %v4371_v53 = vpack.c.bf16 %v4339_v26, %v4339_v26 }
 0x2d9   : > { %v4208_v36 = vadd.f32 %v4168_v22, %v3798_v61  ;;  %v3095_v59 = vpop.f32.mrf.mxu2 }
 0x2da   : > { %4404 = vst.msk [vmem:[%s6670_s11 + $0x68] sm:$0xf] %vm4377_vm8, %v4371_v53  ;;  %v3133_v57 = vadd.f32 %v3095_v59, %v2831_v58 }
 0x2db   : > { %v4244_v28 = vadd.f32 %v6928_v31, %v4208_v36 }
 0x2dd   : > { %vm4276_vm7 = vcmp.ge.f32.partialorder %v4244_v28, 0.0  ;;  %v4308_v12 = vmul.f32 0.2, %v4244_v28  ;;  %v4171_v48 = vpop.f32.mrf.mxu0 }
 0x2de   : > { %v3761_v56 = vpop.f32.mrf.mxu3  ;;  %v2798_v19 = vpop.f32.mrf.mxu1 }
 0x2df   : > { %v4340_v27 = vsel %vm4276_vm7, %v4244_v28, %v4308_v12  ;;  %v3799_v54 = vadd.f32 %v3761_v56, %v3133_v57  ;;  %v2833_v37 = vadd.f32 %v2798_v19, %v6604_v7 }
 0x2e0   : > { %v4372_v10 = vpack.c.bf16 %v4340_v27, %v4340_v27 }
 0x2e1   : > { %v4209_v52 = vadd.f32 %v4171_v48, %v3799_v54  ;;  %v3097_v29 = vpop.f32.mrf.mxu2 }
 0x2e2   : > { %4405 = vst.msk [vmem:[%s6670_s11 + $0x6c] sm:$0xf] %vm4377_vm8, %v4372_v10  ;;  %v3134_v5 = vadd.f32 %v3097_v29, %v2832_v47 }
 0x2e3   : > { %v4245_v63 = vadd.f32 %v6928_v31, %v4209_v52 }
 0x2e5   : > { %vm4277_vm2 = vcmp.ge.f32.partialorder %v4245_v63, 0.0  ;;  %v4309_v40 = vmul.f32 0.2, %v4245_v63  ;;  %v4173_v62 = vpop.f32.mrf.mxu0 }
 0x2e6   : > { %v3763_v45 = vpop.f32.mrf.mxu3  ;;  %v2800_v35 = vpop.f32.mrf.mxu1 }
 0x2e7   : > { %v4341_v42 = vsel %vm4277_vm2, %v4245_v63, %v4309_v40  ;;  %v3800_v20 = vadd.f32 %v3763_v45, %v3134_v5  ;;  %v2834_v7 = vadd.f32 %v2800_v35, %v6624_v16 }
 0x2e8   : > { %v4373_v38 = vpack.c.bf16 %v4341_v42, %v4341_v42 }
 0x2e9   : > { %v4210_v8 = vadd.f32 %v4173_v62, %v3800_v20  ;;  %v3100_v30 = vpop.f32.mrf.mxu2 }
 0x2ea   : > { %4406 = vst.msk [vmem:[%s6670_s11 + $0x70] sm:$0xf] %vm4377_vm8, %v4373_v38  ;;  %v3135_v14 = vadd.f32 %v3100_v30, %v2833_v37 }
 0x2eb   : > { %v4246_v34 = vadd.f32 %v6928_v31, %v4210_v8 }
 0x2ed   : > { %vm4278_vm6 = vcmp.ge.f32.partialorder %v4246_v34, 0.0  ;;  %v4310_v46 = vmul.f32 0.2, %v4246_v34  ;;  %v4176_v44 = vpop.f32.mrf.mxu0 }
 0x2ee   : > { %v3766_v23 = vpop.f32.mrf.mxu3 }
 0x2ef   : > { %v4342_v21 = vsel %vm4278_vm6, %v4246_v34, %v4310_v46  ;;  %v3801_v43 = vadd.f32 %v3766_v23, %v3135_v14 }
 0x2f0   : > { %v4374_v25 = vpack.c.bf16 %v4342_v21, %v4342_v21 }
 0x2f1   : > { %v4211_v3 = vadd.f32 %v4176_v44, %v3801_v43  ;;  %v3102_v49 = vpop.f32.mrf.mxu2 }
 0x2f2   : > { %4407 = vst.msk [vmem:[%s6670_s11 + $0x74] sm:$0xf] %vm4377_vm8, %v4374_v25  ;;  %v3136_v11 = vadd.f32 %v3102_v49, %v2834_v7 }
 0x2f3   : > { %v4247_v32 = vadd.f32 %v6928_v31, %v4211_v3 }
 0x2f5   : > { %vm4279_vm3 = vcmp.ge.f32.partialorder %v4247_v32, 0.0  ;;  %v4311_v1 = vmul.f32 0.2, %v4247_v32  ;;  %v4178_v6 = vpop.f32.mrf.mxu0 }
 0x2f6   : > { %v3768_v17 = vpop.f32.mrf.mxu3 }
 0x2f7   : > { %v4343_v4 = vsel %vm4279_vm3, %v4247_v32, %v4311_v1  ;;  %v3802_v2 = vadd.f32 %v3768_v17, %v3136_v11 }
 0x2f8   : > { %v4375_v39 = vpack.c.bf16 %v4343_v4, %v4343_v4 }
 0x2f9   : > { %v4212_v13 = vadd.f32 %v4178_v6, %v3802_v2 }
 0x2fa   : > { %4408 = vst.msk [vmem:[%s6670_s11 + $0x78] sm:$0xf] %vm4377_vm8, %v4375_v39 }
 0x2fb   : > { %v4248_v16 = vadd.f32 %v6928_v31, %v4212_v13 }
 0x2fd   : > { %vm4280_vm9 = vcmp.ge.f32.partialorder %v4248_v16, 0.0  ;;  %v4312_v55 = vmul.f32 0.2, %v4248_v16 }
 0x2ff   : > { %v4344_v18 = vsel %vm4280_vm9, %v4248_v16, %v4312_v55 }
 0x300   : > { %v4376_v50 = vpack.c.bf16 %v4344_v18, %v4344_v18 }
 0x302   : > { %4409 = vst.msk [vmem:[%s6670_s11 + $0x7c] sm:$0xf] %vm4377_vm8, %v4376_v50 }
 0x303   : > { %5414 = shalt.err (!%p5411_p5)
}
 0x304   : > { %s5467_s9 = smov 64   ;;  %s5468_s11 = smov 4  }
 0x305   : > { %5278 = dma.vmem_to_hbm [thread:$0]  (%p5529_p4), %s4427_s28, 2048, %s4429_s29, %s4411_s15, %s5467_s9, %s5467_s9, %s5468_s11  }
 0x306 PF: > { %p5284_p6 = scmp.ge.s32.totalorder %s5465_s17, 2  ;;  %s4443_s23 = sand.u32 1, %s5445_s12  }
 0x307   : > { %s4444_s18 = scalar_lea.sflag [#allocation3], %s4443_s23 }
 0x308   : > { %p5281_p7 = pnand %p5284_p6, %p5536_p8 }
 0x30a   : > { %p5282_p9 = pneg %p5281_p7 }
 0x30c   : > { %5440 = dma.done.wait (%p5282_p9), %s4444_s18, 2048  }
 0x30d   : > { %5442 = vsyncadd (%p5282_p9), %s4444_s18, 4294965248  ;;  %s16_s17 = sadd.s32 1, %s5465_s17   ;;  %s7047_s12 = smov %s5449_s13 }
 0x30e   : > { %p13_p10 = scmp.ge.s32.totalorder %s16_s17, 4   ;;  %s7048_s13 = smov %s5453_s14 }
 0x30f   : > { %s7049_s14 = smov %s5542_s25  ;;  %s7050_s15 = smov %s5461_s16 }
 0x310   : > { %s7051_s16 = smov %s7053_s20  ;;  %15 = sbr.rel (!%p13_p10) target bundleno = 4 (0x4), region = 78 }
 0x315   :  { %4450 = vsyncpa [#allocation3], 1 }
 0x316   :  { %4452 = vsyncpa [#allocation3 + $0x1], 1 }

</bundles_post_ra>
